<compile_context>
chip_gen: v7x
topology: tpu7x:2x2x1
jax: 0.10.0
libtpu: 0.0.40
codegen_flags: <defaults>
</compile_context>

<pallas_src>
import jax
import jax.numpy as jnp
from jax.experimental import pallas as pl
from jax.experimental.pallas import tpu as pltpu


# ------------------------- hyperparameters ("HP") -------------------------
class HP:
    max_entity = 8
    entity_feature_size = 16
    entity_embedding_size = 32
    embedded_entity_size = 64
    spatial_channels = 4          # C of the torch NCHW spatial input
    spatial_size = 8              # H = W
    conv_channels = 8
    embedded_spatial_size = 64
    embedded_state_size = 64
    original_64 = 64
    original_32 = 32
    autoregressive_embedding_size = 64
    n_actions = 16


# ------------------------- weight-slab layout (static) --------------------
_LANES = 128

_W_SPEC = [  # (name, rows, cols) -- bf16 MXU weight slab, 16-row aligned entries
    ("w_ent",    HP.entity_feature_size,   HP.entity_embedding_size),
    ("w_eef",    HP.entity_embedding_size, HP.embedded_entity_size + HP.n_actions),
    ("w_sp",     HP.conv_channels,         HP.embedded_spatial_size),
    ("w_core_e", HP.embedded_entity_size,  HP.embedded_state_size),
    ("w_core_s", HP.embedded_spatial_size, HP.embedded_state_size),
    ("w_sh",     HP.embedded_state_size,   HP.n_actions + HP.original_64),
    ("w_c2",     HP.original_64,           HP.original_32),
]

_M_SPEC = [  # (name, rows, cols) -- f32 biases / VPU tables, 8-row aligned entries
    ("b_ent",   1, HP.entity_embedding_size),
    ("b_ee",    1, HP.embedded_entity_size),
    ("w_convT", HP.conv_channels, HP.spatial_channels),
    ("b_conv",  HP.conv_channels, 1),
    ("b_sp",    1, HP.embedded_spatial_size),
    ("b_core",  1, HP.embedded_state_size),
    ("b_sh",    1, HP.n_actions + HP.original_64),
    ("b_c2",    1, HP.original_32),
    ("w_c3r",   1, HP.original_32),
    ("b_c3",    1, 1),
    ("m_upd",   HP.n_actions, HP.n_actions),
]


def _offsets(spec, align):
    offs, r = {}, 0
    for name, nr, nc in spec:
        offs[name] = (r, nr, nc)
        r += nr + (-nr) % align
    return offs, r


_W_OFF, _W_ROWS = _offsets(_W_SPEC, 16)   # bf16 packs (16, 128) tiles
_M_OFF, _M_ROWS = _offsets(_M_SPEC, 8)    # f32 packs (8, 128) tiles


def _win(ref, offs, name):
    r, nr, nc = offs[name]
    return ref[pl.ds(r, nr), pl.ds(0, nc)]


# ------------------------------- kernel -----------------------------------
def arch_kernel(ent_ref, sp_ref, mask_ref, w_ref, m_ref, actions_ref, misc_ref):
    A = HP.n_actions
    E_ee = HP.embedded_entity_size
    O = HP.conv_channels
    bf16 = jnp.bfloat16

    Bb, N, Fe = ent_ref.shape
    _, C, P = sp_ref.shape

    def W(name):      # bf16 MXU weight window (static slab slice)
        return _win(w_ref, _W_OFF, name)

    def M(name):      # f32 bias / VPU-table window (static slab slice)
        return _win(m_ref, _M_OFF, name)

    # ---------------- Entity_encoder ----------------
    ent2d = ent_ref[...].reshape(Bb * N, Fe)
    ent_emb = jnp.maximum(
        jnp.dot(ent2d.astype(bf16), W("w_ent"),
                preferred_element_type=jnp.float32) + M("b_ent"), 0.0)
    # Fused consumers of the per-entity embedding: one lane-dense matmul gives
    # [embedded_entity pre-mean | per-entity action-head logits].
    big = jnp.dot(ent_emb.astype(bf16), W("w_eef"),
                  preferred_element_type=jnp.float32)               # [Bb*N, 64+A]
    embedded_entity = jnp.maximum(
        jnp.mean(big[:, :E_ee].reshape(Bb, N, E_ee), axis=1) + M("b_ee"), 0.0)
    ent_logits = big[:, E_ee:].reshape(Bb, N, A)                    # [Bb, N, A]

    # ---------------- Spatial_encoder ----------------
    # TODO(synk): reference Spatial_encoder internals unknown; modeled as a 1x1
    # conv (channel mix) + ReLU + global mean pool + Linear + ReLU.
    # Pixels stay on lanes (P = H*W = 64); the channel mix is 4 VPU rank-1
    # updates, so no MXU dispatch and no lane-sparse [B*H*W, 4] sliver.
    sp = sp_ref[...]                                                # [Bb, C, P] f32
    w_convT = M("w_convT")                                          # [O, C]
    conv = jnp.zeros((Bb, O, P), jnp.float32) + M("b_conv")         # bias [O, 1]
    for c in range(C):                                              # C = 4, static
        conv = conv + w_convT[:, c:c + 1] * sp[:, c:c + 1, :]
    pooled = jnp.mean(jnp.maximum(conv, 0.0), axis=-1)              # [Bb, O]
    embedded_spatial = jnp.maximum(
        jnp.dot(pooled.astype(bf16), W("w_sp"),
                preferred_element_type=jnp.float32) + M("b_sp"), 0.0)

    # ---------------- Core ----------------
    # TODO(synk): reference Core is recurrent (LSTM); modeled as Linear + ReLU.
    # w_core is split host-side, so no 64|64 lane concatenate is materialized.
    state = jnp.maximum(
        jnp.dot(embedded_entity.astype(bf16), W("w_core_e"),
                preferred_element_type=jnp.float32)
        + jnp.dot(embedded_spatial.astype(bf16), W("w_core_s"),
                  preferred_element_type=jnp.float32)
        + M("b_core"), 0.0)

    # ------- fused state head: [initial ar-logit carry | critic layer-1] -------
    sh = jnp.dot(state.astype(bf16), W("w_sh"),
                 preferred_element_type=jnp.float32) + M("b_sh")    # [Bb, A+64]
    carry = sh[:, :A]               # == ar0 @ W_ar + state @ W_state + b_ath
    h = jnp.maximum(sh[:, A:], 0.0)

    # ---------------- critic ----------------
    h = jnp.maximum(
        jnp.dot(h.astype(bf16), W("w_c2"),
                preferred_element_type=jnp.float32) + M("b_c2"), 0.0)
    # final 32->1 layer on the VPU (multiply + lane reduce), not the MXU
    value = jnp.sum(h * M("w_c3r"), axis=-1, keepdims=True) + M("b_c3")  # [Bb, 1]

    # ---------------- autoregressive ActionTypeHead loop ----------------
    # TODO(synk): reference ActionTypeHead internals unknown; modeled as masked
    # greedy argmax + summed log-prob + additive ar-embedding update (the update
    # is pre-folded through W_ar into m_upd; only valid for a linear head).
    mask_pos = mask_ref[...] > 0.0                                  # [Bb, N, A]
    m_upd = M("m_upd")                                              # [A, A]
    # loop-invariant iotas / broadcasts hoisted (JAX does not CSE broadcasts)
    lane_A = jax.lax.broadcasted_iota(jnp.int32, (Bb, A), 1)
    col_N = jax.lax.broadcasted_iota(jnp.int32, (Bb, N), 1)
    use_vpu_gather = Bb * A <= 256   # small block: keep the serial carry update
    if use_vpu_gather:               # off the MXU (no systolic fill/pop latency)
        sub_A = jax.lax.broadcasted_iota(jnp.int32, (Bb, A, 1), 1)
        m_upd_bc = m_upd.reshape(1, A, A)
    neg = jnp.float32(-1e9)

    acts = jnp.zeros((Bb, N), jnp.int32)
    total_logp = jnp.zeros((Bb, 1), jnp.float32)
    for i in range(N):  # static unroll; entity_ids == arange(N)
        masked = jnp.where(mask_pos[:, i], carry + ent_logits[:, i], neg)
        mx = jnp.max(masked, axis=-1, keepdims=True)
        action = jnp.min(jnp.where(masked >= mx, lane_A, A),
                         axis=-1, keepdims=True)                    # first-max argmax
        acts = jnp.where(col_N == i, action, acts)                  # no per-iter store
        # chosen logit == mx, so logp_i = mx - lse = -log(sum exp(masked - mx))
        total_logp = total_logp - jnp.log(
            jnp.sum(jnp.exp(masked - mx), axis=-1, keepdims=True))
        if use_vpu_gather:
            # m_upd[action] as a masked sublane-sum: VPU/XLU only, serial-chain cheap
            onehot_s = (sub_A == action[:, :, None]).astype(jnp.float32)  # [Bb,A,1]
            upd = jnp.sum(onehot_s * m_upd_bc, axis=1)                    # [Bb, A]
        else:
            onehot = (lane_A == action).astype(jnp.float32)
            upd = jnp.dot(onehot, m_upd, preferred_element_type=jnp.float32)
        carry = carry + upd

    actions_ref[...] = acts                                          # one store
    misc_ref[...] = jnp.concatenate([total_logp, value], axis=-1)    # one store


# ------------------------- parameter construction -------------------------
def _linear(key, fan_in, fan_out):
    k1, k2 = jax.random.split(key)
    w = jax.random.normal(k1, (fan_in, fan_out), jnp.float32) / jnp.sqrt(float(fan_in))
    b = jax.random.normal(k2, (1, fan_out), jnp.float32) * 0.01
    return w, b


def make_params(key):
    ks = jax.random.split(key, 11)
    w_ent, b_ent = _linear(ks[0], HP.entity_feature_size, HP.entity_embedding_size)
    w_ee, b_ee = _linear(ks[1], HP.entity_embedding_size, HP.embedded_entity_size)
    w_conv, b_conv = _linear(ks[2], HP.spatial_channels, HP.conv_channels)
    w_sp, b_sp = _linear(ks[3], HP.conv_channels, HP.embedded_spatial_size)
    w_core, b_core = _linear(ks[4],
                             HP.embedded_entity_size + HP.embedded_spatial_size,
                             HP.embedded_state_size)
    w_arfc, b_arfc = _linear(ks[5], HP.embedded_state_size,
                             HP.autoregressive_embedding_size)
    w_c1, b_c1 = _linear(ks[6], HP.embedded_state_size, HP.original_64)
    w_c2, b_c2 = _linear(ks[7], HP.original_64, HP.original_32)
    w_c3, b_c3 = _linear(ks[8], HP.original_32, 1)
    w_ath, b_ath = _linear(ks[9],
                           HP.autoregressive_embedding_size
                           + HP.embedded_state_size
                           + HP.entity_embedding_size,
                           HP.n_actions)
    w_upd, b_upd = _linear(ks[10], HP.n_actions, HP.autoregressive_embedding_size)
    return (w_ent, b_ent, w_ee, b_ee, w_conv, b_conv, w_sp, b_sp,
            w_core, b_core, w_arfc, b_arfc,
            w_c1, b_c1, w_c2, b_c2, w_c3, b_c3,
            w_ath, b_ath, w_upd, b_upd)


def _pack(arrays, offs, total_rows, dtype):
    slab = jnp.zeros((total_rows, _LANES), jnp.float32)
    for name, a in arrays.items():
        r, nr, nc = offs[name]
        a2 = jnp.asarray(a, jnp.float32).reshape(nr, nc)
        slab = slab.at[r:r + nr, :nc].set(a2)
    return slab.astype(dtype)


def prepare_params(params):
    """One-time host-side algebraic refactor + slab packing (off the call path).

    TODO(synk): the ar_fc / ActionTypeHead folds below are exact only for a
    purely linear head; must be re-derived if the real head has nonlinearities.
    """
    (w_ent, b_ent, w_ee, b_ee, w_conv, b_conv, w_sp, b_sp,
     w_core, b_core, w_arfc, b_arfc,
     w_c1, b_c1, w_c2, b_c2, w_c3, b_c3,
     w_ath, b_ath, w_upd, b_upd) = params
    A = HP.n_actions
    e_ar = HP.autoregressive_embedding_size
    e_st = HP.embedded_state_size
    e_ee = HP.embedded_entity_size

    # split the action-head weight by input block: [ar | state | entity_emb]
    w_ar = w_ath[:e_ar]
    w_st = w_ath[e_ar:e_ar + e_st]
    w_ath_ent = w_ath[e_ar + e_st:]
    # fold ar_fc and the state block into the initial ar-logit carry
    w_carry0 = w_arfc @ w_ar + w_st
    b_carry0 = b_arfc @ w_ar + b_ath
    # fold the ar update through W_ar (b_upd folds in: one_hot rows sum to 1)
    m_upd = w_upd @ w_ar + jnp.ones((A, 1), jnp.float32) @ (b_upd @ w_ar)

    w_arrays = {
        "w_ent": w_ent,
        "w_eef": jnp.concatenate([w_ee, w_ath_ent], axis=1),        # [32, 64+A]
        "w_sp": w_sp,
        "w_core_e": w_core[:e_ee],
        "w_core_s": w_core[e_ee:],
        "w_sh": jnp.concatenate([w_carry0, w_c1], axis=1),          # [64, A+64]
        "w_c2": w_c2,
    }
    m_arrays = {
        "b_ent": b_ent,
        "b_ee": b_ee,
        "w_convT": w_conv.T,                                        # [O, C]
        "b_conv": b_conv.reshape(-1, 1),                            # [O, 1]
        "b_sp": b_sp,
        "b_core": b_core,
        "b_sh": jnp.concatenate([b_carry0, b_c1], axis=1),
        "b_c2": b_c2,
        "w_c3r": w_c3.T,                                            # [1, 32]
        "b_c3": b_c3,
        "m_upd": m_upd,
    }
    w_slab = _pack(w_arrays, _W_OFF, _W_ROWS, jnp.bfloat16)   # MXU weights (bf16)
    m_slab = _pack(m_arrays, _M_OFF, _M_ROWS, jnp.float32)    # biases / VPU (f32)
    return w_slab, m_slab


# ------------------------- wrapper -------------------------
def _pick_block(B):
    # Largest multiple-of-8 block (cap 128) that still leaves >= 2 grid steps,
    # so v7x's two TensorCores both get work; otherwise take the whole batch.
    for cand in (128, 64, 32, 16, 8):
        if B % cand == 0 and B // cand >= 2:
            return cand
    return B


def arch_model_forward(entity_x, spatial_nchw, action_type_mask, w_slab, m_slab):
    B, N, Fe = entity_x.shape
    _, C, H, W = spatial_nchw.shape
    A = action_type_mask.shape[-1]
    # keep NCHW; only flatten pixels onto lanes (free contiguous reshape)
    spatial_flat = spatial_nchw.reshape(B, C, H * W)

    bb = _pick_block(B)
    grid = (B // bb,)

    in_specs = [
        pl.BlockSpec((bb, N, Fe), lambda i: (i, 0, 0)),
        pl.BlockSpec((bb, C, H * W), lambda i: (i, 0, 0)),
        pl.BlockSpec((bb, N, A), lambda i: (i, 0, 0)),
        pl.BlockSpec(w_slab.shape, lambda i: (0, 0)),   # resident weight slab
        pl.BlockSpec(m_slab.shape, lambda i: (0, 0)),   # resident bias slab
    ]
    out_specs = (
        pl.BlockSpec((bb, N), lambda i: (i, 0)),
        pl.BlockSpec((bb, 2), lambda i: (i, 0)),
    )
    out_shape = (
        jax.ShapeDtypeStruct((B, N), jnp.int32),        # per-entity action ids
        jax.ShapeDtypeStruct((B, 2), jnp.float32),      # [summed logp | value]
    )
    fn = pl.pallas_call(
        arch_kernel,
        out_shape=out_shape,
        grid=grid,
        in_specs=in_specs,
        out_specs=out_specs,
        compiler_params=pltpu.CompilerParams(dimension_semantics=("parallel",)),
    )
    actions, misc = fn(entity_x, spatial_flat, action_type_mask, w_slab, m_slab)
    return actions, misc[:, 0:1], misc[:, 1:2]


if __name__ == "__main__":
    key = jax.random.PRNGKey(0)
    k_ent, k_sp, k_mask, k_params = jax.random.split(key, 4)

    B = 16  # small demo batch; bb=8 gives a 2-step grid for v7x megacore
    entity_x = jax.random.normal(
        k_ent, (B, HP.max_entity, HP.entity_feature_size), jnp.float32)
    spatial_nchw = jax.random.normal(
        k_sp, (B, HP.spatial_channels, HP.spatial_size, HP.spatial_size),
        jnp.float32)
    action_type_mask = (jax.random.uniform(
        k_mask, (B, HP.max_entity, HP.n_actions)) > 0.3).astype(jnp.float32)
    # guarantee every entity has at least one legal action
    action_type_mask = action_type_mask.at[:, :, 0].set(1.0)

    params = make_params(k_params)
    w_slab, m_slab = prepare_params(params)   # one-time host-side weight refactor

    forward = jax.jit(arch_model_forward)
    actions, batch_action_type_logits, state_value = forward(
        entity_x, spatial_nchw, action_type_mask, w_slab, m_slab)
    jax.block_until_ready((actions, batch_action_type_logits, state_value))

    # mimic the torch forward's list-of-dicts action packaging (host-side glue)
    entity_ids = list(range(HP.max_entity))
    total_actions = [
        {"unit_id": eid, "action_type": actions[:, i]}
        for i, eid in enumerate(entity_ids)
    ]
    assert actions.shape == (B, HP.max_entity)
    assert batch_action_type_logits.shape == (B, 1)
    assert state_value.shape == (B, 1)
    print("KERNEL_OK")
</pallas_src>

<mosaic_0001>
module attributes {stable_mosaic.version = 11 : i64} {
  func.func @arch_kernel(%arg0: i32, %arg1: memref<8x8x16xf32, #tpu.memory_space<vmem>>, %arg2: memref<8x4x64xf32, #tpu.memory_space<vmem>>, %arg3: memref<8x8x16xf32, #tpu.memory_space<vmem>>, %arg4: memref<320x128xbf16, #tpu.memory_space<vmem>>, %arg5: memref<96x128xf32, #tpu.memory_space<vmem>>, %arg6: memref<8x8xi32, #tpu.memory_space<vmem>>, %arg7: memref<8x2xf32, #tpu.memory_space<vmem>>) attributes {dimension_semantics = [#tpu.dimension_semantics<parallel>], iteration_bounds = array<i64: 2>, scalar_prefetch = 0 : i64, scratch_operands = 0 : i64, tpu.core_type = #tpu.core_type<tc>, window_params = [{transform_indices = @transform_0, window_bounds = array<i64: 8, 8, 16>}, {transform_indices = @transform_1, window_bounds = array<i64: 8, 4, 64>}, {transform_indices = @transform_2, window_bounds = array<i64: 8, 8, 16>}, {pipeline_mode = #tpu.pipeline_mode<synchronous>, transform_indices = @transform_3, window_bounds = array<i64: 320, 128>}, {pipeline_mode = #tpu.pipeline_mode<synchronous>, transform_indices = @transform_4, window_bounds = array<i64: 96, 128>}, {transform_indices = @transform_5, window_bounds = array<i64: 8, 8>}, {transform_indices = @transform_6, window_bounds = array<i64: 8, 2>}]} {
    %c0 = arith.constant 0 : index
    %c0_0 = arith.constant 0 : index
    %c0_1 = arith.constant 0 : index
    %0 = vector.load %arg1[%c0, %c0_0, %c0_1] : memref<8x8x16xf32, #tpu.memory_space<vmem>>, vector<8x8x16xf32>
    %1 = vector.shape_cast %0 : vector<8x8x16xf32> to vector<64x16xf32>
    %2 = arith.truncf %1 : vector<64x16xf32> to vector<64x16xbf16>
    %c0_2 = arith.constant 0 : index
    %c0_3 = arith.constant 0 : index
    %3 = vector.load %arg4[%c0_2, %c0_3] : memref<320x128xbf16, #tpu.memory_space<vmem>>, vector<16x32xbf16>
    %cst = arith.constant dense<0.000000e+00> : vector<64x32xf32>
    %4 = tpu.matmul %2, %3, %cst {dimension_numbers = #tpu.dot_dimension_numbers<[1], [0], [0], [1], [0, 0, 1, 1], [], []>} : vector<64x16xbf16>, vector<16x32xbf16>, vector<64x32xf32> -> vector<64x32xf32>
    %c0_4 = arith.constant 0 : index
    %c0_5 = arith.constant 0 : index
    %5 = vector.load %arg5[%c0_4, %c0_5] : memref<96x128xf32, #tpu.memory_space<vmem>>, vector<1x32xf32>
    %6 = vector.broadcast %5 : vector<1x32xf32> to vector<64x32xf32>
    %7 = arith.addf %4, %6 : vector<64x32xf32>
    %cst_6 = arith.constant 0.000000e+00 : f32
    %8 = vector.broadcast %cst_6 : f32 to vector<64x32xf32>
    %9 = arith.maximumf %7, %8 : vector<64x32xf32>
    %10 = arith.truncf %9 : vector<64x32xf32> to vector<64x32xbf16>
    %c16 = arith.constant 16 : index
    %c0_7 = arith.constant 0 : index
    %11 = vector.load %arg4[%c16, %c0_7] : memref<320x128xbf16, #tpu.memory_space<vmem>>, vector<32x80xbf16>
    %cst_8 = arith.constant dense<0.000000e+00> : vector<64x80xf32>
    %12 = tpu.matmul %10, %11, %cst_8 {dimension_numbers = #tpu.dot_dimension_numbers<[1], [0], [0], [1], [0, 0, 1, 1], [], []>} : vector<64x32xbf16>, vector<32x80xbf16>, vector<64x80xf32> -> vector<64x80xf32>
    %13 = vector.extract_strided_slice %12 {offsets = [0, 0], sizes = [64, 64], strides = [1, 1]} : vector<64x80xf32> to vector<64x64xf32>
    %14 = vector.shape_cast %13 : vector<64x64xf32> to vector<8x8x64xf32>
    %cst_9 = arith.constant dense<0.000000e+00> : vector<8x64xf32>
    %15 = vector.multi_reduction <add>, %14, %cst_9 [1] : vector<8x8x64xf32> to vector<8x64xf32>
    %cst_10 = arith.constant 8.000000e+00 : f32
    %16 = vector.broadcast %cst_10 : f32 to vector<8x64xf32>
    %17 = arith.divf %15, %16 : vector<8x64xf32>
    %c8 = arith.constant 8 : index
    %c0_11 = arith.constant 0 : index
    %18 = vector.load %arg5[%c8, %c0_11] : memref<96x128xf32, #tpu.memory_space<vmem>>, vector<1x64xf32>
    %19 = vector.broadcast %18 : vector<1x64xf32> to vector<8x64xf32>
    %20 = arith.addf %17, %19 : vector<8x64xf32>
    %cst_12 = arith.constant 0.000000e+00 : f32
    %21 = vector.broadcast %cst_12 : f32 to vector<8x64xf32>
    %22 = arith.maximumf %20, %21 : vector<8x64xf32>
    %23 = vector.extract_strided_slice %12 {offsets = [0, 64], sizes = [64, 16], strides = [1, 1]} : vector<64x80xf32> to vector<64x16xf32>
    %24 = vector.shape_cast %23 : vector<64x16xf32> to vector<8x8x16xf32>
    %c0_13 = arith.constant 0 : index
    %c0_14 = arith.constant 0 : index
    %c0_15 = arith.constant 0 : index
    %25 = vector.load %arg2[%c0_13, %c0_14, %c0_15] : memref<8x4x64xf32, #tpu.memory_space<vmem>>, vector<8x4x64xf32>
    %c16_16 = arith.constant 16 : index
    %c0_17 = arith.constant 0 : index
    %26 = vector.load %arg5[%c16_16, %c0_17] : memref<96x128xf32, #tpu.memory_space<vmem>>, vector<8x4xf32>
    %cst_18 = arith.constant 0.000000e+00 : f32
    %27 = vector.broadcast %cst_18 : f32 to vector<8x8x64xf32>
    %c24 = arith.constant 24 : index
    %c0_19 = arith.constant 0 : index
    %28 = vector.load %arg5[%c24, %c0_19] : memref<96x128xf32, #tpu.memory_space<vmem>>, vector<8x1xf32>
    %29 = vector.shape_cast %28 : vector<8x1xf32> to vector<1x8x1xf32>
    %30 = vector.broadcast %29 : vector<1x8x1xf32> to vector<8x8x64xf32>
    %31 = arith.addf %27, %30 : vector<8x8x64xf32>
    %32 = vector.extract_strided_slice %26 {offsets = [0, 0], sizes = [8, 1], strides = [1, 1]} : vector<8x4xf32> to vector<8x1xf32>
    %33 = vector.extract_strided_slice %25 {offsets = [0, 0, 0], sizes = [8, 1, 64], strides = [1, 1, 1]} : vector<8x4x64xf32> to vector<8x1x64xf32>
    %34 = vector.shape_cast %32 : vector<8x1xf32> to vector<1x8x1xf32>
    %35 = vector.broadcast %34 : vector<1x8x1xf32> to vector<8x8x64xf32>
    %36 = vector.broadcast %33 : vector<8x1x64xf32> to vector<8x8x64xf32>
    %37 = arith.mulf %35, %36 : vector<8x8x64xf32>
    %38 = arith.addf %31, %37 : vector<8x8x64xf32>
    %39 = vector.extract_strided_slice %26 {offsets = [0, 1], sizes = [8, 1], strides = [1, 1]} : vector<8x4xf32> to vector<8x1xf32>
    %40 = vector.extract_strided_slice %25 {offsets = [0, 1, 0], sizes = [8, 1, 64], strides = [1, 1, 1]} : vector<8x4x64xf32> to vector<8x1x64xf32>
    %41 = vector.shape_cast %39 : vector<8x1xf32> to vector<1x8x1xf32>
    %42 = vector.broadcast %41 : vector<1x8x1xf32> to vector<8x8x64xf32>
    %43 = vector.broadcast %40 : vector<8x1x64xf32> to vector<8x8x64xf32>
    %44 = arith.mulf %42, %43 : vector<8x8x64xf32>
    %45 = arith.addf %38, %44 : vector<8x8x64xf32>
    %46 = vector.extract_strided_slice %26 {offsets = [0, 2], sizes = [8, 1], strides = [1, 1]} : vector<8x4xf32> to vector<8x1xf32>
    %47 = vector.extract_strided_slice %25 {offsets = [0, 2, 0], sizes = [8, 1, 64], strides = [1, 1, 1]} : vector<8x4x64xf32> to vector<8x1x64xf32>
    %48 = vector.shape_cast %46 : vector<8x1xf32> to vector<1x8x1xf32>
    %49 = vector.broadcast %48 : vector<1x8x1xf32> to vector<8x8x64xf32>
    %50 = vector.broadcast %47 : vector<8x1x64xf32> to vector<8x8x64xf32>
    %51 = arith.mulf %49, %50 : vector<8x8x64xf32>
    %52 = arith.addf %45, %51 : vector<8x8x64xf32>
    %53 = vector.extract_strided_slice %26 {offsets = [0, 3], sizes = [8, 1], strides = [1, 1]} : vector<8x4xf32> to vector<8x1xf32>
    %54 = vector.extract_strided_slice %25 {offsets = [0, 3, 0], sizes = [8, 1, 64], strides = [1, 1, 1]} : vector<8x4x64xf32> to vector<8x1x64xf32>
    %55 = vector.shape_cast %53 : vector<8x1xf32> to vector<1x8x1xf32>
    %56 = vector.broadcast %55 : vector<1x8x1xf32> to vector<8x8x64xf32>
    %57 = vector.broadcast %54 : vector<8x1x64xf32> to vector<8x8x64xf32>
    %58 = arith.mulf %56, %57 : vector<8x8x64xf32>
    %59 = arith.addf %52, %58 : vector<8x8x64xf32>
    %cst_20 = arith.constant 0.000000e+00 : f32
    %60 = vector.broadcast %cst_20 : f32 to vector<8x8x64xf32>
    %61 = arith.maximumf %59, %60 : vector<8x8x64xf32>
    %cst_21 = arith.constant dense<0.000000e+00> : vector<8x8xf32>
    %62 = vector.multi_reduction <add>, %61, %cst_21 [2] : vector<8x8x64xf32> to vector<8x8xf32>
    %cst_22 = arith.constant 6.400000e+01 : f32
    %63 = vector.broadcast %cst_22 : f32 to vector<8x8xf32>
    %64 = arith.divf %62, %63 : vector<8x8xf32>
    %65 = arith.truncf %64 : vector<8x8xf32> to vector<8x8xbf16>
    %c48 = arith.constant 48 : index
    %c0_23 = arith.constant 0 : index
    %66 = vector.load %arg4[%c48, %c0_23] : memref<320x128xbf16, #tpu.memory_space<vmem>>, vector<8x64xbf16>
    %cst_24 = arith.constant dense<0.000000e+00> : vector<8x64xf32>
    %67 = tpu.matmul %65, %66, %cst_24 {dimension_numbers = #tpu.dot_dimension_numbers<[1], [0], [0], [1], [0, 0, 1, 1], [], []>} : vector<8x8xbf16>, vector<8x64xbf16>, vector<8x64xf32> -> vector<8x64xf32>
    %c32 = arith.constant 32 : index
    %c0_25 = arith.constant 0 : index
    %68 = vector.load %arg5[%c32, %c0_25] : memref<96x128xf32, #tpu.memory_space<vmem>>, vector<1x64xf32>
    %69 = vector.broadcast %68 : vector<1x64xf32> to vector<8x64xf32>
    %70 = arith.addf %67, %69 : vector<8x64xf32>
    %cst_26 = arith.constant 0.000000e+00 : f32
    %71 = vector.broadcast %cst_26 : f32 to vector<8x64xf32>
    %72 = arith.maximumf %70, %71 : vector<8x64xf32>
    %73 = arith.truncf %22 : vector<8x64xf32> to vector<8x64xbf16>
    %c64 = arith.constant 64 : index
    %c0_27 = arith.constant 0 : index
    %74 = vector.load %arg4[%c64, %c0_27] : memref<320x128xbf16, #tpu.memory_space<vmem>>, vector<64x64xbf16>
    %cst_28 = arith.constant dense<0.000000e+00> : vector<8x64xf32>
    %75 = tpu.matmul %73, %74, %cst_28 {dimension_numbers = #tpu.dot_dimension_numbers<[1], [0], [0], [1], [0, 0, 1, 1], [], []>} : vector<8x64xbf16>, vector<64x64xbf16>, vector<8x64xf32> -> vector<8x64xf32>
    %76 = arith.truncf %72 : vector<8x64xf32> to vector<8x64xbf16>
    %c128 = arith.constant 128 : index
    %c0_29 = arith.constant 0 : index
    %77 = vector.load %arg4[%c128, %c0_29] : memref<320x128xbf16, #tpu.memory_space<vmem>>, vector<64x64xbf16>
    %cst_30 = arith.constant dense<0.000000e+00> : vector<8x64xf32>
    %78 = tpu.matmul %76, %77, %cst_30 {dimension_numbers = #tpu.dot_dimension_numbers<[1], [0], [0], [1], [0, 0, 1, 1], [], []>} : vector<8x64xbf16>, vector<64x64xbf16>, vector<8x64xf32> -> vector<8x64xf32>
    %79 = arith.addf %75, %78 : vector<8x64xf32>
    %c40 = arith.constant 40 : index
    %c0_31 = arith.constant 0 : index
    %80 = vector.load %arg5[%c40, %c0_31] : memref<96x128xf32, #tpu.memory_space<vmem>>, vector<1x64xf32>
    %81 = vector.broadcast %80 : vector<1x64xf32> to vector<8x64xf32>
    %82 = arith.addf %79, %81 : vector<8x64xf32>
    %cst_32 = arith.constant 0.000000e+00 : f32
    %83 = vector.broadcast %cst_32 : f32 to vector<8x64xf32>
    %84 = arith.maximumf %82, %83 : vector<8x64xf32>
    %85 = arith.truncf %84 : vector<8x64xf32> to vector<8x64xbf16>
    %c192 = arith.constant 192 : index
    %c0_33 = arith.constant 0 : index
    %86 = vector.load %arg4[%c192, %c0_33] : memref<320x128xbf16, #tpu.memory_space<vmem>>, vector<64x80xbf16>
    %cst_34 = arith.constant dense<0.000000e+00> : vector<8x80xf32>
    %87 = tpu.matmul %85, %86, %cst_34 {dimension_numbers = #tpu.dot_dimension_numbers<[1], [0], [0], [1], [0, 0, 1, 1], [], []>} : vector<8x64xbf16>, vector<64x80xbf16>, vector<8x80xf32> -> vector<8x80xf32>
    %c48_35 = arith.constant 48 : index
    %c0_36 = arith.constant 0 : index
    %88 = vector.load %arg5[%c48_35, %c0_36] : memref<96x128xf32, #tpu.memory_space<vmem>>, vector<1x80xf32>
    %89 = vector.broadcast %88 : vector<1x80xf32> to vector<8x80xf32>
    %90 = arith.addf %87, %89 : vector<8x80xf32>
    %91 = vector.extract_strided_slice %90 {offsets = [0, 0], sizes = [8, 16], strides = [1, 1]} : vector<8x80xf32> to vector<8x16xf32>
    %92 = vector.extract_strided_slice %90 {offsets = [0, 16], sizes = [8, 64], strides = [1, 1]} : vector<8x80xf32> to vector<8x64xf32>
    %cst_37 = arith.constant 0.000000e+00 : f32
    %93 = vector.broadcast %cst_37 : f32 to vector<8x64xf32>
    %94 = arith.maximumf %92, %93 : vector<8x64xf32>
    %95 = arith.truncf %94 : vector<8x64xf32> to vector<8x64xbf16>
    %c256 = arith.constant 256 : index
    %c0_38 = arith.constant 0 : index
    %96 = vector.load %arg4[%c256, %c0_38] : memref<320x128xbf16, #tpu.memory_space<vmem>>, vector<64x32xbf16>
    %cst_39 = arith.constant dense<0.000000e+00> : vector<8x32xf32>
    %97 = tpu.matmul %95, %96, %cst_39 {dimension_numbers = #tpu.dot_dimension_numbers<[1], [0], [0], [1], [0, 0, 1, 1], [], []>} : vector<8x64xbf16>, vector<64x32xbf16>, vector<8x32xf32> -> vector<8x32xf32>
    %c56 = arith.constant 56 : index
    %c0_40 = arith.constant 0 : index
    %98 = vector.load %arg5[%c56, %c0_40] : memref<96x128xf32, #tpu.memory_space<vmem>>, vector<1x32xf32>
    %99 = vector.broadcast %98 : vector<1x32xf32> to vector<8x32xf32>
    %100 = arith.addf %97, %99 : vector<8x32xf32>
    %cst_41 = arith.constant 0.000000e+00 : f32
    %101 = vector.broadcast %cst_41 : f32 to vector<8x32xf32>
    %102 = arith.maximumf %100, %101 : vector<8x32xf32>
    %c64_42 = arith.constant 64 : index
    %c0_43 = arith.constant 0 : index
    %103 = vector.load %arg5[%c64_42, %c0_43] : memref<96x128xf32, #tpu.memory_space<vmem>>, vector<1x32xf32>
    %104 = vector.broadcast %103 : vector<1x32xf32> to vector<8x32xf32>
    %105 = arith.mulf %102, %104 : vector<8x32xf32>
    %cst_44 = arith.constant dense<0.000000e+00> : vector<8xf32>
    %106 = vector.multi_reduction <add>, %105, %cst_44 [1] : vector<8x32xf32> to vector<8xf32>
    %107 = vector.shape_cast %106 : vector<8xf32> to vector<8x1xf32>
    %c72 = arith.constant 72 : index
    %c0_45 = arith.constant 0 : index
    %108 = vector.load %arg5[%c72, %c0_45] : memref<96x128xf32, #tpu.memory_space<vmem>>, vector<1x1xf32>
    %109 = vector.broadcast %108 : vector<1x1xf32> to vector<8x1xf32>
    %110 = arith.addf %107, %109 : vector<8x1xf32>
    %c0_46 = arith.constant 0 : index
    %c0_47 = arith.constant 0 : index
    %c0_48 = arith.constant 0 : index
    %111 = vector.load %arg3[%c0_46, %c0_47, %c0_48] : memref<8x8x16xf32, #tpu.memory_space<vmem>>, vector<8x8x16xf32>
    %cst_49 = arith.constant 0.000000e+00 : f32
    %112 = vector.broadcast %cst_49 : f32 to vector<8x8x16xf32>
    %113 = arith.cmpf ogt, %111, %112 : vector<8x8x16xf32>
    %c80 = arith.constant 80 : index
    %c0_50 = arith.constant 0 : index
    %114 = vector.load %arg5[%c80, %c0_50] : memref<96x128xf32, #tpu.memory_space<vmem>>, vector<16x16xf32>
    %115 = tpu.iota {dimensions = array<i32: 1>} : vector<8x16xi32>
    %116 = tpu.iota {dimensions = array<i32: 1>} : vector<8x8xi32>
    %117 = tpu.iota {dimensions = array<i32: 1>} : vector<8x16x1xi32>
    %118 = vector.shape_cast %114 : vector<16x16xf32> to vector<1x16x16xf32>
    %c0_i32 = arith.constant 0 : i32
    %119 = vector.broadcast %c0_i32 : i32 to vector<8x8xi32>
    %cst_51 = arith.constant 0.000000e+00 : f32
    %120 = vector.broadcast %cst_51 : f32 to vector<8x1xf32>
    %121 = vector.extract_strided_slice %113 {offsets = [0, 0, 0], sizes = [8, 1, 16], strides = [1, 1, 1]} : vector<8x8x16xi1> to vector<8x1x16xi1>
    %122 = vector.shape_cast %121 : vector<8x1x16xi1> to vector<8x16xi1>
    %123 = vector.extract_strided_slice %24 {offsets = [0, 0, 0], sizes = [8, 1, 16], strides = [1, 1, 1]} : vector<8x8x16xf32> to vector<8x1x16xf32>
    %124 = vector.shape_cast %123 : vector<8x1x16xf32> to vector<8x16xf32>
    %125 = arith.addf %91, %124 : vector<8x16xf32>
    %cst_52 = arith.constant -1.000000e+09 : f32
    %126 = vector.broadcast %cst_52 : f32 to vector<8x16xf32>
    %127 = arith.select %122, %125, %126 : vector<8x16xi1>, vector<8x16xf32>
    %cst_53 = arith.constant dense<0xFF800000> : vector<8xf32>
    %128 = vector.multi_reduction <maximumf>, %127, %cst_53 [1] : vector<8x16xf32> to vector<8xf32>
    %129 = vector.shape_cast %128 : vector<8xf32> to vector<8x1xf32>
    %130 = vector.broadcast %129 : vector<8x1xf32> to vector<8x16xf32>
    %131 = arith.cmpf oge, %127, %130 : vector<8x16xf32>
    %c16_i32 = arith.constant 16 : i32
    %132 = vector.broadcast %c16_i32 : i32 to vector<8x16xi32>
    %133 = arith.select %131, %115, %132 : vector<8x16xi1>, vector<8x16xi32>
    %cst_54 = arith.constant dense<2147483647> : vector<8xi32>
    %134 = vector.multi_reduction <minsi>, %133, %cst_54 [1] : vector<8x16xi32> to vector<8xi32>
    %135 = vector.shape_cast %134 : vector<8xi32> to vector<8x1xi32>
    %c0_i32_55 = arith.constant 0 : i32
    %136 = vector.broadcast %c0_i32_55 : i32 to vector<8x8xi32>
    %137 = arith.cmpi eq, %116, %136 : vector<8x8xi32>
    %138 = vector.shape_cast %135 : vector<8x1xi32> to vector<8x1xi32>
    %139 = vector.broadcast %138 : vector<8x1xi32> to vector<8x8xi32>
    %140 = arith.select %137, %139, %119 : vector<8x8xi1>, vector<8x8xi32>
    %141 = vector.broadcast %129 : vector<8x1xf32> to vector<8x16xf32>
    %142 = arith.subf %127, %141 : vector<8x16xf32>
    %143 = math.exp %142 : vector<8x16xf32>
    %cst_56 = arith.constant dense<0.000000e+00> : vector<8xf32>
    %144 = vector.multi_reduction <add>, %143, %cst_56 [1] : vector<8x16xf32> to vector<8xf32>
    %145 = vector.shape_cast %144 : vector<8xf32> to vector<8x1xf32>
    %146 = math.log %145 : vector<8x1xf32>
    %147 = arith.subf %120, %146 : vector<8x1xf32>
    %148 = vector.shape_cast %135 : vector<8x1xi32> to vector<8x1x1xi32>
    %149 = vector.broadcast %148 : vector<8x1x1xi32> to vector<8x16x1xi32>
    %150 = arith.cmpi eq, %117, %149 : vector<8x16x1xi32>
    %151 = arith.extui %150 : vector<8x16x1xi1> to vector<8x16x1xi32>
    %152 = arith.sitofp %151 : vector<8x16x1xi32> to vector<8x16x1xf32>
    %153 = vector.broadcast %152 : vector<8x16x1xf32> to vector<8x16x16xf32>
    %154 = vector.broadcast %118 : vector<1x16x16xf32> to vector<8x16x16xf32>
    %155 = arith.mulf %153, %154 : vector<8x16x16xf32>
    %cst_57 = arith.constant dense<0.000000e+00> : vector<8x16xf32>
    %156 = vector.multi_reduction <add>, %155, %cst_57 [1] : vector<8x16x16xf32> to vector<8x16xf32>
    %157 = arith.addf %91, %156 : vector<8x16xf32>
    %158 = vector.extract_strided_slice %113 {offsets = [0, 1, 0], sizes = [8, 1, 16], strides = [1, 1, 1]} : vector<8x8x16xi1> to vector<8x1x16xi1>
    %159 = vector.shape_cast %158 : vector<8x1x16xi1> to vector<8x16xi1>
    %160 = vector.extract_strided_slice %24 {offsets = [0, 1, 0], sizes = [8, 1, 16], strides = [1, 1, 1]} : vector<8x8x16xf32> to vector<8x1x16xf32>
    %161 = vector.shape_cast %160 : vector<8x1x16xf32> to vector<8x16xf32>
    %162 = arith.addf %157, %161 : vector<8x16xf32>
    %cst_58 = arith.constant -1.000000e+09 : f32
    %163 = vector.broadcast %cst_58 : f32 to vector<8x16xf32>
    %164 = arith.select %159, %162, %163 : vector<8x16xi1>, vector<8x16xf32>
    %cst_59 = arith.constant dense<0xFF800000> : vector<8xf32>
    %165 = vector.multi_reduction <maximumf>, %164, %cst_59 [1] : vector<8x16xf32> to vector<8xf32>
    %166 = vector.shape_cast %165 : vector<8xf32> to vector<8x1xf32>
    %167 = vector.broadcast %166 : vector<8x1xf32> to vector<8x16xf32>
    %168 = arith.cmpf oge, %164, %167 : vector<8x16xf32>
    %c16_i32_60 = arith.constant 16 : i32
    %169 = vector.broadcast %c16_i32_60 : i32 to vector<8x16xi32>
    %170 = arith.select %168, %115, %169 : vector<8x16xi1>, vector<8x16xi32>
    %cst_61 = arith.constant dense<2147483647> : vector<8xi32>
    %171 = vector.multi_reduction <minsi>, %170, %cst_61 [1] : vector<8x16xi32> to vector<8xi32>
    %172 = vector.shape_cast %171 : vector<8xi32> to vector<8x1xi32>
    %c1_i32 = arith.constant 1 : i32
    %173 = vector.broadcast %c1_i32 : i32 to vector<8x8xi32>
    %174 = arith.cmpi eq, %116, %173 : vector<8x8xi32>
    %175 = vector.shape_cast %172 : vector<8x1xi32> to vector<8x1xi32>
    %176 = vector.broadcast %175 : vector<8x1xi32> to vector<8x8xi32>
    %177 = arith.select %174, %176, %140 : vector<8x8xi1>, vector<8x8xi32>
    %178 = vector.broadcast %166 : vector<8x1xf32> to vector<8x16xf32>
    %179 = arith.subf %164, %178 : vector<8x16xf32>
    %180 = math.exp %179 : vector<8x16xf32>
    %cst_62 = arith.constant dense<0.000000e+00> : vector<8xf32>
    %181 = vector.multi_reduction <add>, %180, %cst_62 [1] : vector<8x16xf32> to vector<8xf32>
    %182 = vector.shape_cast %181 : vector<8xf32> to vector<8x1xf32>
    %183 = math.log %182 : vector<8x1xf32>
    %184 = arith.subf %147, %183 : vector<8x1xf32>
    %185 = vector.shape_cast %172 : vector<8x1xi32> to vector<8x1x1xi32>
    %186 = vector.broadcast %185 : vector<8x1x1xi32> to vector<8x16x1xi32>
    %187 = arith.cmpi eq, %117, %186 : vector<8x16x1xi32>
    %188 = arith.extui %187 : vector<8x16x1xi1> to vector<8x16x1xi32>
    %189 = arith.sitofp %188 : vector<8x16x1xi32> to vector<8x16x1xf32>
    %190 = vector.broadcast %189 : vector<8x16x1xf32> to vector<8x16x16xf32>
    %191 = vector.broadcast %118 : vector<1x16x16xf32> to vector<8x16x16xf32>
    %192 = arith.mulf %190, %191 : vector<8x16x16xf32>
    %cst_63 = arith.constant dense<0.000000e+00> : vector<8x16xf32>
    %193 = vector.multi_reduction <add>, %192, %cst_63 [1] : vector<8x16x16xf32> to vector<8x16xf32>
    %194 = arith.addf %157, %193 : vector<8x16xf32>
    %195 = vector.extract_strided_slice %113 {offsets = [0, 2, 0], sizes = [8, 1, 16], strides = [1, 1, 1]} : vector<8x8x16xi1> to vector<8x1x16xi1>
    %196 = vector.shape_cast %195 : vector<8x1x16xi1> to vector<8x16xi1>
    %197 = vector.extract_strided_slice %24 {offsets = [0, 2, 0], sizes = [8, 1, 16], strides = [1, 1, 1]} : vector<8x8x16xf32> to vector<8x1x16xf32>
    %198 = vector.shape_cast %197 : vector<8x1x16xf32> to vector<8x16xf32>
    %199 = arith.addf %194, %198 : vector<8x16xf32>
    %cst_64 = arith.constant -1.000000e+09 : f32
    %200 = vector.broadcast %cst_64 : f32 to vector<8x16xf32>
    %201 = arith.select %196, %199, %200 : vector<8x16xi1>, vector<8x16xf32>
    %cst_65 = arith.constant dense<0xFF800000> : vector<8xf32>
    %202 = vector.multi_reduction <maximumf>, %201, %cst_65 [1] : vector<8x16xf32> to vector<8xf32>
    %203 = vector.shape_cast %202 : vector<8xf32> to vector<8x1xf32>
    %204 = vector.broadcast %203 : vector<8x1xf32> to vector<8x16xf32>
    %205 = arith.cmpf oge, %201, %204 : vector<8x16xf32>
    %c16_i32_66 = arith.constant 16 : i32
    %206 = vector.broadcast %c16_i32_66 : i32 to vector<8x16xi32>
    %207 = arith.select %205, %115, %206 : vector<8x16xi1>, vector<8x16xi32>
    %cst_67 = arith.constant dense<2147483647> : vector<8xi32>
    %208 = vector.multi_reduction <minsi>, %207, %cst_67 [1] : vector<8x16xi32> to vector<8xi32>
    %209 = vector.shape_cast %208 : vector<8xi32> to vector<8x1xi32>
    %c2_i32 = arith.constant 2 : i32
    %210 = vector.broadcast %c2_i32 : i32 to vector<8x8xi32>
    %211 = arith.cmpi eq, %116, %210 : vector<8x8xi32>
    %212 = vector.shape_cast %209 : vector<8x1xi32> to vector<8x1xi32>
    %213 = vector.broadcast %212 : vector<8x1xi32> to vector<8x8xi32>
    %214 = arith.select %211, %213, %177 : vector<8x8xi1>, vector<8x8xi32>
    %215 = vector.broadcast %203 : vector<8x1xf32> to vector<8x16xf32>
    %216 = arith.subf %201, %215 : vector<8x16xf32>
    %217 = math.exp %216 : vector<8x16xf32>
    %cst_68 = arith.constant dense<0.000000e+00> : vector<8xf32>
    %218 = vector.multi_reduction <add>, %217, %cst_68 [1] : vector<8x16xf32> to vector<8xf32>
    %219 = vector.shape_cast %218 : vector<8xf32> to vector<8x1xf32>
    %220 = math.log %219 : vector<8x1xf32>
    %221 = arith.subf %184, %220 : vector<8x1xf32>
    %222 = vector.shape_cast %209 : vector<8x1xi32> to vector<8x1x1xi32>
    %223 = vector.broadcast %222 : vector<8x1x1xi32> to vector<8x16x1xi32>
    %224 = arith.cmpi eq, %117, %223 : vector<8x16x1xi32>
    %225 = arith.extui %224 : vector<8x16x1xi1> to vector<8x16x1xi32>
    %226 = arith.sitofp %225 : vector<8x16x1xi32> to vector<8x16x1xf32>
    %227 = vector.broadcast %226 : vector<8x16x1xf32> to vector<8x16x16xf32>
    %228 = vector.broadcast %118 : vector<1x16x16xf32> to vector<8x16x16xf32>
    %229 = arith.mulf %227, %228 : vector<8x16x16xf32>
    %cst_69 = arith.constant dense<0.000000e+00> : vector<8x16xf32>
    %230 = vector.multi_reduction <add>, %229, %cst_69 [1] : vector<8x16x16xf32> to vector<8x16xf32>
    %231 = arith.addf %194, %230 : vector<8x16xf32>
    %232 = vector.extract_strided_slice %113 {offsets = [0, 3, 0], sizes = [8, 1, 16], strides = [1, 1, 1]} : vector<8x8x16xi1> to vector<8x1x16xi1>
    %233 = vector.shape_cast %232 : vector<8x1x16xi1> to vector<8x16xi1>
    %234 = vector.extract_strided_slice %24 {offsets = [0, 3, 0], sizes = [8, 1, 16], strides = [1, 1, 1]} : vector<8x8x16xf32> to vector<8x1x16xf32>
    %235 = vector.shape_cast %234 : vector<8x1x16xf32> to vector<8x16xf32>
    %236 = arith.addf %231, %235 : vector<8x16xf32>
    %cst_70 = arith.constant -1.000000e+09 : f32
    %237 = vector.broadcast %cst_70 : f32 to vector<8x16xf32>
    %238 = arith.select %233, %236, %237 : vector<8x16xi1>, vector<8x16xf32>
    %cst_71 = arith.constant dense<0xFF800000> : vector<8xf32>
    %239 = vector.multi_reduction <maximumf>, %238, %cst_71 [1] : vector<8x16xf32> to vector<8xf32>
    %240 = vector.shape_cast %239 : vector<8xf32> to vector<8x1xf32>
    %241 = vector.broadcast %240 : vector<8x1xf32> to vector<8x16xf32>
    %242 = arith.cmpf oge, %238, %241 : vector<8x16xf32>
    %c16_i32_72 = arith.constant 16 : i32
    %243 = vector.broadcast %c16_i32_72 : i32 to vector<8x16xi32>
    %244 = arith.select %242, %115, %243 : vector<8x16xi1>, vector<8x16xi32>
    %cst_73 = arith.constant dense<2147483647> : vector<8xi32>
    %245 = vector.multi_reduction <minsi>, %244, %cst_73 [1] : vector<8x16xi32> to vector<8xi32>
    %246 = vector.shape_cast %245 : vector<8xi32> to vector<8x1xi32>
    %c3_i32 = arith.constant 3 : i32
    %247 = vector.broadcast %c3_i32 : i32 to vector<8x8xi32>
    %248 = arith.cmpi eq, %116, %247 : vector<8x8xi32>
    %249 = vector.shape_cast %246 : vector<8x1xi32> to vector<8x1xi32>
    %250 = vector.broadcast %249 : vector<8x1xi32> to vector<8x8xi32>
    %251 = arith.select %248, %250, %214 : vector<8x8xi1>, vector<8x8xi32>
    %252 = vector.broadcast %240 : vector<8x1xf32> to vector<8x16xf32>
    %253 = arith.subf %238, %252 : vector<8x16xf32>
    %254 = math.exp %253 : vector<8x16xf32>
    %cst_74 = arith.constant dense<0.000000e+00> : vector<8xf32>
    %255 = vector.multi_reduction <add>, %254, %cst_74 [1] : vector<8x16xf32> to vector<8xf32>
    %256 = vector.shape_cast %255 : vector<8xf32> to vector<8x1xf32>
    %257 = math.log %256 : vector<8x1xf32>
    %258 = arith.subf %221, %257 : vector<8x1xf32>
    %259 = vector.shape_cast %246 : vector<8x1xi32> to vector<8x1x1xi32>
    %260 = vector.broadcast %259 : vector<8x1x1xi32> to vector<8x16x1xi32>
    %261 = arith.cmpi eq, %117, %260 : vector<8x16x1xi32>
    %262 = arith.extui %261 : vector<8x16x1xi1> to vector<8x16x1xi32>
    %263 = arith.sitofp %262 : vector<8x16x1xi32> to vector<8x16x1xf32>
    %264 = vector.broadcast %263 : vector<8x16x1xf32> to vector<8x16x16xf32>
    %265 = vector.broadcast %118 : vector<1x16x16xf32> to vector<8x16x16xf32>
    %266 = arith.mulf %264, %265 : vector<8x16x16xf32>
    %cst_75 = arith.constant dense<0.000000e+00> : vector<8x16xf32>
    %267 = vector.multi_reduction <add>, %266, %cst_75 [1] : vector<8x16x16xf32> to vector<8x16xf32>
    %268 = arith.addf %231, %267 : vector<8x16xf32>
    %269 = vector.extract_strided_slice %113 {offsets = [0, 4, 0], sizes = [8, 1, 16], strides = [1, 1, 1]} : vector<8x8x16xi1> to vector<8x1x16xi1>
    %270 = vector.shape_cast %269 : vector<8x1x16xi1> to vector<8x16xi1>
    %271 = vector.extract_strided_slice %24 {offsets = [0, 4, 0], sizes = [8, 1, 16], strides = [1, 1, 1]} : vector<8x8x16xf32> to vector<8x1x16xf32>
    %272 = vector.shape_cast %271 : vector<8x1x16xf32> to vector<8x16xf32>
    %273 = arith.addf %268, %272 : vector<8x16xf32>
    %cst_76 = arith.constant -1.000000e+09 : f32
    %274 = vector.broadcast %cst_76 : f32 to vector<8x16xf32>
    %275 = arith.select %270, %273, %274 : vector<8x16xi1>, vector<8x16xf32>
    %cst_77 = arith.constant dense<0xFF800000> : vector<8xf32>
    %276 = vector.multi_reduction <maximumf>, %275, %cst_77 [1] : vector<8x16xf32> to vector<8xf32>
    %277 = vector.shape_cast %276 : vector<8xf32> to vector<8x1xf32>
    %278 = vector.broadcast %277 : vector<8x1xf32> to vector<8x16xf32>
    %279 = arith.cmpf oge, %275, %278 : vector<8x16xf32>
    %c16_i32_78 = arith.constant 16 : i32
    %280 = vector.broadcast %c16_i32_78 : i32 to vector<8x16xi32>
    %281 = arith.select %279, %115, %280 : vector<8x16xi1>, vector<8x16xi32>
    %cst_79 = arith.constant dense<2147483647> : vector<8xi32>
    %282 = vector.multi_reduction <minsi>, %281, %cst_79 [1] : vector<8x16xi32> to vector<8xi32>
    %283 = vector.shape_cast %282 : vector<8xi32> to vector<8x1xi32>
    %c4_i32 = arith.constant 4 : i32
    %284 = vector.broadcast %c4_i32 : i32 to vector<8x8xi32>
    %285 = arith.cmpi eq, %116, %284 : vector<8x8xi32>
    %286 = vector.shape_cast %283 : vector<8x1xi32> to vector<8x1xi32>
    %287 = vector.broadcast %286 : vector<8x1xi32> to vector<8x8xi32>
    %288 = arith.select %285, %287, %251 : vector<8x8xi1>, vector<8x8xi32>
    %289 = vector.broadcast %277 : vector<8x1xf32> to vector<8x16xf32>
    %290 = arith.subf %275, %289 : vector<8x16xf32>
    %291 = math.exp %290 : vector<8x16xf32>
    %cst_80 = arith.constant dense<0.000000e+00> : vector<8xf32>
    %292 = vector.multi_reduction <add>, %291, %cst_80 [1] : vector<8x16xf32> to vector<8xf32>
    %293 = vector.shape_cast %292 : vector<8xf32> to vector<8x1xf32>
    %294 = math.log %293 : vector<8x1xf32>
    %295 = arith.subf %258, %294 : vector<8x1xf32>
    %296 = vector.shape_cast %283 : vector<8x1xi32> to vector<8x1x1xi32>
    %297 = vector.broadcast %296 : vector<8x1x1xi32> to vector<8x16x1xi32>
    %298 = arith.cmpi eq, %117, %297 : vector<8x16x1xi32>
    %299 = arith.extui %298 : vector<8x16x1xi1> to vector<8x16x1xi32>
    %300 = arith.sitofp %299 : vector<8x16x1xi32> to vector<8x16x1xf32>
    %301 = vector.broadcast %300 : vector<8x16x1xf32> to vector<8x16x16xf32>
    %302 = vector.broadcast %118 : vector<1x16x16xf32> to vector<8x16x16xf32>
    %303 = arith.mulf %301, %302 : vector<8x16x16xf32>
    %cst_81 = arith.constant dense<0.000000e+00> : vector<8x16xf32>
    %304 = vector.multi_reduction <add>, %303, %cst_81 [1] : vector<8x16x16xf32> to vector<8x16xf32>
    %305 = arith.addf %268, %304 : vector<8x16xf32>
    %306 = vector.extract_strided_slice %113 {offsets = [0, 5, 0], sizes = [8, 1, 16], strides = [1, 1, 1]} : vector<8x8x16xi1> to vector<8x1x16xi1>
    %307 = vector.shape_cast %306 : vector<8x1x16xi1> to vector<8x16xi1>
    %308 = vector.extract_strided_slice %24 {offsets = [0, 5, 0], sizes = [8, 1, 16], strides = [1, 1, 1]} : vector<8x8x16xf32> to vector<8x1x16xf32>
    %309 = vector.shape_cast %308 : vector<8x1x16xf32> to vector<8x16xf32>
    %310 = arith.addf %305, %309 : vector<8x16xf32>
    %cst_82 = arith.constant -1.000000e+09 : f32
    %311 = vector.broadcast %cst_82 : f32 to vector<8x16xf32>
    %312 = arith.select %307, %310, %311 : vector<8x16xi1>, vector<8x16xf32>
    %cst_83 = arith.constant dense<0xFF800000> : vector<8xf32>
    %313 = vector.multi_reduction <maximumf>, %312, %cst_83 [1] : vector<8x16xf32> to vector<8xf32>
    %314 = vector.shape_cast %313 : vector<8xf32> to vector<8x1xf32>
    %315 = vector.broadcast %314 : vector<8x1xf32> to vector<8x16xf32>
    %316 = arith.cmpf oge, %312, %315 : vector<8x16xf32>
    %c16_i32_84 = arith.constant 16 : i32
    %317 = vector.broadcast %c16_i32_84 : i32 to vector<8x16xi32>
    %318 = arith.select %316, %115, %317 : vector<8x16xi1>, vector<8x16xi32>
    %cst_85 = arith.constant dense<2147483647> : vector<8xi32>
    %319 = vector.multi_reduction <minsi>, %318, %cst_85 [1] : vector<8x16xi32> to vector<8xi32>
    %320 = vector.shape_cast %319 : vector<8xi32> to vector<8x1xi32>
    %c5_i32 = arith.constant 5 : i32
    %321 = vector.broadcast %c5_i32 : i32 to vector<8x8xi32>
    %322 = arith.cmpi eq, %116, %321 : vector<8x8xi32>
    %323 = vector.shape_cast %320 : vector<8x1xi32> to vector<8x1xi32>
    %324 = vector.broadcast %323 : vector<8x1xi32> to vector<8x8xi32>
    %325 = arith.select %322, %324, %288 : vector<8x8xi1>, vector<8x8xi32>
    %326 = vector.broadcast %314 : vector<8x1xf32> to vector<8x16xf32>
    %327 = arith.subf %312, %326 : vector<8x16xf32>
    %328 = math.exp %327 : vector<8x16xf32>
    %cst_86 = arith.constant dense<0.000000e+00> : vector<8xf32>
    %329 = vector.multi_reduction <add>, %328, %cst_86 [1] : vector<8x16xf32> to vector<8xf32>
    %330 = vector.shape_cast %329 : vector<8xf32> to vector<8x1xf32>
    %331 = math.log %330 : vector<8x1xf32>
    %332 = arith.subf %295, %331 : vector<8x1xf32>
    %333 = vector.shape_cast %320 : vector<8x1xi32> to vector<8x1x1xi32>
    %334 = vector.broadcast %333 : vector<8x1x1xi32> to vector<8x16x1xi32>
    %335 = arith.cmpi eq, %117, %334 : vector<8x16x1xi32>
    %336 = arith.extui %335 : vector<8x16x1xi1> to vector<8x16x1xi32>
    %337 = arith.sitofp %336 : vector<8x16x1xi32> to vector<8x16x1xf32>
    %338 = vector.broadcast %337 : vector<8x16x1xf32> to vector<8x16x16xf32>
    %339 = vector.broadcast %118 : vector<1x16x16xf32> to vector<8x16x16xf32>
    %340 = arith.mulf %338, %339 : vector<8x16x16xf32>
    %cst_87 = arith.constant dense<0.000000e+00> : vector<8x16xf32>
    %341 = vector.multi_reduction <add>, %340, %cst_87 [1] : vector<8x16x16xf32> to vector<8x16xf32>
    %342 = arith.addf %305, %341 : vector<8x16xf32>
    %343 = vector.extract_strided_slice %113 {offsets = [0, 6, 0], sizes = [8, 1, 16], strides = [1, 1, 1]} : vector<8x8x16xi1> to vector<8x1x16xi1>
    %344 = vector.shape_cast %343 : vector<8x1x16xi1> to vector<8x16xi1>
    %345 = vector.extract_strided_slice %24 {offsets = [0, 6, 0], sizes = [8, 1, 16], strides = [1, 1, 1]} : vector<8x8x16xf32> to vector<8x1x16xf32>
    %346 = vector.shape_cast %345 : vector<8x1x16xf32> to vector<8x16xf32>
    %347 = arith.addf %342, %346 : vector<8x16xf32>
    %cst_88 = arith.constant -1.000000e+09 : f32
    %348 = vector.broadcast %cst_88 : f32 to vector<8x16xf32>
    %349 = arith.select %344, %347, %348 : vector<8x16xi1>, vector<8x16xf32>
    %cst_89 = arith.constant dense<0xFF800000> : vector<8xf32>
    %350 = vector.multi_reduction <maximumf>, %349, %cst_89 [1] : vector<8x16xf32> to vector<8xf32>
    %351 = vector.shape_cast %350 : vector<8xf32> to vector<8x1xf32>
    %352 = vector.broadcast %351 : vector<8x1xf32> to vector<8x16xf32>
    %353 = arith.cmpf oge, %349, %352 : vector<8x16xf32>
    %c16_i32_90 = arith.constant 16 : i32
    %354 = vector.broadcast %c16_i32_90 : i32 to vector<8x16xi32>
    %355 = arith.select %353, %115, %354 : vector<8x16xi1>, vector<8x16xi32>
    %cst_91 = arith.constant dense<2147483647> : vector<8xi32>
    %356 = vector.multi_reduction <minsi>, %355, %cst_91 [1] : vector<8x16xi32> to vector<8xi32>
    %357 = vector.shape_cast %356 : vector<8xi32> to vector<8x1xi32>
    %c6_i32 = arith.constant 6 : i32
    %358 = vector.broadcast %c6_i32 : i32 to vector<8x8xi32>
    %359 = arith.cmpi eq, %116, %358 : vector<8x8xi32>
    %360 = vector.shape_cast %357 : vector<8x1xi32> to vector<8x1xi32>
    %361 = vector.broadcast %360 : vector<8x1xi32> to vector<8x8xi32>
    %362 = arith.select %359, %361, %325 : vector<8x8xi1>, vector<8x8xi32>
    %363 = vector.broadcast %351 : vector<8x1xf32> to vector<8x16xf32>
    %364 = arith.subf %349, %363 : vector<8x16xf32>
    %365 = math.exp %364 : vector<8x16xf32>
    %cst_92 = arith.constant dense<0.000000e+00> : vector<8xf32>
    %366 = vector.multi_reduction <add>, %365, %cst_92 [1] : vector<8x16xf32> to vector<8xf32>
    %367 = vector.shape_cast %366 : vector<8xf32> to vector<8x1xf32>
    %368 = math.log %367 : vector<8x1xf32>
    %369 = arith.subf %332, %368 : vector<8x1xf32>
    %370 = vector.shape_cast %357 : vector<8x1xi32> to vector<8x1x1xi32>
    %371 = vector.broadcast %370 : vector<8x1x1xi32> to vector<8x16x1xi32>
    %372 = arith.cmpi eq, %117, %371 : vector<8x16x1xi32>
    %373 = arith.extui %372 : vector<8x16x1xi1> to vector<8x16x1xi32>
    %374 = arith.sitofp %373 : vector<8x16x1xi32> to vector<8x16x1xf32>
    %375 = vector.broadcast %374 : vector<8x16x1xf32> to vector<8x16x16xf32>
    %376 = vector.broadcast %118 : vector<1x16x16xf32> to vector<8x16x16xf32>
    %377 = arith.mulf %375, %376 : vector<8x16x16xf32>
    %cst_93 = arith.constant dense<0.000000e+00> : vector<8x16xf32>
    %378 = vector.multi_reduction <add>, %377, %cst_93 [1] : vector<8x16x16xf32> to vector<8x16xf32>
    %379 = arith.addf %342, %378 : vector<8x16xf32>
    %380 = vector.extract_strided_slice %113 {offsets = [0, 7, 0], sizes = [8, 1, 16], strides = [1, 1, 1]} : vector<8x8x16xi1> to vector<8x1x16xi1>
    %381 = vector.shape_cast %380 : vector<8x1x16xi1> to vector<8x16xi1>
    %382 = vector.extract_strided_slice %24 {offsets = [0, 7, 0], sizes = [8, 1, 16], strides = [1, 1, 1]} : vector<8x8x16xf32> to vector<8x1x16xf32>
    %383 = vector.shape_cast %382 : vector<8x1x16xf32> to vector<8x16xf32>
    %384 = arith.addf %379, %383 : vector<8x16xf32>
    %cst_94 = arith.constant -1.000000e+09 : f32
    %385 = vector.broadcast %cst_94 : f32 to vector<8x16xf32>
    %386 = arith.select %381, %384, %385 : vector<8x16xi1>, vector<8x16xf32>
    %cst_95 = arith.constant dense<0xFF800000> : vector<8xf32>
    %387 = vector.multi_reduction <maximumf>, %386, %cst_95 [1] : vector<8x16xf32> to vector<8xf32>
    %388 = vector.shape_cast %387 : vector<8xf32> to vector<8x1xf32>
    %389 = vector.broadcast %388 : vector<8x1xf32> to vector<8x16xf32>
    %390 = arith.cmpf oge, %386, %389 : vector<8x16xf32>
    %c16_i32_96 = arith.constant 16 : i32
    %391 = vector.broadcast %c16_i32_96 : i32 to vector<8x16xi32>
    %392 = arith.select %390, %115, %391 : vector<8x16xi1>, vector<8x16xi32>
    %cst_97 = arith.constant dense<2147483647> : vector<8xi32>
    %393 = vector.multi_reduction <minsi>, %392, %cst_97 [1] : vector<8x16xi32> to vector<8xi32>
    %394 = vector.shape_cast %393 : vector<8xi32> to vector<8x1xi32>
    %c7_i32 = arith.constant 7 : i32
    %395 = vector.broadcast %c7_i32 : i32 to vector<8x8xi32>
    %396 = arith.cmpi eq, %116, %395 : vector<8x8xi32>
    %397 = vector.shape_cast %394 : vector<8x1xi32> to vector<8x1xi32>
    %398 = vector.broadcast %397 : vector<8x1xi32> to vector<8x8xi32>
    %399 = arith.select %396, %398, %362 : vector<8x8xi1>, vector<8x8xi32>
    %400 = vector.broadcast %388 : vector<8x1xf32> to vector<8x16xf32>
    %401 = arith.subf %386, %400 : vector<8x16xf32>
    %402 = math.exp %401 : vector<8x16xf32>
    %cst_98 = arith.constant dense<0.000000e+00> : vector<8xf32>
    %403 = vector.multi_reduction <add>, %402, %cst_98 [1] : vector<8x16xf32> to vector<8xf32>
    %404 = vector.shape_cast %403 : vector<8xf32> to vector<8x1xf32>
    %405 = math.log %404 : vector<8x1xf32>
    %406 = arith.subf %369, %405 : vector<8x1xf32>
    %c0_99 = arith.constant 0 : index
    %c0_100 = arith.constant 0 : index
    %407 = vector.load %arg6[%c0_99, %c0_100] : memref<8x8xi32, #tpu.memory_space<vmem>>, vector<8x8xi32>
    tpu.vector_store %arg6[%c0_99, %c0_100], %399 {strides = array<i32>} : memref<8x8xi32, #tpu.memory_space<vmem>>, vector<8x8xi32>,
    %408 = tpu.concatenate %406, %110 in 1 : vector<8x1xf32>, vector<8x1xf32> -> vector<8x2xf32>
    %c0_101 = arith.constant 0 : index
    %c0_102 = arith.constant 0 : index
    %409 = vector.load %arg7[%c0_101, %c0_102] : memref<8x2xf32, #tpu.memory_space<vmem>>, vector<8x2xf32>
    tpu.vector_store %arg7[%c0_101, %c0_102], %408 {strides = array<i32>} : memref<8x2xf32, #tpu.memory_space<vmem>>, vector<8x2xf32>,
    return
  }
  func.func @transform_0(%arg0: i32) -> (i32, i32, i32) {
    %c0_i32 = arith.constant 0 : i32
    %c0_i32_0 = arith.constant 0 : i32
    %c0_i32_1 = arith.constant 0 : i32
    return %arg0, %c0_i32, %c0_i32_0 : i32, i32, i32
  }
  func.func @transform_1(%arg0: i32) -> (i32, i32, i32) {
    %c0_i32 = arith.constant 0 : i32
    %c0_i32_0 = arith.constant 0 : i32
    %c0_i32_1 = arith.constant 0 : i32
    return %arg0, %c0_i32, %c0_i32_0 : i32, i32, i32
  }
  func.func @transform_2(%arg0: i32) -> (i32, i32, i32) {
    %c0_i32 = arith.constant 0 : i32
    %c0_i32_0 = arith.constant 0 : i32
    %c0_i32_1 = arith.constant 0 : i32
    return %arg0, %c0_i32, %c0_i32_0 : i32, i32, i32
  }
  func.func @transform_3(%arg0: i32) -> (i32, i32) {
    %c0_i32 = arith.constant 0 : i32
    %c0_i32_0 = arith.constant 0 : i32
    %c0_i32_1 = arith.constant 0 : i32
    return %c0_i32, %c0_i32_0 : i32, i32
  }
  func.func @transform_4(%arg0: i32) -> (i32, i32) {
    %c0_i32 = arith.constant 0 : i32
    %c0_i32_0 = arith.constant 0 : i32
    %c0_i32_1 = arith.constant 0 : i32
    return %c0_i32, %c0_i32_0 : i32, i32
  }
  func.func @transform_5(%arg0: i32) -> (i32, i32) {
    %c0_i32 = arith.constant 0 : i32
    %c0_i32_0 = arith.constant 0 : i32
    return %arg0, %c0_i32 : i32, i32
  }
  func.func @transform_6(%arg0: i32) -> (i32, i32) {
    %c0_i32 = arith.constant 0 : i32
    %c0_i32_0 = arith.constant 0 : i32
    return %arg0, %c0_i32 : i32, i32
  }
}

</mosaic_0001>

<bundles_post_ra>
// kernel: arch_model_forward.1
= control target key start
LH: loop header
LB: loop body
LE: loop exit
PB: predicated region body
PF: predicated region fallthrough
CT: control target
= control target key end

     0   :  { %12 = vsyncpa [#allocation3], 0  ;;  %s7485_s0 = inlined_call_operand.vmem [shape: f32[16,8,16], index: 0, kind: input, shape index: {}]   ;;  %s7486_s1 = inlined_call_operand.vmem [shape: f32[16,4,64], index: 1, kind: input, shape index: {}]   ;;  %s7487_s2 = inlined_call_operand.hbm [shape: f32[16,8,16], index: 2, kind: input, shape index: {}]   ;;  %s7488_s3 = inlined_call_operand.vmem [shape: bf16[320,128], index: 3, kind: input, shape index: {}]   ;;  %s7489_s4 = inlined_call_operand.hbm [shape: f32[96,128], index: 4, kind: input, shape index: {}]   ;;  %s7490_s5 = inlined_call_operand.vmem [shape: s32[16,8], index: 5, kind: output, shape index: {0}]   ;;  %s7491_s6 = inlined_call_operand.vmem [shape: f32[16,2], index: 6, kind: output, shape index: {1}]  }
   0x1   :  { %14 = vsyncpa [#allocation3 + $0x1], 0 }
   0x2   :  { %15 = vsyncpa [#allocation5], 0  ;;  %s5274_s21 = smov 0   ;;  %s5276_s22 = smov 0  }
   0x3   :  { %s5278_s23 = smov 0   ;;  %s5280_s24 = smov 0  }
   0x4 LB: > { %s5293_s25 = sadd.s32 4294967295, %s5224_s24   ;;  %p93_p0 = scmp.ne.s32.totalorder %s5216_s22, %s5212_s21  ;;  %s5224_s24 = sphi %s5280_s24, %s7954_s24   ;;  %s5220_s23 = sphi %s5278_s23, %s7953_s23   ;;  %s5216_s22 = sphi %s5276_s22, %s7952_s22   ;;  %s5212_s21 = sphi %s5274_s21, %s7951_s21  }
   0x5   : > { %p7492_p1 = scmp.eq.s32.totalorder %s5293_s25, 0  ;;  %p4599_p2 = scmp.ge.s32.totalorder %s5224_s24, 1 }
   0x6   : > { %p198_p3 = scmp.lt.s32.totalorder %s5224_s24, 3  ;;  %s5226_s28 = smov [#allocation4]  }
   0x7   : > { %p5301_p4 = por %p7492_p1, %p93_p0  ;;  %s213_s29 = sshll.u32 %s5226_s28, 4  ;;  %s214_s29 = int_to_ptr.vmem [resolvable:$true] %s213_s29 }
   0x8   : > { %p5305_p5 = pnand %p4599_p2, %p198_p3  ;;  %s5318_s7 = sadd.s32 1, %s5224_s24  }
   0x9   : > { %s7531_s26 = scalar_select %p5301_p4, 1, 0 }
   0xa   : > { %s7532_s27 = scalar_select %p5305_p5, 1, 0 }
   0xb   : > { %p4886_p6 = pneg %p5305_p5  ;;  %s80_s8 = sadd.s32 1, %s5220_s23 }
   0xc   : > { %s77_s9 = ssub.s32 %s5224_s24, %s5318_s7  ;;  %s5128_s12 = scalar_lea.hbm %s7489_s4, 1536 }
   0xd   : > { %p5313_p7 = pnand %p4886_p6, %p7492_p1  ;;  %p5129_p8 = scmp.ne.s32.totalorder %s7489_s4, %s5128_s12 }
   0xe   : > { %p5135_p12 = scmp.lt.u32.totalorder %s5128_s12, %s7489_s4 }
   0xf   : > { %p5130_p9 = pneg %p5313_p7 }
  0x11   : > { %p5131_p10 = pnand %p5130_p9, %p5129_p8 }
  0x13   : > { %p5132_p11 = pneg %p5131_p10 }
  0x15   : > { %p5137_p13 = pnand %p5135_p12, %p5132_p11 }
  0x17   : > { %5140 = shalt.err (!%p5137_p13)
}
  0x18   : > { %s5141_s17 = scalar_lea.vmem %s214_s29, 1536  ;;  %p5149_p6 = scmp.lt.s32.totalorder %s214_s29, %s214_s29 }
  0x19   : > { %p5142_p0 = scmp.ne.s32.totalorder %s214_s29, %s5141_s17  ;;  %p5150_p1 = scmp.lt.s32.totalorder %s5141_s17, %s5141_s17 }
  0x1b   : > { %p5144_p2 = pnand %p5142_p0, %p5130_p9  ;;  %p5151_p4 = por %p5150_p1, %p5149_p6 }
  0x1d   : > { %p5145_p3 = pneg %p5144_p2 }
  0x1f   : > { %p5152_p5 = pnand %p5151_p4, %p5145_p3 }
  0x21   : > { %5155 = shalt.err (!%p5152_p5)
}
  0x22   : > { %s5227_s18 = smov 128   ;;  %s5228_s19 = smov 8  }
  0x23   : > { %4889 = dma.hbm_to_vmem [thread:$0]  (!%p5313_p7), %s7489_s4, 1536, %s214_s29, [#allocation5], %s5227_s18, %s5227_s18, %s5228_s19  }
  0x24   : > { %p78_p1 = scmp.eq.s32.totalorder %s77_s9, 0  ;;  %p87_p4 = scmp.ne.s32.totalorder %s5220_s23, %s5216_s22 }
  0x25   : > { %p88_p5 = scmp.eq.s32.totalorder %s5224_s24, 0  ;;  %p4895_p8 = scmp.lt.s32.totalorder %s5224_s24, 2 }
  0x26   : > { %s5347_s28 = scalar_select %p78_p1, %s5220_s23, %s80_s8  }
  0x27   : > { %p89_p9 = por %p88_p5, %p87_p4  ;;  %s245_s10 = sand.u32 1, %s5220_s23  }
  0x28   : > { %s4602_s11 = sshll.u32 %s245_s10, 6  ;;  %s4768_s12 = sshll.u32 %s5224_s24, 10 }
  0x29   : > { %s5354_s30 = scalar_lea.hbm %s7487_s2, %s4768_s12  ;;  %s249_s29 = scalar_lea.vmem [#allocation2], %s4602_s11 }
  0x2a   : > { %s256_s9 = sshll.u32 %s249_s29, 4  ;;  %p5358_p7 = pnand %p4895_p8, %p89_p9  ;;  %s5356_s9 = int_to_ptr.vmem [resolvable:$true] %s256_s9 }
  0x2b   : > { %s5362_s24 = scalar_lea.sflag [#allocation3], %s245_s10  ;;  %s5156_s15 = scalar_lea.hbm %s5354_s30, 1024 }
  0x2c   : > { %p5157_p10 = scmp.ne.s32.totalorder %s5354_s30, %s5156_s15  ;;  %p5158_p11 = pneg %p5358_p7 }
  0x2d   : > { %s5161_s20 = scalar_lea.hbm %s7487_s2, 2048  ;;  %p5162_p0 = scmp.lt.u32.totalorder %s5354_s30, %s7487_s2 }
  0x2e   : > { %p5159_p12 = pnand %p5158_p11, %p5157_p10  ;;  %p5163_p2 = scmp.lt.u32.totalorder %s5161_s20, %s5156_s15 }
  0x2f   : > { %p5165_p6 = scmp.lt.u32.totalorder %s5156_s15, %s5354_s30 }
  0x30   : > { %p5160_p13 = pneg %p5159_p12  ;;  %p5164_p3 = por %p5163_p2, %p5162_p0 }
  0x32   : > { %p5166_p1 = por %p5165_p6, %p5164_p3 }
  0x34   : > { %p5167_p4 = pnand %p5166_p1, %p5160_p13 }
  0x36   : > { %5170 = shalt.err (!%p5167_p4)
}
  0x37   : > { %s5171_s10 = scalar_lea.vmem %s5356_s9, 1024  ;;  %s5229_s12 = smov [#allocation2]  }
  0x38   : > { %p5172_p5 = scmp.ne.s32.totalorder %s5356_s9, %s5171_s10  ;;  %s5176_s13 = sshll.u32 %s5229_s12, 4  ;;  %s5177_s13 = int_to_ptr.vmem [resolvable:$false] %s5176_s13 }
  0x39   : > { %s5178_s14 = scalar_lea.vmem %s5177_s13, 2048  ;;  %p5179_p10 = scmp.lt.s32.totalorder %s5356_s9, %s5177_s13 }
  0x3a   : > { %p5174_p8 = pnand %p5172_p5, %p5158_p11  ;;  %p5180_p12 = scmp.lt.s32.totalorder %s5178_s14, %s5171_s10 }
  0x3c   : > { %p5175_p9 = pneg %p5174_p8  ;;  %p5181_p0 = por %p5180_p12, %p5179_p10 }
  0x3e   : > { %p5182_p2 = pnand %p5181_p0, %p5175_p9 }
  0x40   : > { %5185 = shalt.err (!%p5182_p2)
}
  0x41   : > { %4893 = dma.hbm_to_vmem [thread:$0]  (!%p5358_p7), %s5354_s30, 1024, %s5356_s9, %s5362_s24, %s5227_s18, %s5227_s18, %s5228_s19  }
  0x42   : > { %p7535_p11 = scmp.ne.s32.totalorder %s7532_s27, 0 }
  0x44   : > { %268 = sbr.rel (%p7535_p11) target bundleno = 5107 (0x13f3), region = 40 }
  0x4b   : > { %s270_s29 = sand.u32 1, %s5216_s22   ;;  %p7536_p13 = scmp.ne.s32.totalorder %s7531_s26, 0 }
  0x4c   : > { %s4606_s15 = sshll.u32 %s270_s29, 6  ;;  %s271_s16 = scalar_lea.sflag [#allocation3], %s270_s29 }
  0x4d   : > { %s5396_s17 = scalar_lea.vmem [#allocation2], %s4606_s15 }
  0x4e   : > { %5203 = dma.done.wait (%p7536_p13), %s271_s16, 1024  }
  0x4f   : > { %5205 = vsyncadd (%p7536_p13), %s271_s16, 4294966272  ;;  %p7537_p3 = scmp.eq.s32.totalorder %s5293_s25, 0 }
  0x51   : > { %5207 = dma.done.wait (%p7537_p3), [#allocation5], 1536   ;;  %p7538_p7 = pmov %p7537_p3 }
  0x52   : > { %v5230_v0 = vmov 0   ;;  %v5231_v1 = vmov 1   ;;  %s4608_s27 = sshll.u32 %s5293_s25, 3  ;;  %v646_v2 = vld [vmem:[#allocation4 + $0x10] sm:$0xff]  ;;  %v647_v3 = vld [vmem:[#allocation4 + $0x18] sm:$0xff]  ;;  %v4945_v4 = vld [vmem:[%s7488_s3] sm:$0xff]   ;;  %v7495_v21 = vlaneseq }
  0x53   : > { %5209 = vsyncadd (%p7538_p7), [#allocation5], 4294965760  ;;  %4941 = vset.pattern.permute.xlu0 %v5230_v0  ;;  %4942 = vset.pattern.permute.xlu1 %v5231_v1  ;;  %p321_p6 = scmp.lt.s32.totalorder %s4608_s27, 15  ;;  %vm7514_vm0 = vcmask 130048   ;;  %v5232_v16 = vmov 2   ;;  %v5233_v18 = vmov 3  }
  0x54   : > { %656 = vperm.xlu0 %4941, %v646_v2   ;;  %708 = vperm.xlu1 %4942, %v646_v2   ;;  %v4946_v19 = vld [vmem:[%s7488_s3 + $0x8] sm:$0xff]   ;;  %v4947_v20 = vld [vmem:[%s7488_s3 + $0x10] sm:$0xff]   ;;  %v5428_v22 = vshrl.u32 %v7495_v21, 7  ;;  %vm7498_vm1 = vcmask 523264   ;;  %vm7496_vm2 = vcmask 1043456   ;;  %vm5235_vm3 = vmmov 0  }
  0x55   : > { %s7956_s27 = smov (!%p321_p6, %s4608_s27), 15  ;;  %4802 = vmatprep.subr.bf16.mxu0 %v4945_v4  ;;  %4878 = vmatprep.subr.bf16.mxu1 %v4945_v4  ;;  %vm7497_vm4 = vcmask 261120   ;;  %vm7513_vm5 = vcmask 1041409   ;;  %vm7512_vm6 = vcmask 1042434   ;;  %vm7511_vm7 = vcmask 1043459   ;;  %s5236_s29 = smov 64  }
  0x56   : > { %s4609_s18 = sshll.u32 %s7956_s27, 3  ;;  %4803 = vmatpush3.bf16.msra.mxu0 %v4945_v4  ;;  %4879 = vmatpush3.bf16.msra.mxu1 %v4945_v4  ;;  %s4611_s10 = sshll.u32 %s7956_s27, 2  ;;  %v5434_v23 = vsub.s32 0, %v5428_v22  ;;  %v5439_v25 = vsub.s32 1, %v5428_v22  ;;  %v5442_v26 = vsub.s32 2, %v5428_v22  ;;  %v5445_v27 = vsub.s32 3, %v5428_v22 }
  0x57   : > { %s324_s30 = scalar_lea.vmem %s7485_s0, %s4609_s18  ;;  %4812 = vmatprep.subr.bf16.mxu1 %v4946_v19  ;;  %s330_s14 = scalar_lea.vmem %s7486_s1, %s4611_s10  ;;  %vm7510_vm8 = vcmask 1044484   ;;  %vm7509_vm9 = vcmask 1045509   ;;  %vm7508_vm10 = vcmask 1046534   ;;  %vm7507_vm11 = vcmask 1047559  }
  0x58   : > { %v342_v5 = vld [vmem:[%s324_s30] sm:$0xff]  ;;  %v343_v6 = vld [vmem:[%s324_s30 + $0x8] sm:$0xff]  ;;  %v344_v7 = vld [vmem:[%s324_s30 + $0x10] sm:$0xff]  ;;  %650 = vperm.xlu0 %4941, %v647_v3   ;;  %4943 = vset.pattern.permute.xlu1 %v5232_v16  ;;  %vm983_vm12 = vcmask 64512   ;;  %s5237_s13 = smov 112   ;;  %p333_p1 = scmp.lt.s32.totalorder %s5293_s25, 1 }
  0x59   : > { %v345_v8 = vld [vmem:[%s324_s30 + $0x18] sm:$0xff]  ;;  %v350_v9 = vpack.c.bf16 %v343_v6, %v342_v5  ;;  %v346_v11 = vld [vmem:[%s324_s30 + $0x20] sm:$0xff]  ;;  %v347_v12 = vld [vmem:[%s324_s30 + $0x28] sm:$0xff]  ;;  %760 = vperm.xlu1 %4943, %v646_v2  }
  0x5a   : > { %v351_v10 = vpack.c.bf16 %v345_v8, %v344_v7  ;;  %v348_v13 = vld [vmem:[%s324_s30 + $0x30] sm:$0xff]  ;;  %v352_v14 = vpack.c.bf16 %v347_v12, %v346_v11  ;;  %v349_v15 = vld [vmem:[%s324_s30 + $0x38] sm:$0xff]  ;;  %v5436_v24 = vld [vmem:[%s330_s14 + $0x4] sm:$0xf]  ;;  %s7958_s25 = smov (!%p333_p1, %s5293_s25), 1 }
  0x5b   : > { %v353_v17 = vpack.c.bf16 %v349_v15, %v348_v13  ;;  %4804 = vmatprep.mubr.msk.bf16.mxu0 %vm7514_vm0, %v350_v9  ;;  %v5447_v28 = vld [vmem:[%s330_s14] sm:$0xf]  ;;  %v5449_v29 = vld [vmem:[%s330_s14 + $0xc] sm:$0xf]  ;;  %v666_v30 = vrot.slane %v5436_v24, %v5434_v23  ;;  %v5453_v31 = vld [vmem:[%s330_s14 + $0x8] sm:$0xf]  ;;  %v718_v32 = vrot.slane %v5436_v24, %v5439_v25  ;;  %v770_v33 = vrot.slane %v5436_v24, %v5442_v26 }
  0x5c   : > { %4805 = vmatmul.mubr.msk.bf16.vlgmr.msra.gmra.mrb[0].mxu0 %vm7514_vm0, %v351_v10  ;;  %4808 = vmatprep.mubr.msk.bf16.mxu1 %vm7514_vm0, %v352_v14  ;;  %v662_v34 = vrot.slane %v5447_v28, %v5434_v23  ;;  %v714_v35 = vrot.slane %v5447_v28, %v5439_v25  ;;  %v5463_v36 = vld [vmem:[%s330_s14 + $0x14] sm:$0xf]  ;;  %v822_v37 = vrot.slane %v5436_v24, %v5445_v27  ;;  %v5473_v41 = vld [vmem:[%s330_s14 + $0x10] sm:$0xf]  ;;  %v5483_v46 = vld [vmem:[%s330_s14 + $0x1c] sm:$0xf] }
  0x5d   : > { %4809 = vmatmul.mubr.msk.bf16.vlgmr.msra.gmra.mrb[0].mxu1 %vm7514_vm0, %v353_v17  ;;  %4944 = vset.pattern.permute.xlu0 %v5233_v18  ;;  %v766_v38 = vrot.slane %v5447_v28, %v5442_v26  ;;  %v674_v39 = vrot.slane %v5449_v29, %v5434_v23  ;;  %v726_v40 = vrot.slane %v5449_v29, %v5439_v25  ;;  %v5493_v51 = vld [vmem:[%s330_s14 + $0x18] sm:$0xf]  ;;  %s5238_s14 = smov 1  }
  0x5e   : > { %812 = vperm.xlu0 %4944, %v646_v2   ;;  %4813 = vmatpush3.bf16.msra.mxu1 %v4946_v19  ;;  %v818_v42 = vrot.slane %v5447_v28, %v5445_v27  ;;  %v778_v43 = vrot.slane %v5449_v29, %v5442_v26  ;;  %v830_v44 = vrot.slane %v5449_v29, %v5445_v27 }
  0x5f   : > { %4814 = vmatprep.subr.bf16.mxu1 %v4947_v20  ;;  %v670_v45 = vrot.slane %v5453_v31, %v5434_v23  ;;  %v722_v47 = vrot.slane %v5453_v31, %v5439_v25  ;;  %v774_v48 = vrot.slane %v5453_v31, %v5442_v26  ;;  %v826_v49 = vrot.slane %v5453_v31, %v5445_v27 }
  0x60   : > { %v682_v50 = vrot.slane %v5463_v36, %v5434_v23  ;;  %v734_v52 = vrot.slane %v5463_v36, %v5439_v25  ;;  %v786_v53 = vrot.slane %v5463_v36, %v5442_v26  ;;  %v678_v54 = vrot.slane %v5473_v41, %v5434_v23 }
  0x61   : > { %v730_v55 = vrot.slane %v5473_v41, %v5439_v25  ;;  %v838_v56 = vrot.slane %v5463_v36, %v5445_v27  ;;  %v782_v57 = vrot.slane %v5473_v41, %v5442_v26  ;;  %v834_v58 = vrot.slane %v5473_v41, %v5445_v27 }
  0x62   : > { %4815 = vmatpush3.bf16.msra.mxu1 %v4947_v20  ;;  %v690_v59 = vrot.slane %v5483_v46, %v5434_v23  ;;  %v742_v62 = vrot.slane %v5483_v46, %v5439_v25  ;;  %v794_v63 = vrot.slane %v5483_v46, %v5442_v26  ;;  %v686_v0 = vrot.slane %v5493_v51, %v5434_v23 }
  0x63   : > { %v738_v1 = vrot.slane %v5493_v51, %v5439_v25  ;;  %v846_v4 = vrot.slane %v5483_v46, %v5445_v27  ;;  %v842_v29 = vrot.slane %v5493_v51, %v5445_v27 }
  0xd3   : > { %v5511_v60 = vpop.permute.xlu0 %656  ;;  %v5513_v61 = vpop.permute.xlu1 %708 }
  0xd4   : > { %v692_v2 = vmul.f32 %v666_v30, %v5511_v60  ;;  %v744_v3 = vmul.f32 %v718_v32, %v5513_v61  ;;  %v691_v6 = vmul.f32 %v662_v34, %v5511_v60  ;;  %v743_v7 = vmul.f32 %v714_v35, %v5513_v61 }
  0xd5   : > { %v694_v8 = vmul.f32 %v674_v39, %v5511_v60  ;;  %v746_v9 = vmul.f32 %v726_v40, %v5513_v61  ;;  %v693_v10 = vmul.f32 %v670_v45, %v5511_v60  ;;  %v745_v11 = vmul.f32 %v722_v47, %v5513_v61 }
  0xd6   : > { %v696_v12 = vmul.f32 %v682_v50, %v5511_v60  ;;  %v748_v13 = vmul.f32 %v734_v52, %v5513_v61  ;;  %v695_v15 = vmul.f32 %v678_v54, %v5511_v60  ;;  %v747_v16 = vmul.f32 %v730_v55, %v5513_v61 }
  0xd7   : > { %v651_v14 = vpop.permute.xlu0 %650  ;;  %v698_v17 = vmul.f32 %v690_v59, %v5511_v60  ;;  %v750_v18 = vmul.f32 %v742_v62, %v5513_v61 }
  0xd8   : > { %v761_v19 = vpop.permute.xlu1 %760  ;;  %v700_v20 = vadd.f32 %v692_v2, %v651_v14  ;;  %v699_v30 = vadd.f32 %v691_v6, %v651_v14  ;;  %v702_v31 = vadd.f32 %v694_v8, %v651_v14  ;;  %v701_v32 = vadd.f32 %v693_v10, %v651_v14 }
  0xd9   : > { %v796_v34 = vmul.f32 %v770_v33, %v761_v19  ;;  %v795_v35 = vmul.f32 %v766_v38, %v761_v19  ;;  %v798_v36 = vmul.f32 %v778_v43, %v761_v19  ;;  %v797_v39 = vmul.f32 %v774_v48, %v761_v19 }
  0xda   : > { %v752_v40 = vadd.f32 %v744_v3, %v700_v20  ;;  %v751_v41 = vadd.f32 %v743_v7, %v699_v30  ;;  %v754_v45 = vadd.f32 %v746_v9, %v702_v31  ;;  %v753_v47 = vadd.f32 %v745_v11, %v701_v32 }
  0xdb   : > { %v704_v50 = vadd.f32 %v696_v12, %v651_v14  ;;  %v800_v52 = vmul.f32 %v786_v53, %v761_v19  ;;  %v703_v54 = vadd.f32 %v695_v15, %v651_v14  ;;  %v799_v55 = vmul.f32 %v782_v57, %v761_v19 }
  0xdc   : > { %v804_v62 = vadd.f32 %v796_v34, %v752_v40  ;;  %v803_v21 = vadd.f32 %v795_v35, %v751_v41  ;;  %v806_v5 = vadd.f32 %v798_v36, %v754_v45  ;;  %v805_v2 = vadd.f32 %v797_v39, %v753_v47  ;;  %v912_v40 = vld [vmem:[%s7488_s3 + $0x18] sm:$0xf]  ;;  %v4614_v47 = vld [vmem:[#allocation4] ss:$0 sm:$0xff] }
  0xdd   : > { %v813_v59 = vpop.permute.xlu0 %812  ;;  %v756_v53 = vadd.f32 %v748_v13, %v704_v50  ;;  %v755_v3 = vadd.f32 %v747_v16, %v703_v54  ;;  %v802_v12 = vmul.f32 %v794_v63, %v761_v19  ;;  %v7516_v41 = vmov 0.0  }
  0xde   : > { %v848_v33 = vmul.f32 %v822_v37, %v813_v59  ;;  %v847_v38 = vmul.f32 %v818_v42, %v813_v59  ;;  %v850_v43 = vmul.f32 %v830_v44, %v813_v59  ;;  %v849_v48 = vmul.f32 %v826_v49, %v813_v59  ;;  %4824 = vmatprep.subr.bf16.mxu0 %v7516_v41 }
  0xdf   : > { %v852_v57 = vmul.f32 %v838_v56, %v813_v59  ;;  %v851_v6 = vmul.f32 %v834_v58, %v813_v59  ;;  %v808_v11 = vadd.f32 %v800_v52, %v756_v53  ;;  %v807_v24 = vadd.f32 %v799_v55, %v755_v3  ;;  %4826 = vmatprep.mubr.msk.bf16.mxu0 %vm5235_vm3, %v7516_v41 }
  0xe0   : > { %v856_v7 = vadd.f32 %v848_v33, %v804_v62  ;;  %v855_v8 = vadd.f32 %v847_v38, %v803_v21  ;;  %v858_v9 = vadd.f32 %v850_v43, %v806_v5  ;;  %v857_v10 = vadd.f32 %v849_v48, %v805_v2  ;;  %4830 = vmatprep.subr.bf16.mxu1 %v7516_v41 }
  0xe1   : > { %v706_v37 = vadd.f32 %v698_v17, %v651_v14  ;;  %v697_v42 = vmul.f32 %v686_v0, %v5511_v60  ;;  %v860_v56 = vadd.f32 %v852_v57, %v808_v11  ;;  %v859_v5 = vadd.f32 %v851_v6, %v807_v24 }
  0xe2   : > { %v864_v15 = vmax.f32 %v856_v7, 0.0  ;;  %v863_v28 = vmax.f32 %v855_v8, 0.0  ;;  %v866_v44 = vmax.f32 %v858_v9, 0.0  ;;  %v865_v49 = vmax.f32 %v857_v10, 0.0 }
  0xe3   : > { %v758_v13 = vadd.f32 %v750_v18, %v706_v37  ;;  %v854_v63 = vmul.f32 %v846_v4, %v813_v59  ;;  %v705_v60 = vadd.f32 %v697_v42, %v651_v14  ;;  %v749_v0 = vmul.f32 %v738_v1, %v5513_v61 }
  0xe4   : > { %v874_v58 = vsel %vm7498_vm1, %v864_v15, 0.0  ;;  %v871_v21 = vsel %vm7498_vm1, %v863_v28, 0.0  ;;  %v7539_v17 = vrot.slane %v5493_v51, %v5442_v26  ;;  %v880_v20 = vsel %vm7498_vm1, %v866_v44, 0.0 }
  0xe5   : > { %875 = vadd.xlane.f32.xlu0 %v874_v58  ;;  %872 = vadd.xlane.f32.xlu1 %v871_v21  ;;  %v810_v16 = vadd.f32 %v802_v12, %v758_v13  ;;  %v757_v30 = vadd.f32 %v749_v0, %v705_v60  ;;  %v853_v31 = vmul.f32 %v842_v29, %v813_v59  ;;  %v877_v46 = vsel %vm7498_vm1, %v865_v49, 0.0 }
  0xe6   : > { %v801_v18 = vmul.f32 %v7539_v17, %v761_v19  ;;  %v868_v4 = vmax.f32 %v860_v56, 0.0  ;;  %v867_v32 = vmax.f32 %v859_v5, 0.0  ;;  %v989_v45 = vsel %vm7496_vm2, %v912_v40, 0 }
  0xe7   : > { %v862_v34 = vadd.f32 %v854_v63, %v810_v16  ;;  %4825 = vmatpush3.bf16.msra.mxu0 %v989_v45  ;;  %v7540_v49 = vlaneseq }
  0xe8   : > { %v809_v14 = vadd.f32 %v801_v18, %v757_v30  ;;  %v886_v36 = vsel %vm7498_vm1, %v868_v4, 0.0  ;;  %v883_v61 = vsel %vm7498_vm1, %v867_v32, 0.0  ;;  %4842 = vmatprep.subr.bf16.mxu0 %v7516_v41 }
  0xe9   : > { %881 = vadd.xlane.f32.xlu0 %v880_v20  ;;  %878 = vadd.xlane.f32.xlu1 %v877_v46  ;;  %v870_v1 = vmax.f32 %v862_v34, 0.0  ;;  %v5587_v56 = vand.u32 127, %v7540_v49  ;;  %v4955_v49 = vld [vmem:[%s7488_s3 + $0x58] sm:$0xff]  }
  0xea   : > { %v861_v35 = vadd.f32 %v853_v31, %v809_v14 }
  0xeb   : > { %v892_v19 = vsel %vm7498_vm1, %v870_v1, 0.0  ;;  %v938_v60 = vsub.s32 %v5587_v56, %v5428_v22 }
  0xec   : > { %v869_v51 = vmax.f32 %v861_v35, 0.0 }
  0xed   : > { %887 = vadd.xlane.f32.xlu0 %v886_v36  ;;  %884 = vadd.xlane.f32.xlu1 %v883_v61 }
  0xee   : > { %v889_v39 = vsel %vm7498_vm1, %v869_v51, 0.0 }
  0xf1   : > { %893 = vadd.xlane.f32.xlu0 %v892_v19  ;;  %890 = vadd.xlane.f32.xlu1 %v889_v39 }
 0x12f   : > { %v4806_v50 = vpop.f32.mrb[0].mxu0 }
 0x130   : > { %v423_v52 = vadd.f32 %v4806_v50, %v4614_v47  ;;  %v414_v54 = vpop.f32.mrb[1].mxu0  ;;  %v4810_v55 = vpop.f32.mrb[0].mxu1 }
 0x131   : > { %v415_v59 = vadd.f32 %v4614_v47, %v414_v54  ;;  %v4807_v62 = vpop.f32.mrb[2].mxu0  ;;  %v439_v2 = vadd.f32 %v4810_v55, %v4614_v47  ;;  %v430_v33 = vpop.f32.mrb[1].mxu1 }
 0x132   : > { %v447_v38 = vmax.f32 %v423_v52, 0.0  ;;  %v426_v43 = vadd.f32 %v4807_v62, %v4614_v47  ;;  %v417_v48 = vpop.f32.mrb[3].mxu0  ;;  %v431_v53 = vadd.f32 %v4614_v47, %v430_v33  ;;  %v4811_v57 = vpop.f32.mrb[2].mxu1 }
 0x133   : > { %v445_v3 = vmax.f32 %v415_v59, 0.0  ;;  %v418_v6 = vadd.f32 %v4614_v47, %v417_v48  ;;  %v451_v7 = vmax.f32 %v439_v2, 0.0  ;;  %v442_v8 = vadd.f32 %v4811_v57, %v4614_v47  ;;  %v433_v9 = vpop.f32.mrb[3].mxu1 }
 0x134   : > { %v448_v10 = vmax.f32 %v426_v43, 0.0  ;;  %v449_v11 = vmax.f32 %v431_v53, 0.0  ;;  %v434_v24 = vadd.f32 %v4614_v47, %v433_v9 }
 0x135   : > { %v446_v37 = vmax.f32 %v418_v6, 0.0  ;;  %v452_v12 = vmax.f32 %v442_v8, 0.0 }
 0x136   : > { %v454_v15 = vpack.c.bf16 %v448_v10, %v447_v38  ;;  %v450_v28 = vmax.f32 %v434_v24, 0.0 }
 0x137   : > { %v453_v42 = vpack.c.bf16 %v446_v37, %v445_v3  ;;  %v456_v29 = vpack.c.bf16 %v452_v12, %v451_v7  ;;  %v4948_v37 = vld [vmem:[%s7488_s3 + $0x20] sm:$0xff]   ;;  %v4949_v12 = vld [vmem:[%s7488_s3 + $0x28] sm:$0xff]  }
 0x138   : > { %v455_v44 = vpack.c.bf16 %v450_v28, %v449_v11  ;;  %v4951_v28 = vld [vmem:[%s7488_s3 + $0x38] sm:$0xff]  }
 0x139   : > { %4816 = vmatprep.mubr.msk.bf16.mxu1 %vm7497_vm4, %v453_v42  ;;  %v4952_v42 = vld [vmem:[%s7488_s3 + $0x40] sm:$0xff]  }
 0x13a   : > { %4817 = vmatmul.mubr.msk.bf16.vlgmr.msra.gmra.mrb[4].mxu1 %vm7497_vm4, %v454_v15  ;;  %v4950_v15 = vld [vmem:[%s7488_s3 + $0x30] sm:$0xff]  }
 0x13b   : > { %4820 = vmatprep.mubr.msk.bf16.mxu1 %vm7497_vm4, %v455_v44  ;;  %4831 = vmatpush3.bf16.msra.mxu1 %v4952_v42  ;;  %v4954_v44 = vld [vmem:[%s7488_s3 + $0x50] sm:$0xff]  }
 0x13c   : > { %4832 = vmatprep.subr.bf16.mxu1 %v7516_v41 }
 0x142   : > { %4821 = vmatmul.mubr.msk.bf16.gmra.mrb[8].mxu1 %vm7497_vm4, %v456_v29  ;;  %v4953_v29 = vld [vmem:[%s7488_s3 + $0x48] sm:$0xff]  }
 0x143   : > { %4838 = vmatprep.mubr.msk.bf16.mxu1 %vm5235_vm3, %v7516_v41  ;;  %4833 = vmatpush3.bf16.msra.mxu1 %v4953_v29 }
 0x144   : > { %4834 = vmatprep.subr.bf16.mxu1 %v7516_v41 }
 0x147   : > { %4835 = vmatpush3.bf16.msra.mxu1 %v4954_v44 }
 0x148   : > { %4836 = vmatprep.subr.bf16.mxu1 %v7516_v41 }
 0x14b   : > { %4837 = vmatpush3.bf16.msra.mxu1 %v4955_v49 }
 0x14c   : > { %4854 = vmatprep.subr.bf16.mxu1 %v7516_v41 }
 0x172   : > { %v876_v13 = vpop.xlane.xlu0 %875  ;;  %v873_v58 = vpop.xlane.xlu1 %872 }
 0x173   : > { %v897_v21 = vmul.f32 0.015625, %v876_v13  ;;  %v896_v5 = vmul.f32 0.015625, %v873_v58 }
 0x175   : > { %v905_v63 = vpack.c.bf16 %v897_v21, %v897_v21  ;;  %v904_v16 = vpack.c.bf16 %v896_v5, %v896_v5 }
 0x176   : > { %v882_v0 = vpop.xlane.xlu0 %881  ;;  %v879_v17 = vpop.xlane.xlu1 %878 }
 0x177   : > { %v927_v18 = vunpack.c.l.b16 %v905_v63  ;;  %v926_v20 = vunpack.c.l.b16 %v904_v16  ;;  %v899_v30 = vmul.f32 0.015625, %v882_v0  ;;  %v898_v31 = vmul.f32 0.015625, %v879_v17 }
 0x179   : > { %v907_v46 = vpack.c.bf16 %v899_v30, %v899_v30  ;;  %v906_v4 = vpack.c.bf16 %v898_v31, %v898_v31  ;;  %v943_v32 = vrot.slane %v927_v18, %v938_v60  ;;  %v939_v34 = vrot.slane %v926_v20, %v938_v60 }
 0x17a   : > { %v888_v14 = vpop.xlane.xlu0 %887  ;;  %v885_v35 = vpop.xlane.xlu1 %884 }
 0x17b   : > { %v929_v36 = vunpack.c.l.b16 %v907_v46  ;;  %v928_v61 = vunpack.c.l.b16 %v906_v4  ;;  %v901_v1 = vmul.f32 0.015625, %v888_v14  ;;  %v900_v51 = vmul.f32 0.015625, %v885_v35 }
 0x17c   : > { %v969_v40 = vsel %vm7513_vm5, %v943_v32, %v939_v34 }
 0x17d   : > { %v947_v19 = vrot.slane %v928_v61, %v938_v60  ;;  %v909_v39 = vpack.c.bf16 %v901_v1, %v901_v1  ;;  %v908_v45 = vpack.c.bf16 %v900_v51, %v900_v51  ;;  %v951_v52 = vrot.slane %v929_v36, %v938_v60 }
 0x17e   : > { %v894_v47 = vpop.xlane.xlu0 %893  ;;  %v891_v50 = vpop.xlane.xlu1 %890 }
 0x17f   : > { %v931_v54 = vunpack.c.l.b16 %v909_v39  ;;  %v903_v55 = vmul.f32 0.015625, %v894_v47  ;;  %v902_v59 = vmul.f32 0.015625, %v891_v50  ;;  %v971_v62 = vsel %vm7512_vm6, %v947_v19, %v969_v40 }
 0x180   : > { %v930_v2 = vunpack.c.l.b16 %v908_v45  ;;  %v973_v53 = vsel %vm7511_vm7, %v951_v52, %v971_v62 }
 0x181   : > { %v911_v33 = vpack.c.bf16 %v903_v55, %v903_v55  ;;  %v910_v38 = vpack.c.bf16 %v902_v59, %v902_v59  ;;  %v959_v43 = vrot.slane %v931_v54, %v938_v60 }
 0x182   : > { %v955_v48 = vrot.slane %v930_v2, %v938_v60 }
 0x183   : > { %v933_v57 = vunpack.c.l.b16 %v911_v33  ;;  %v932_v3 = vunpack.c.l.b16 %v910_v38 }
 0x184   : > { %v975_v6 = vsel %vm7510_vm8, %v955_v48, %v973_v53 }
 0x185   : > { %v967_v7 = vrot.slane %v933_v57, %v938_v60  ;;  %v963_v8 = vrot.slane %v932_v3, %v938_v60  ;;  %v977_v9 = vsel %vm7509_vm9, %v959_v43, %v975_v6 }
 0x187   : > { %v979_v10 = vsel %vm7508_vm10, %v963_v8, %v977_v9 }
 0x188   : > { %v981_v11 = vsel %vm7507_vm11, %v967_v7, %v979_v10 }
 0x189   : > { %v982_v24 = vpack.c.b16 %v981_v11, %v981_v11 }
 0x18b   : > { %4827 = vmatmul.mubr.msk.bf16.vlgmr.msra.gmra.mrb[4].mxu0 %vm983_vm12, %v982_v24 }
 0x18c   : > { %4850 = vmatprep.mubr.msk.bf16.mxu0 %vm5235_vm3, %v7516_v41  ;;  %4843 = vmatpush3.bf16.msra.mxu0 %v4948_v37 }
 0x18d   : > { %4844 = vmatprep.subr.bf16.mxu0 %v7516_v41 }
 0x190   : > { %4845 = vmatpush3.bf16.msra.mxu0 %v4949_v12 }
 0x191   : > { %4846 = vmatprep.subr.bf16.mxu0 %v7516_v41 }
 0x194   : > { %4847 = vmatpush3.bf16.msra.mxu0 %v4950_v15 }
 0x195   : > { %4848 = vmatprep.subr.bf16.mxu0 %v7516_v41 }
 0x198   : > { %4849 = vmatpush3.bf16.msra.mxu0 %v4951_v28 }
 0x199   : > { %4866 = vmatprep.subr.bf16.mxu0 %v7516_v41 }
 0x20d   : > { %v5632_v13 = vpop.f32.mrb[4].mxu1 }
 0x20e   : > { %v566_v58 = vsel %vm7498_vm1, %v5632_v13, 0.0  ;;  %v5636_v21 = vpop.f32.mrb[5].mxu1  ;;  %v1442_v5 = vrot.slane %v5632_v13, 6  ;;  %v1811_v63 = vrot.slane %v5632_v13, 7  ;;  %v2621_v16 = vrot.slane %v5632_v13, 1 }
 0x20f   : > { %v567_v60 = vrot.slane %v566_v58, 4  ;;  %v552_v0 = vsel %vm7498_vm1, %v5636_v21, 0.0  ;;  %v5643_v17 = vpop.f32.mrb[6].mxu1  ;;  %v1809_v18 = vrot.slane %v5636_v21, 1  ;;  %v2212_v20 = vrot.slane %v5636_v21, 2 }
 0x210   : > { %v553_v30 = vrot.slane %v552_v0, 4  ;;  %v573_v31 = vsel %vm7498_vm1, %v5643_v17, 0.0  ;;  %v5649_v46 = vpop.f32.mrb[7].mxu1  ;;  %v1444_v4 = vrot.slane %v5643_v17, 5  ;;  %v1813_v32 = vrot.slane %v5643_v17, 6 }
 0x211   : > { %v568_v34 = vadd.f32 %v567_v60, %v566_v58  ;;  %v574_v14 = vrot.slane %v573_v31, 4  ;;  %v559_v35 = vsel %vm7498_vm1, %v5649_v46, 0.0  ;;  %v1440_v36 = vrot.slane %v5649_v46, 7 }
 0x212   : > { %v554_v61 = vadd.f32 %v553_v30, %v552_v0  ;;  %v560_v1 = vrot.slane %v559_v35, 4  ;;  %v1810_v51 = vsel %vm7513_vm5, %v5649_v46, %v1809_v18  ;;  %v2213_v19 = vrot.slane %v5649_v46, 1 }
 0x213   : > { %v569_v39 = vrot.slane %v568_v34, 2  ;;  %v575_v40 = vadd.f32 %v574_v14, %v573_v31  ;;  %v1441_v45 = vsel %vm7513_vm5, %v1440_v36, %v5636_v21  ;;  %v1812_v47 = vsel %vm7512_vm6, %v1811_v63, %v1810_v51 }
 0x214   : > { %v555_v50 = vrot.slane %v554_v61, 2  ;;  %v561_v52 = vadd.f32 %v560_v1, %v559_v35  ;;  %v1443_v54 = vsel %vm7512_vm6, %v1442_v5, %v1441_v45  ;;  %v5664_v55 = vsel %vm7511_vm7, %v1813_v32, %v1812_v47 }
 0x215   : > { %v570_v59 = vadd.f32 %v569_v39, %v568_v34  ;;  %v576_v62 = vrot.slane %v575_v40, 2  ;;  %v5666_v2 = vpop.f32.mrb[8].mxu1  ;;  %v1445_v33 = vsel %vm7511_vm7, %v1444_v4, %v1443_v54  ;;  %v5670_v38 = vsel %vm7513_vm5, %v2213_v19, %v2212_v20  ;;  %v4626_v34 = vld [vmem:[#allocation4 + $0x8] ss:$0 sm:$0xff] }
 0x216   : > { %v556_v43 = vadd.f32 %v555_v50, %v554_v61  ;;  %v562_v48 = vrot.slane %v561_v52, 2  ;;  %v594_v53 = vsel %vm7498_vm1, %v5666_v2, 0.0  ;;  %v5674_v57 = vpop.f32.mrb[9].mxu1  ;;  %v1450_v3 = vrot.slane %v5666_v2, 2 }
 0x217   : > { %v571_v6 = vrot.slane %v570_v59, 1  ;;  %v577_v7 = vadd.f32 %v576_v62, %v575_v40  ;;  %v595_v8 = vrot.slane %v594_v53, 4  ;;  %v580_v9 = vsel %vm7498_vm1, %v5674_v57, 0.0  ;;  %v5679_v10 = vpop.f32.mrb[10].mxu1 }
 0x218   : > { %v557_v11 = vrot.slane %v556_v43, 1  ;;  %v563_v24 = vadd.f32 %v562_v48, %v561_v52  ;;  %v581_v37 = vrot.slane %v580_v9, 4  ;;  %v601_v12 = vsel %vm7498_vm1, %v5679_v10, 0.0  ;;  %v5683_v15 = vpop.f32.mrb[11].mxu1 }
 0x219   : > { %v572_v28 = vadd.f32 %v571_v6, %v570_v59  ;;  %v578_v42 = vrot.slane %v577_v7, 1  ;;  %v596_v29 = vadd.f32 %v595_v8, %v594_v53  ;;  %v602_v44 = vrot.slane %v601_v12, 4 }
 0x21a   : > { %v558_v49 = vadd.f32 %v557_v11, %v556_v43  ;;  %v564_v58 = vrot.slane %v563_v24, 1  ;;  %v582_v5 = vadd.f32 %v581_v37, %v580_v9  ;;  %v587_v63 = vsel %vm7498_vm1, %v5683_v15, 0.0 }
 0x21b   : > { %v611_v60 = vmul.f32 0.125, %v572_v28  ;;  %v579_v0 = vadd.f32 %v578_v42, %v577_v7  ;;  %v588_v18 = vrot.slane %v587_v63, 4  ;;  %v1446_v20 = vrot.slane %v5674_v57, 4 }
 0x21c   : > { %v609_v30 = vmul.f32 0.125, %v558_v49  ;;  %v565_v31 = vadd.f32 %v564_v58, %v563_v24  ;;  %v583_v4 = vrot.slane %v582_v5, 2  ;;  %v1448_v32 = vrot.slane %v5683_v15, 3 }
 0x21d   : > { %v589_v14 = vadd.f32 %v588_v18, %v587_v63  ;;  %v1447_v35 = vsel %vm7510_vm8, %v1446_v20, %v1445_v33  ;;  %v1452_v36 = vrot.slane %v5679_v10, 1  ;;  %v597_v61 = vrot.slane %v596_v29, 2 }
 0x21e   : > { %v610_v1 = vmul.f32 0.125, %v565_v31  ;;  %v584_v51 = vadd.f32 %v583_v4, %v582_v5  ;;  %v1449_v19 = vsel %vm7509_vm9, %v1448_v32, %v1447_v35  ;;  %v603_v39 = vadd.f32 %v602_v44, %v601_v12 }
 0x21f   : > { %v590_v40 = vrot.slane %v589_v14, 2  ;;  %v1451_v45 = vsel %vm7508_vm10, %v1450_v3, %v1449_v19  ;;  %v598_v47 = vadd.f32 %v597_v61, %v596_v29  ;;  %v612_v50 = vmul.f32 0.125, %v579_v0 }
 0x220   : > { %v623_v52 = vadd.f32 %v4626_v34, %v610_v1  ;;  %v585_v54 = vrot.slane %v584_v51, 1  ;;  %v1453_v59 = vsel %vm7507_vm11, %v1452_v36, %v1451_v45  ;;  %v604_v62 = vrot.slane %v603_v39, 2 }
 0x221   : > { %v591_v43 = vadd.f32 %v590_v40, %v589_v14  ;;  %1454 = vrot.lane.b32.xlu1 %v1453_v59, %s5236_s29  ;;  %v599_v33 = vrot.slane %v598_v47, 1  ;;  %v622_v48 = vadd.f32 %v4626_v34, %v609_v30  ;;  %v624_v53 = vadd.f32 %v4626_v34, %v611_v60 }
 0x222   : > { %v586_v6 = vadd.f32 %v585_v54, %v584_v51  ;;  %v605_v7 = vadd.f32 %v604_v62, %v603_v39  ;;  %v625_v8 = vadd.f32 %v4626_v34, %v612_v50  ;;  %v631_v9 = vmax.f32 %v623_v52, 0.0 }
 0x223   : > { %v592_v11 = vrot.slane %v591_v43, 1  ;;  %v600_v3 = vadd.f32 %v599_v33, %v598_v47  ;;  %v630_v24 = vmax.f32 %v622_v48, 0.0  ;;  %v632_v37 = vmax.f32 %v624_v53, 0.0 }
 0x224   : > { %v606_v12 = vrot.slane %v605_v7, 1  ;;  %v613_v28 = vmul.f32 0.125, %v586_v6  ;;  %v633_v42 = vmax.f32 %v625_v8, 0.0  ;;  %v1033_v29 = vpack.c.bf16 %v631_v9, %v631_v9 }
 0x225   : > { %v593_v44 = vadd.f32 %v592_v11, %v591_v43  ;;  %v615_v49 = vmul.f32 0.125, %v600_v3  ;;  %v1032_v58 = vpack.c.bf16 %v630_v24, %v630_v24  ;;  %v1034_v5 = vpack.c.bf16 %v632_v37, %v632_v37 }
 0x226   : > { %v607_v63 = vadd.f32 %v606_v12, %v605_v7  ;;  %v626_v0 = vadd.f32 %v4626_v34, %v613_v28  ;;  %v1035_v18 = vpack.c.bf16 %v633_v42, %v633_v42  ;;  %v1133_v60 = vunpack.c.l.b16 %v1033_v29 }
 0x227   : > { %v614_v20 = vmul.f32 0.125, %v593_v44  ;;  %v628_v30 = vadd.f32 %v4626_v34, %v615_v49  ;;  %v1132_v31 = vunpack.c.l.b16 %v1032_v58  ;;  %v1134_v4 = vunpack.c.l.b16 %v1034_v5 }
 0x228   : > { %v616_v32 = vmul.f32 0.125, %v607_v63  ;;  %v634_v14 = vmax.f32 %v626_v0, 0.0  ;;  %v1135_v35 = vunpack.c.l.b16 %v1035_v18  ;;  %v1140_v36 = vrot.slane %v1133_v60, 7 }
 0x229   : > { %v627_v61 = vadd.f32 %v4626_v34, %v614_v20  ;;  %v636_v1 = vmax.f32 %v628_v30, 0.0  ;;  %v1142_v51 = vrot.slane %v1134_v4, 6  ;;  %v1815_v19 = vrot.slane %v5674_v57, 5 }
 0x22a   : > { %v629_v39 = vadd.f32 %v4626_v34, %v616_v32  ;;  %v1036_v40 = vpack.c.bf16 %v634_v14, %v634_v14  ;;  %v1141_v45 = vsel %vm7513_vm5, %v1140_v36, %v1132_v31  ;;  %v1144_v47 = vrot.slane %v1135_v35, 5 }
 0x22b   : > { %v635_v50 = vmax.f32 %v627_v61, 0.0  ;;  %v1038_v52 = vpack.c.bf16 %v636_v1, %v636_v1  ;;  %v1143_v54 = vsel %vm7512_vm6, %v1142_v51, %v1141_v45  ;;  %v1816_v59 = vsel %vm7510_vm8, %v1815_v19, %v5664_v55 }
 0x22c   : > { %v637_v62 = vmax.f32 %v629_v39, 0.0  ;;  %v1136_v43 = vunpack.c.l.b16 %v1036_v40  ;;  %v1145_v33 = vsel %vm7511_vm7, %v1144_v47, %v1143_v54  ;;  %v1817_v48 = vrot.slane %v5683_v15, 4 }
 0x22d   : > { %v1037_v53 = vpack.c.bf16 %v635_v50, %v635_v50  ;;  %v1138_v6 = vunpack.c.l.b16 %v1038_v52  ;;  %v1819_v34 = vrot.slane %v5666_v2, 3  ;;  %v1821_v7 = vrot.slane %v5679_v10, 2 }
 0x22e   : > { %v1039_v8 = vpack.c.bf16 %v637_v62, %v637_v62  ;;  %v1146_v9 = vrot.slane %v1136_v43, 4  ;;  %v1818_v11 = vsel %vm7509_vm9, %v1817_v48, %v1816_v59  ;;  %v2215_v55 = vsel %vm7512_vm6, %v5632_v13, %v5670_v38 }
 0x22f   : > { %v1137_v3 = vunpack.c.l.b16 %v1037_v53  ;;  %v1150_v24 = vrot.slane %v1138_v6, 2  ;;  %v1820_v37 = vsel %vm7508_vm10, %v1819_v34, %v1818_v11  ;;  %v2216_v12 = vrot.slane %v5643_v17, 7 }
 0x230   : > { %v1139_v28 = vunpack.c.l.b16 %v1039_v8  ;;  %v1147_v42 = vsel %vm7510_vm8, %v1146_v9, %v1145_v33  ;;  %v5712_v29 = vsel %vm7507_vm11, %v1821_v7, %v1820_v37  ;;  %v2218_v44 = vrot.slane %v5674_v57, 6 }
 0x231   : > { %v1148_v49 = vrot.slane %v1137_v3, 3  ;;  %v2217_v58 = vsel %vm7511_vm7, %v2216_v12, %v2215_v55  ;;  %v2220_v5 = vrot.slane %v5683_v15, 5  ;;  %v2222_v38 = vrot.slane %v5666_v2, 4 }
 0x232   : > { %v1152_v63 = vrot.slane %v1139_v28, 1  ;;  %v2219_v0 = vsel %vm7510_vm8, %v2218_v44, %v2217_v58  ;;  %v2224_v18 = vrot.slane %v5679_v10, 3  ;;  %v2618_v60 = vrot.slane %v5636_v21, 3 }
 0x233   : > { %v1149_v20 = vsel %vm7509_vm9, %v1148_v49, %v1147_v42  ;;  %v2221_v30 = vsel %vm7509_vm9, %v2220_v5, %v2219_v0  ;;  %v2619_v31 = vrot.slane %v5649_v46, 2  ;;  %v2624_v4 = vrot.slane %v5674_v57, 7 }
 0x234   : > { %v1151_v32 = vsel %vm7508_vm10, %v1150_v24, %v1149_v20  ;;  %v2223_v14 = vsel %vm7508_vm10, %v2222_v38, %v2221_v30  ;;  %v2626_v35 = vrot.slane %v5683_v15, 6  ;;  %v2628_v36 = vrot.slane %v5666_v2, 5 }
 0x235   : > { %v1153_v61 = vsel %vm7507_vm11, %v1152_v63, %v1151_v32  ;;  %v5731_v1 = vsel %vm7507_vm11, %v2224_v18, %v2223_v14  ;;  %v2620_v51 = vsel %vm7513_vm5, %v2619_v31, %v2618_v60  ;;  %v2630_v19 = vrot.slane %v5679_v10, 4 }
 0x236   : > { %v1154_v39 = vpack.c.b16 %v1153_v61, %v1153_v61  ;;  %v2622_v40 = vsel %vm7512_vm6, %v2621_v16, %v2620_v51  ;;  %v3023_v45 = vrot.slane %v5636_v21, 4  ;;  %v3024_v47 = vrot.slane %v5649_v46, 3 }
 0x237   : > { %v2623_v50 = vsel %vm7511_vm7, %v5643_v17, %v2622_v40  ;;  %v3026_v52 = vrot.slane %v5632_v13, 2  ;;  %v3028_v54 = vrot.slane %v5643_v17, 1  ;;  %v3031_v59 = vrot.slane %v5683_v15, 7 }
 0x238   : > { %4851 = vmatmul.mubr.msk.bf16.vlgmr.msra.gmra.mrb[8].mxu0 %vm7498_vm1, %v1154_v39  ;;  %v2625_v62 = vsel %vm7510_vm8, %v2624_v4, %v2623_v50  ;;  %v3025_v43 = vsel %vm7513_vm5, %v3024_v47, %v3023_v45  ;;  %v3033_v16 = vrot.slane %v5666_v2, 6  ;;  %v3035_v33 = vrot.slane %v5679_v10, 5 }
 0x239   : > { %v2627_v48 = vsel %vm7509_vm9, %v2626_v35, %v2625_v62  ;;  %v3027_v53 = vsel %vm7512_vm6, %v3026_v52, %v3025_v43  ;;  %v3427_v6 = vrot.slane %v5636_v21, 5  ;;  %v3428_v34 = vrot.slane %v5649_v46, 4  ;;  %4874 = vmatprep.mubr.msk.bf16.mxu0 %vm5235_vm3, %v7516_v41 }
 0x23a   : > { %v2629_v7 = vsel %vm7508_vm10, %v2628_v36, %v2627_v48  ;;  %v3029_v8 = vsel %vm7511_vm7, %v3028_v54, %v3027_v53  ;;  %v3430_v9 = vrot.slane %v5632_v13, 3  ;;  %v3432_v11 = vrot.slane %v5643_v17, 2 }
 0x23b   : > { %v5761_v55 = vsel %vm7507_vm11, %v2630_v19, %v2629_v7  ;;  %v3030_v3 = vsel %vm7510_vm8, %v5674_v57, %v3029_v8  ;;  %v3429_v24 = vsel %vm7513_vm5, %v3428_v34, %v3427_v6  ;;  %v3434_v37 = vrot.slane %v5674_v57, 1  ;;  %v4956_v8 = vld [vmem:[%s7488_s3 + $0x60] sm:$0xff]  }
 0x23c   : > { %v3032_v12 = vsel %vm7509_vm9, %v3031_v59, %v3030_v3  ;;  %v3431_v28 = vsel %vm7512_vm6, %v3430_v9, %v3429_v24  ;;  %v3437_v42 = vrot.slane %v5666_v2, 7  ;;  %v3439_v44 = vrot.slane %v5679_v10, 6  ;;  %v4958_v9 = vld [vmem:[%s7488_s3 + $0x70] sm:$0xff]  }
 0x23d   : > { %v3034_v49 = vsel %vm7508_vm10, %v3033_v16, %v3032_v12  ;;  %v3433_v58 = vsel %vm7511_vm7, %v3432_v11, %v3431_v28  ;;  %v3832_v5 = vrot.slane %v5636_v21, 6  ;;  %v3833_v38 = vrot.slane %v5649_v46, 5  ;;  %v4627_v16 = vld [vmem:[#allocation4 + $0x20] ss:$0 sm:$0xff]  ;;  %v4959_v11 = vld [vmem:[%s7488_s3 + $0x78] sm:$0xff]  }
 0x23e   : > { %v5776_v63 = vsel %vm7507_vm11, %v3035_v33, %v3034_v49  ;;  %v3435_v0 = vsel %vm7510_vm8, %v3434_v37, %v3433_v58  ;;  %v3835_v18 = vrot.slane %v5632_v13, 4  ;;  %v3837_v60 = vrot.slane %v5643_v17, 3 }
 0x23f   : > { %v3436_v20 = vsel %vm7509_vm9, %v5683_v15, %v3435_v0  ;;  %v3834_v30 = vsel %vm7513_vm5, %v3833_v38, %v3832_v5  ;;  %v3839_v31 = vrot.slane %v5674_v57, 2  ;;  %v3841_v4 = vrot.slane %v5683_v15, 1 }
 0x240   : > { %v3438_v32 = vsel %vm7508_vm10, %v3437_v42, %v3436_v20  ;;  %v3836_v14 = vsel %vm7512_vm6, %v3835_v18, %v3834_v30  ;;  %v3844_v35 = vrot.slane %v5679_v10, 7  ;;  %v4237_v36 = vrot.slane %v5636_v21, 7  ;;  %v4639_v42 = vld [vmem:[#allocation4 + $0x28] ss:$0 sm:$0xff] }
 0x241   : > { %v5791_v61 = vsel %vm7507_vm11, %v3439_v44, %v3438_v32  ;;  %v3838_v51 = vsel %vm7511_vm7, %v3837_v60, %v3836_v14  ;;  %v4238_v19 = vrot.slane %v5649_v46, 6  ;;  %v4240_v39 = vrot.slane %v5632_v13, 5  ;;  %v4640_v60 = vld [vmem:[#allocation4 + $0x30] ss:$0 sm:$0xff]  ;;  %v5845_v14 = vld [vmem:[%s5396_s17 + $0x18] sm:$0xff] }
 0x242   : > { %v3840_v40 = vsel %vm7510_vm8, %v3839_v31, %v3838_v51  ;;  %v4242_v45 = vrot.slane %v5643_v17, 4  ;;  %v4244_v47 = vrot.slane %v5674_v57, 3  ;;  %v4246_v21 = vrot.slane %v5683_v15, 2  ;;  %v5842_v32 = vld [vmem:[%s5396_s17 + $0x10] sm:$0xff] }
 0x243   : > { %v3842_v50 = vsel %vm7509_vm9, %v3841_v4, %v3840_v40  ;;  %v4239_v52 = vsel %vm7513_vm5, %v4238_v19, %v4237_v36  ;;  %v4248_v46 = vrot.slane %v5666_v2, 1  ;;  %v5839_v4 = vld [vmem:[%s5396_s17 + $0x8] sm:$0xff]  ;;  %v5852_v40 = vld [vmem:[%s5396_s17 + $0x20] sm:$0xff]  ;;  %vm7503_vm14 = vcmp.gt.f32.partialorder %v5842_v32, 0.0 }
 0x244   : > { %v3843_v54 = vsel %vm7508_vm10, %v5666_v2, %v3842_v50  ;;  %v4241_v59 = vsel %vm7512_vm6, %v4240_v39, %v4239_v52  ;;  %v5849_v39 = vld [vmem:[%s5396_s17] sm:$0xff]  ;;  %vm7506_vm13 = vcmp.gt.f32.partialorder %v5839_v4, 0.0  ;;  %vm7502_vm15 = vcmp.gt.f32.partialorder %v5845_v14, 0.0 }
 0x245   : > { %v5807_v13 = vsel %vm7507_vm11, %v3844_v35, %v3843_v54  ;;  %v4243_v17 = vsel %vm7511_vm7, %v4242_v45, %v4241_v59  ;;  %v5855_v45 = vld [vmem:[%s5396_s17 + $0x28] sm:$0xff]  ;;  %v5864_v59 = vld [vmem:[%s5396_s17 + $0x38] sm:$0xff]  ;;  %vm7501_vm12 = vcmp.gt.f32.partialorder %v5852_v40, 0.0 }
 0x246   : > { %v4245_v57 = vsel %vm7510_vm8, %v4244_v47, %v4243_v17  ;;  %v5861_v47 = vld [vmem:[%s5396_s17 + $0x30] sm:$0xff]  ;;  %vm7500_vm2 = vcmp.gt.f32.partialorder %v5855_v45, 0.0 }
 0x247   : > { %v4247_v62 = vsel %vm7509_vm9, %v4246_v21, %v4245_v57  ;;  %vm7499_vm4 = vcmp.gt.f32.partialorder %v5861_v47, 0.0 }
 0x248   : > { %v4249_v43 = vsel %vm7508_vm10, %v4248_v46, %v4247_v62 }
 0x249   : > { %v5815_v15 = vsel %vm7507_vm11, %v5679_v10, %v4249_v43  ;;  %v4957_v10 = vld [vmem:[%s7488_s3 + $0x68] sm:$0xff]  }
 0x24a   : > { %7541 = vst [vmem:[#allocation8_spill] sm:$0xff] %v5815_v15 }
 0x25e   : > { %v1025_v33 = vpop.f32.mrb[4].mxu0 }
 0x25f   : > { %v1026_v48 = vadd.f32 %v4627_v16, %v1025_v33  ;;  %v4828_v53 = vpop.f32.mrb[5].mxu0 }
 0x260   : > { %v1028_v2 = vpop.f32.mrb[6].mxu0 }
 0x261   : > { %v1031_v6 = vmax.f32 %v1026_v48, 0.0  ;;  %v4829_v34 = vpop.f32.mrb[7].mxu0 }
 0x263   : > { %v1048_v7 = vpack.c.bf16 %v1031_v6, %v1031_v6 }
 0x265   : > { %4839 = vmatmul.mubr.msk.bf16.vlgmr.msra.gmra.mrb[12].mxu1 %vm7498_vm1, %v1048_v7 }
 0x266   : > { %4862 = vmatprep.mubr.msk.bf16.mxu1 %vm5235_vm3, %v7516_v41  ;;  %4855 = vmatpush3.bf16.msra.mxu1 %v4956_v8  ;;  %vm7504_vm3 = vcmp.gt.f32.partialorder %v5849_v39, 0.0 }
 0x267   : > { %4856 = vmatprep.subr.bf16.mxu1 %v7516_v41 }
 0x26a   : > { %4857 = vmatpush3.bf16.msra.mxu1 %v4957_v10 }
 0x26b   : > { %4858 = vmatprep.subr.bf16.mxu1 %v7516_v41 }
 0x26e   : > { %4859 = vmatpush3.bf16.msra.mxu1 %v4958_v9 }
 0x26f   : > { %4860 = vmatprep.subr.bf16.mxu1 %v7516_v41 }
 0x272   : > { %4861 = vmatpush3.bf16.msra.mxu1 %v4959_v11 }
 0x293   : > { %v1455_v35 = vpop.permute.xlu1 %1454 }
 0x30b   : > { %v1216_v3 = vpop.f32.mrb[8].mxu0 }
 0x30c   : > { %v4852_v24 = vpop.f32.mrb[9].mxu0 }
 0x30d   : > { %v1219_v37 = vpop.f32.mrb[10].mxu0 }
 0x30e   : > { %v4853_v12 = vpop.f32.mrb[11].mxu0 }
 0x338   : > { %v1118_v28 = vpop.f32.mrb[12].mxu1 }
 0x339   : > { %v1217_v44 = vadd.f32 %v1216_v3, %v1118_v28  ;;  %v4840_v49 = vpop.f32.mrb[13].mxu1 }
 0x33a   : > { %v1121_v58 = vpop.f32.mrb[14].mxu1 }
 0x33b   : > { %v1227_v5 = vadd.f32 %v4639_v42, %v1217_v44  ;;  %v4841_v38 = vpop.f32.mrb[15].mxu1 }
 0x33d   : > { %v1228_v0 = vmax.f32 %v1227_v5, 0.0 }
 0x33f   : > { %v1229_v18 = vpack.c.bf16 %v1228_v0, %v1228_v0 }
 0x341   : > { %4863 = vmatmul.mubr.msk.bf16.vlgmr.msra.gmra.mrb[16].mxu1 %vm7498_vm1, %v1229_v18  ;;  %vm7505_vm1 = vcmp.gt.f32.partialorder %v5864_v59, 0.0 }
 0x414   : > { %v1304_v20 = vpop.f32.mrb[16].mxu1 }
 0x415   : > { %v5836_v30 = vadd.f32 %v4640_v60, %v1304_v20  ;;  %v4864_v31 = vpop.f32.mrb[17].mxu1 }
 0x416   : > { %v1307_v36 = vpop.f32.mrb[18].mxu1 }
 0x417   : > { %v1457_v51 = vadd.f32 %v1455_v35, %v5836_v30  ;;  %v4865_v19 = vpop.f32.mrb[19].mxu1 }
 0x419   : > { %v1459_v50 = vrot.slane %v1457_v51, 1  ;;  %v1460_v52 = vrot.slane %v1457_v51, 2  ;;  %v1461_v21 = vrot.slane %v1457_v51, 3  ;;  %v1462_v54 = vrot.slane %v1457_v51, 4 }
 0x41a   : > { %v1463_v46 = vrot.slane %v1457_v51, 5  ;;  %v1464_v17 = vrot.slane %v1457_v51, 6  ;;  %v1465_v43 = vrot.slane %v1457_v51, 7  ;;  %v1474_v2 = vsel %vm7504_vm3, %v1457_v51, -1e+09 }
 0x41b   : > { %v5871_v57 = vsel %vm7506_vm13, %v1459_v50, -1e+09  ;;  %v5875_v62 = vsel %vm7503_vm14, %v1460_v52, -1e+09  ;;  %v5880_v16 = vsel %vm7502_vm15, %v1461_v21, -1e+09 }
 0x41c   : > { %v5885_v33 = vsel %vm7501_vm12, %v1462_v54, -1e+09  ;;  %v1490_v48 = vrot.slane %v5871_v57, 7  ;;  %v1492_v53 = vrot.slane %v5875_v62, 6  ;;  %v5893_v6 = vsel %vm7500_vm2, %v1463_v46, -1e+09 }
 0x41d   : > { %v5897_v34 = vsel %vm7499_vm4, %v1464_v17, -1e+09  ;;  %v1494_v8 = vrot.slane %v5880_v16, 5  ;;  %v1481_v10 = vsel %vm7505_vm1, %v1465_v43, -1e+09  ;;  %v1496_v11 = vrot.slane %v5885_v33, 4 }
 0x41e   : > { %v1491_v7 = vsel %vm7513_vm5, %v1490_v48, %v1474_v2  ;;  %v1498_v24 = vrot.slane %v5893_v6, 3  ;;  %v1500_v12 = vrot.slane %v5897_v34, 2  ;;  %v1502_v42 = vrot.slane %v1481_v10, 1 }
 0x41f   : > { %v1493_v9 = vsel %vm7512_vm6, %v1492_v53, %v1491_v7 }
 0x420   : > { %v1495_v3 = vsel %vm7511_vm7, %v1494_v8, %v1493_v9 }
 0x421   : > { %v1497_v37 = vsel %vm7510_vm8, %v1496_v11, %v1495_v3 }
 0x422   : > { %v1499_v28 = vsel %vm7509_vm9, %v1498_v24, %v1497_v37 }
 0x423   : > { %v1501_v44 = vsel %vm7508_vm10, %v1500_v12, %v1499_v28 }
 0x424   : > { %v1503_v49 = vsel %vm7507_vm11, %v1502_v42, %v1501_v44 }
 0x425   : > { %v1505_v58 = vsel %vm7514_vm0, %v1503_v49, -inf }
 0x426   : > { %1506 = vmax.xlane.f32.xlu0 %v1505_v58 }
 0x4b3   : > { %v1507_v5 = vpop.xlane.xlu0 %1506 }
 0x4b4   : > { %v1509_v38 = vrot.slane %v1507_v5, 1  ;;  %v1510_v0 = vrot.slane %v1507_v5, 2  ;;  %v1511_v18 = vrot.slane %v1507_v5, 3  ;;  %v1512_v60 = vrot.slane %v1507_v5, 4 }
 0x4b5   : > { %v1513_v20 = vrot.slane %v1507_v5, 5  ;;  %v1514_v31 = vrot.slane %v1507_v5, 6  ;;  %v1515_v35 = vrot.slane %v1507_v5, 7  ;;  %vm1524_vm14 = vcmp.ge.f32.partialorder %v1474_v2, %v1507_v5 }
 0x4b6   : > { %vm1525_vm4 = vcmp.ge.f32.partialorder %v5871_v57, %v1509_v38  ;;  %vm1526_vm2 = vcmp.ge.f32.partialorder %v5875_v62, %v1510_v0  ;;  %vm5916_vm12 = vcmp.ge.f32.partialorder %v5880_v16, %v1511_v18  ;;  %vm5921_vm15 = vcmp.ge.f32.partialorder %v5885_v33, %v1512_v60 }
 0x4b7   : > { %vm5926_vm3 = vcmp.ge.f32.partialorder %v5893_v6, %v1513_v20  ;;  %v1533_v50 = vsel %vm1525_vm4, %v5587_v56, 16  ;;  %vm5932_vm1 = vcmp.ge.f32.partialorder %v5897_v34, %v1514_v31  ;;  %v1534_v21 = vsel %vm1526_vm2, %v5587_v56, 16 }
 0x4b8   : > { %v1535_v54 = vsel %vm5916_vm12, %v5587_v56, 16  ;;  %vm5940_vm13 = vcmp.ge.f32.partialorder %v1481_v10, %v1515_v35  ;;  %v1536_v17 = vsel %vm5921_vm15, %v5587_v56, 16  ;;  %v1540_v43 = vrot.slane %v1533_v50, 7 }
 0x4b9   : > { %v1542_v48 = vrot.slane %v1534_v21, 6  ;;  %v1532_v53 = vsel %vm1524_vm14, %v5587_v56, 16  ;;  %v1537_v7 = vsel %vm5926_vm3, %v5587_v56, 16  ;;  %v1538_v8 = vsel %vm5932_vm1, %v5587_v56, 16 }
 0x4ba   : > { %v1541_v9 = vsel %vm7513_vm5, %v1540_v43, %v1532_v53  ;;  %v1544_v11 = vrot.slane %v1535_v54, 5  ;;  %v1539_v3 = vsel %vm5940_vm13, %v5587_v56, 16  ;;  %v1546_v37 = vrot.slane %v1536_v17, 4 }
 0x4bb   : > { %v1543_v24 = vsel %vm7512_vm6, %v1542_v48, %v1541_v9  ;;  %v1571_v12 = vsub.f32 %v1474_v2, %v1507_v5  ;;  %v1548_v42 = vrot.slane %v1537_v7, 3  ;;  %v1550_v49 = vrot.slane %v1538_v8, 2 }
 0x4bc   : > { %v1545_v28 = vsel %vm7511_vm7, %v1544_v11, %v1543_v24  ;;  %v1552_v36 = vrot.slane %v1539_v3, 1  ;;  %v1572_v21 = vsub.f32 %v5871_v57, %v1509_v38  ;;  %v1573_v2 = vsub.f32 %v5875_v62, %v1510_v0 }
 0x4bd   : > { %v1547_v44 = vsel %vm7510_vm8, %v1546_v37, %v1545_v28  ;;  %v1579_v19 = vmul.f32 1.442695, %v1571_v12  ;;  %v1574_v5 = vsub.f32 %v5880_v16, %v1511_v18  ;;  %v1575_v46 = vsub.f32 %v5885_v33, %v1512_v60 }
 0x4be   : > { %v1549_v58 = vsel %vm7509_vm9, %v1548_v42, %v1547_v44  ;;  %v1576_v17 = vsub.f32 %v5893_v6, %v1513_v20  ;;  %v1577_v43 = vsub.f32 %v5897_v34, %v1514_v31  ;;  %v1578_v48 = vsub.f32 %v1481_v10, %v1515_v35 }
 0x4bf   : > { %v1551_v51 = vsel %vm7508_vm10, %v1550_v49, %v1549_v58  ;;  %v1581_v53 = vmul.f32 1.442695, %v1572_v21  ;;  %v1583_v7 = vmul.f32 1.442695, %v1573_v2  ;;  %4964 = vpow2.f32 %v1579_v19 }
 0x4c0   : > { %v1553_v50 = vsel %vm7507_vm11, %v1552_v36, %v1551_v51  ;;  %v1585_v9 = vmul.f32 1.442695, %v1574_v5  ;;  %v1587_v11 = vmul.f32 1.442695, %v1575_v46  ;;  %v1589_v57 = vmul.f32 1.442695, %v1576_v17 }
 0x4c1   : > { %v1554_v52 = vsel %vm7514_vm0, %v1553_v50, 2147483647  ;;  %4966 = vpow2.f32 %v1581_v53  ;;  %v1591_v62 = vmul.f32 1.442695, %v1577_v43  ;;  %v1593_v16 = vmul.f32 1.442695, %v1578_v48 }
 0x4c2   : > { %v1556_v54 = vshra.s32 %v1554_v52, 16  ;;  %4968 = vpow2.f32 %v1583_v7  ;;  %v1555_v19 = vand.u32 65535, %v1554_v52  ;;  %v5983_v43 = vsub.s32 4, %v5428_v22 }
 0x4c3   : > { %4970 = vpow2.f32 %v1585_v9  ;;  %v5986_v48 = vsub.s32 5, %v5428_v22  ;;  %v5989_v52 = vsub.s32 6, %v5428_v22  ;;  %v5992_v53 = vsub.s32 7, %v5428_v22 }
 0x4c4   : > { %v1558_v8 = vcvt.s32.f32 %v1556_v54  ;;  %4972 = vpow2.f32 %v1587_v11  ;;  %v1557_v21 = vcvt.s32.f32 %v1555_v19 }
 0x4c5   : > { %4974 = vpow2.f32 %v1589_v57 }
 0x4c6   : > { %1559 = vmin.xlane.f32.xlu0 %v1558_v8  ;;  %4976 = vpow2.f32 %v1591_v62 }
 0x4c7   : > { %4978 = vpow2.f32 %v1593_v16 }
 0x4c9   : > { %v4965_v33 = vpop.eup %4964 }
 0x4cb   : > { %v4967_v6 = vpop.eup %4966 }
 0x4cc   : > { %v4969_v34 = vpop.eup %4968  ;;  %v1603_v10 = vrot.slane %v4967_v6, 7 }
 0x4cd   : > { %v4971_v38 = vpop.eup %4970  ;;  %v1605_v0 = vrot.slane %v4969_v34, 6 }
 0x4ce   : > { %v4973_v18 = vpop.eup %4972  ;;  %v1604_v60 = vsel %vm7513_vm5, %v1603_v10, %v4965_v33  ;;  %v1607_v20 = vrot.slane %v4971_v38, 5 }
 0x4cf   : > { %v4975_v31 = vpop.eup %4974  ;;  %v1606_v35 = vsel %vm7512_vm6, %v1605_v0, %v1604_v60  ;;  %v1609_v3 = vrot.slane %v4973_v18, 4  ;;  %v6043_v18 = vld [vmem:[#allocation4 + $0x50] sm:$0xff]  ;;  %v6045_v60 = vld [vmem:[#allocation4 + $0x58] sm:$0xff] }
 0x4d0   : > { %v4977_v24 = vpop.eup %4976  ;;  %v1608_v37 = vsel %vm7511_vm7, %v1607_v20, %v1606_v35  ;;  %v1611_v12 = vrot.slane %v4975_v31, 3 }
 0x4d1   : > { %v4979_v28 = vpop.eup %4978  ;;  %v1610_v42 = vsel %vm7510_vm8, %v1609_v3, %v1608_v37  ;;  %v1613_v44 = vrot.slane %v4977_v24, 2 }
 0x4d2   : > { %v1612_v49 = vsel %vm7509_vm9, %v1611_v12, %v1610_v42  ;;  %v1615_v58 = vrot.slane %v4979_v28, 1 }
 0x4d3   : > { %v1614_v36 = vsel %vm7508_vm10, %v1613_v44, %v1612_v49 }
 0x4d4   : > { %v5978_v51 = vsel %vm7507_vm11, %v1615_v58, %v1614_v36 }
 0x4d5   : > { %7552 = vst [vmem:[#allocation9_spill] sm:$0xff] %v5978_v51 }
 0x553   : > { %v1560_v50 = vpop.xlane.xlu0 %1559 }
 0x554   : > { %vm1561_vm1 = vcmp.eq.f32.partialorder %v1558_v8, %v1560_v50  ;;  %v1566_v5 = vcvt.f32.s32 %v1560_v50 }
 0x555   : > { %v1562_v2 = vsel %vm1561_vm1, %v1557_v21, inf }
 0x556   : > { %1563 = vmin.xlane.f32.xlu0 %v1562_v2  ;;  %v1567_v46 = vshll.u32 %v1566_v5, 16 }
 0x56c   : > { %1823 = vrot.lane.b32.xlu0 %v5712_v29, %s5236_s29  ;;  %v5997_v29 = vadd.s32 8, %v5428_v22 }
 0x5e3   : > { %v1564_v54 = vpop.xlane.xlu0 %1563 }
 0x5e4   : > { %v1565_v17 = vcvt.f32.s32 %v1564_v54 }
 0x5e6   : > { %v5994_v7 = vadd.s32 %v1567_v46, %v1565_v17 }
 0x5e8   : > { %v1627_v8 = vrot.slane %v5994_v7, %v5434_v23  ;;  %v1631_v9 = vrot.slane %v5994_v7, %v5439_v25  ;;  %v1635_v11 = vrot.slane %v5994_v7, %v5442_v26  ;;  %v1639_v57 = vrot.slane %v5994_v7, %v5445_v27 }
 0x5e9   : > { %v1643_v62 = vrot.slane %v5994_v7, %v5983_v43  ;;  %v1647_v16 = vrot.slane %v5994_v7, %v5986_v48  ;;  %v1651_v33 = vrot.slane %v5994_v7, %v5989_v52  ;;  %v1655_v6 = vrot.slane %v5994_v7, %v5992_v53 }
 0x5ea   : > { %vm1656_vm2 = vcmp.eq.s32.totalorder %v5428_v22, %v1627_v8  ;;  %vm1657_vm4 = vcmp.eq.s32.totalorder %v5997_v29, %v1627_v8  ;;  %vm1658_vm13 = vcmp.eq.s32.totalorder %v5428_v22, %v1631_v9  ;;  %vm1659_vm14 = vcmp.eq.s32.totalorder %v5997_v29, %v1631_v9 }
 0x5eb   : > { %vm1660_vm15 = vcmp.eq.s32.totalorder %v5428_v22, %v1635_v11  ;;  %vm1661_vm3 = vcmp.eq.s32.totalorder %v5997_v29, %v1635_v11  ;;  %vm1662_vm12 = vcmp.eq.s32.totalorder %v5428_v22, %v1639_v57  ;;  %vm1663_vm1 = vcmp.eq.s32.totalorder %v5997_v29, %v1639_v57 }
 0x5ec   : > { %vm1664_vm11 = vcmp.eq.s32.totalorder %v5428_v22, %v1643_v62  ;;  %vm1665_vm10 = vcmp.eq.s32.totalorder %v5997_v29, %v1643_v62  ;;  %vm1666_vm9 = vcmp.eq.s32.totalorder %v5428_v22, %v1647_v16  ;;  %vm1667_vm8 = vcmp.eq.s32.totalorder %v5997_v29, %v1647_v16 }
 0x5ed   : > { %vm1668_vm7 = vcmp.eq.s32.totalorder %v5428_v22, %v1651_v33  ;;  %vm1669_vm6 = vcmp.eq.s32.totalorder %v5997_v29, %v1651_v33  ;;  %vm1670_vm5 = vcmp.eq.s32.totalorder %v5428_v22, %v1655_v6  ;;  %vm1671_vm0 = vcmp.eq.s32.totalorder %v5997_v29, %v1655_v6 }
 0x5ee   : > { %v4654_v34 = vsel %vm1656_vm2, 1.0, %v7516_v41  ;;  %v4655_v10 = vsel %vm1657_vm4, 1.0, %v7516_v41  ;;  %v4656_v38 = vsel %vm1658_vm13, 1.0, %v7516_v41  ;;  %v4657_v0 = vsel %vm1659_vm14, 1.0, %v7516_v41 }
 0x5ef   : > { %v4658_v20 = vsel %vm1660_vm15, 1.0, %v7516_v41  ;;  %v4659_v31 = vsel %vm1661_vm3, 1.0, %v7516_v41  ;;  %v4660_v35 = vsel %vm1662_vm12, 1.0, %v7516_v41  ;;  %v4661_v3 = vsel %vm1663_vm1, 1.0, %v7516_v41 }
 0x5f0   : > { %v4662_v24 = vsel %vm1664_vm11, 1.0, %v7516_v41  ;;  %v4663_v37 = vsel %vm1665_vm10, 1.0, %v7516_v41  ;;  %v4664_v12 = vsel %vm1666_vm9, 1.0, %v7516_v41  ;;  %v4665_v28 = vsel %vm1667_vm8, 1.0, %v7516_v41 }
 0x5f1   : > { %v4666_v42 = vsel %vm1668_vm7, 1.0, %v7516_v41  ;;  %v4667_v44 = vsel %vm1669_vm6, 1.0, %v7516_v41  ;;  %v4668_v49 = vsel %vm1670_vm5, 1.0, %v7516_v41  ;;  %v4669_v58 = vsel %vm1671_vm0, 1.0, %v7516_v41 }
 0x5f2   : > { %v1704_v36 = vmul.f32 %v4654_v34, %v6043_v18  ;;  %v1705_v19 = vmul.f32 %v4655_v10, %v6045_v60  ;;  %v1706_v50 = vmul.f32 %v4656_v38, %v6043_v18  ;;  %v1707_v21 = vmul.f32 %v4657_v0, %v6045_v60 }
 0x5f3   : > { %v1708_v2 = vmul.f32 %v4658_v20, %v6043_v18  ;;  %v1709_v5 = vmul.f32 %v4659_v31, %v6045_v60  ;;  %v1710_v54 = vmul.f32 %v4660_v35, %v6043_v18  ;;  %v1711_v46 = vmul.f32 %v4661_v3, %v6045_v60 }
 0x5f4   : > { %v1712_v17 = vmul.f32 %v4662_v24, %v6043_v18  ;;  %v1713_v8 = vmul.f32 %v4663_v37, %v6045_v60  ;;  %v1714_v9 = vmul.f32 %v4664_v12, %v6043_v18  ;;  %v1715_v11 = vmul.f32 %v4665_v28, %v6045_v60 }
 0x5f5   : > { %v1716_v57 = vmul.f32 %v4666_v42, %v6043_v18  ;;  %v1717_v62 = vmul.f32 %v4667_v44, %v6045_v60  ;;  %v1718_v16 = vmul.f32 %v4668_v49, %v6043_v18  ;;  %v1719_v33 = vmul.f32 %v4669_v58, %v6045_v60 }
 0x5f6   : > { %vm7553_vm0 = vcmask 130048  }
 0x5f7   : > { %v1720_v6 = vsel %vm7553_vm0, %v1704_v36, 0.0  ;;  %vm7554_vm5 = vmmov %vm7553_vm0 }
 0x5f8   : > { %v1721_v34 = vsel %vm7554_vm5, %v1705_v19, 0.0  ;;  %vm7555_vm6 = vmmov %vm7553_vm0  ;;  %vm7570_vm5 = vcmask 1042434  }
 0x5f9   : > { %v1729_v10 = vsel %vm7555_vm6, %v1706_v50, 0.0  ;;  %vm7556_vm7 = vmmov %vm7553_vm0  ;;  %v1722_v0 = vadd.f32 %v1721_v34, %v1720_v6  ;;  %vm7571_vm6 = vcmask 1043459  }
 0x5fa   : > { %v1730_v38 = vsel %vm7556_vm7, %v1707_v21, 0.0  ;;  %vm7557_vm8 = vmmov %vm7553_vm0  ;;  %vm7572_vm7 = vcmask 1044484  }
 0x5fb   : > { %v1731_v20 = vadd.f32 %v1730_v38, %v1729_v10  ;;  %v1738_v31 = vsel %vm7557_vm8, %v1708_v2, 0.0  ;;  %vm7558_vm9 = vmmov %vm7553_vm0  ;;  %v1723_v28 = vrot.slane %v1722_v0, 4  ;;  %vm7573_vm8 = vcmask 1045509  }
 0x5fc   : > { %v1739_v35 = vsel %vm7558_vm9, %v1709_v5, 0.0  ;;  %vm7559_vm10 = vmmov %vm7553_vm0  ;;  %vm7574_vm9 = vcmask 1046534  }
 0x5fd   : > { %v1740_v3 = vadd.f32 %v1739_v35, %v1738_v31  ;;  %v1747_v24 = vsel %vm7559_vm10, %v1710_v54, 0.0  ;;  %vm7560_vm11 = vmmov %vm7553_vm0  ;;  %v1732_v42 = vrot.slane %v1731_v20, 4  ;;  %v1724_v21 = vadd.f32 %v1723_v28, %v1722_v0 }
 0x5fe   : > { %v1748_v37 = vsel %vm7560_vm11, %v1711_v46, 0.0  ;;  %vm7561_vm2 = vmmov %vm7553_vm0  ;;  %vm7575_vm10 = vcmask 1047559   ;;  %vm7520_vm11 = vcmask 122880  }
 0x5ff   : > { %v1756_v12 = vsel %vm7561_vm2, %v1712_v17, 0.0  ;;  %v1749_v44 = vadd.f32 %v1748_v37, %v1747_v24  ;;  %vm7562_vm4 = vmmov %vm7553_vm0  ;;  %v1741_v58 = vrot.slane %v1740_v3, 4  ;;  %v1733_v2 = vadd.f32 %v1732_v42, %v1731_v20 }
 0x600   : > { %v1757_v49 = vsel %vm7562_vm4, %v1713_v8, 0.0  ;;  %vm7563_vm13 = vmmov %vm7553_vm0  ;;  %v1725_v10 = vrot.slane %v1724_v21, 2  ;;  %vm7576_vm2 = vcmp.gt.f32.partialorder %v5839_v4, 0.0  ;;  %vm7577_vm4 = vcmp.gt.f32.partialorder %v5864_v59, 0.0 }
 0x601   : > { %v1758_v36 = vadd.f32 %v1757_v49, %v1756_v12  ;;  %v1765_v19 = vsel %vm7563_vm13, %v1714_v9, 0.0  ;;  %vm7564_vm14 = vmmov %vm7553_vm0  ;;  %v1750_v5 = vrot.slane %v1749_v44, 4  ;;  %v1742_v54 = vadd.f32 %v1741_v58, %v1740_v3 }
 0x602   : > { %v1766_v50 = vsel %vm7564_vm14, %v1715_v11, 0.0  ;;  %vm7565_vm15 = vmmov %vm7553_vm0  ;;  %v1734_v38 = vrot.slane %v1733_v2, 2  ;;  %v1726_v11 = vadd.f32 %v1725_v10, %v1724_v21  ;;  %vm7579_vm13 = vcmp.gt.f32.partialorder %v5849_v39, 0.0 }
 0x603   : > { %v1767_v6 = vadd.f32 %v1766_v50, %v1765_v19  ;;  %v1759_v34 = vrot.slane %v1758_v36, 4  ;;  %v1774_v46 = vsel %vm7565_vm15, %v1716_v57, 0.0  ;;  %vm7566_vm3 = vmmov %vm7553_vm0  ;;  %v1751_v31 = vadd.f32 %v1750_v5, %v1749_v44 }
 0x604   : > { %v1775_v17 = vsel %vm7566_vm3, %v1717_v62, 0.0  ;;  %v1743_v35 = vrot.slane %v1742_v54, 2  ;;  %vm7567_vm12 = vmmov %vm7553_vm0  ;;  %v1735_v0 = vadd.f32 %v1734_v38, %v1733_v2  ;;  %v1727_v49 = vrot.slane %v1726_v11, 1 }
 0x605   : > { %v1768_v8 = vrot.slane %v1767_v6, 4  ;;  %v1760_v24 = vadd.f32 %v1759_v34, %v1758_v36  ;;  %v1776_v37 = vadd.f32 %v1775_v17, %v1774_v46  ;;  %v1783_v9 = vsel %vm7567_vm12, %v1718_v16, 0.0  ;;  %vm7568_vm1 = vmmov %vm7553_vm0 }
 0x606   : > { %v1752_v20 = vrot.slane %v1751_v31, 2  ;;  %v1744_v28 = vadd.f32 %v1743_v35, %v1742_v54  ;;  %v1784_v57 = vsel %vm7568_vm1, %v1719_v33, 0.0  ;;  %v1736_v62 = vrot.slane %v1735_v0, 1 }
 0x607   : > { %v1769_v12 = vadd.f32 %v1768_v8, %v1767_v6  ;;  %v1761_v3 = vrot.slane %v1760_v24, 2  ;;  %v1777_v42 = vrot.slane %v1776_v37, 4  ;;  %v1785_v36 = vadd.f32 %v1784_v57, %v1783_v9 }
 0x608   : > { %v1753_v58 = vadd.f32 %v1752_v20, %v1751_v31  ;;  %v1745_v44 = vrot.slane %v1744_v28, 1  ;;  %v1728_v34 = vadd.f32 %v1727_v49, %v1726_v11  ;;  %v1737_v46 = vadd.f32 %v1736_v62, %v1735_v0 }
 0x609   : > { %v1770_v19 = vrot.slane %v1769_v12, 2  ;;  %v1762_v50 = vadd.f32 %v1761_v3, %v1760_v24  ;;  %v1778_v5 = vadd.f32 %v1777_v42, %v1776_v37  ;;  %v1786_v54 = vrot.slane %v1785_v36, 4 }
 0x60a   : > { %v1754_v16 = vrot.slane %v1753_v58, 1  ;;  %v1746_v2 = vadd.f32 %v1745_v44, %v1744_v28  ;;  %vm7569_vm0 = vcmask 1041409   ;;  %vm7580_vm14 = vcmp.gt.f32.partialorder %v5842_v32, 0.0 }
 0x60b   : > { %v1771_v21 = vadd.f32 %v1770_v19, %v1769_v12  ;;  %v1763_v17 = vrot.slane %v1762_v50, 1  ;;  %v1779_v6 = vrot.slane %v1778_v5, 2  ;;  %v1800_v33 = vsel %vm7569_vm0, %v1737_v46, %v1728_v34  ;;  %v1824_v19 = vpop.permute.xlu0 %1823  ;;  %vm7585_vm0 = vmmov %vm7570_vm5 }
 0x60c   : > { %v1755_v10 = vadd.f32 %v1754_v16, %v1753_v58  ;;  %v1787_v31 = vadd.f32 %v1786_v54, %v1785_v36  ;;  %v1801_v20 = vsel %vm7570_vm5, %v1746_v2, %v1800_v33  ;;  %vm7581_vm15 = vcmp.gt.f32.partialorder %v5845_v14, 0.0  ;;  %vm7586_vm5 = vmmov %vm7571_vm6 }
 0x60d   : > { %v1772_v38 = vrot.slane %v1771_v21, 1  ;;  %v1764_v8 = vadd.f32 %v1763_v17, %v1762_v50  ;;  %v1780_v35 = vadd.f32 %v1779_v6, %v1778_v5  ;;  %vm7582_vm3 = vcmp.gt.f32.partialorder %v5852_v40, 0.0 }
 0x60e   : > { %v1802_v24 = vsel %vm7571_vm6, %v1755_v10, %v1801_v20  ;;  %v1788_v11 = vrot.slane %v1787_v31, 2  ;;  %vm7583_vm12 = vcmp.gt.f32.partialorder %v5855_v45, 0.0  ;;  %vm7584_vm1 = vcmp.gt.f32.partialorder %v5861_v47, 0.0  ;;  %vm7587_vm6 = vmmov %vm7572_vm7 }
 0x60f   : > { %v1773_v37 = vadd.f32 %v1772_v38, %v1771_v21  ;;  %v1781_v9 = vrot.slane %v1780_v35, 1  ;;  %v1803_v0 = vsel %vm7572_vm7, %v1764_v8, %v1802_v24  ;;  %vm7588_vm7 = vmmov %vm7573_vm8 }
 0x610   : > { %v1789_v12 = vadd.f32 %v1788_v11, %v1787_v31 }
 0x611   : > { %v1804_v28 = vsel %vm7573_vm8, %v1773_v37, %v1803_v0  ;;  %v1782_v3 = vadd.f32 %v1781_v9, %v1780_v35  ;;  %vm7529_vm8 = vcmask 130049  }
 0x612   : > { %v1790_v42 = vrot.slane %v1789_v12, 1 }
 0x613   : > { %v1805_v57 = vsel %vm7574_vm9, %v1782_v3, %v1804_v28 }
 0x614   : > { %v1791_v49 = vadd.f32 %v1790_v42, %v1789_v12 }
 0x616   : > { %v1806_v62 = vsel %vm7575_vm10, %v1791_v49, %v1805_v57 }
 0x617   : > { %v6123_v58 = vadd.f32 %v1806_v62, %v5836_v30 }
 0x619   : > { %v1826_v44 = vadd.f32 %v1824_v19, %v6123_v58 }
 0x61b   : > { %v1834_v50 = vrot.slane %v1826_v44, 6  ;;  %v1828_v5 = vrot.slane %v1826_v44, 7  ;;  %v1829_v36 = vrot.slane %v1826_v44, 1  ;;  %v1830_v34 = vrot.slane %v1826_v44, 2 }
 0x61c   : > { %v1831_v46 = vrot.slane %v1826_v44, 3  ;;  %v1832_v16 = vrot.slane %v1826_v44, 4  ;;  %v1833_v21 = vrot.slane %v1826_v44, 5  ;;  %v1844_v2 = vsel %vm7576_vm2, %v1826_v44, -1e+09 }
 0x61d   : > { %v6130_v17 = vsel %vm7577_vm4, %v1834_v50, -1e+09  ;;  %v1843_v6 = vsel %vm7579_vm13, %v1828_v5, -1e+09  ;;  %v1845_v54 = vsel %vm7580_vm14, %v1829_v36, -1e+09 }
 0x61e   : > { %7578 = vst [vmem:[#allocation10_spill] sm:$0xff] %v6130_v17  ;;  %v1871_v10 = vrot.slane %v6130_v17, 1  ;;  %v1846_v38 = vsel %vm7581_vm15, %v1830_v34, -1e+09  ;;  %v1847_v33 = vsel %vm7582_vm3, %v1831_v46, -1e+09 }
 0x61f   : > { %v1859_v8 = vrot.slane %v1844_v2, 7  ;;  %v1848_v35 = vsel %vm7583_vm12, %v1832_v16, -1e+09  ;;  %v1861_v31 = vrot.slane %v1845_v54, 6  ;;  %v1863_v20 = vrot.slane %v1846_v38, 5 }
 0x620   : > { %v1879_v24 = vsel %vm7520_vm11, %v1871_v10, -inf  ;;  %v1849_v37 = vsel %vm7584_vm1, %v1833_v21, -1e+09  ;;  %v1865_v0 = vrot.slane %v1847_v33, 4  ;;  %v1867_v28 = vrot.slane %v1848_v35, 3 }
 0x621   : > { %v1860_v9 = vsel %vm7585_vm0, %v1859_v8, %v1843_v6  ;;  %1880 = vmax.xlane.f32.xlu0 %v1879_v24  ;;  %v1869_v42 = vrot.slane %v1849_v37, 2 }
 0x622   : > { %v1862_v11 = vsel %vm7586_vm5, %v1861_v31, %v1860_v9 }
 0x623   : > { %v1864_v12 = vsel %vm7587_vm6, %v1863_v20, %v1862_v11 }
 0x624   : > { %v1866_v3 = vsel %vm7588_vm7, %v1865_v0, %v1864_v12 }
 0x625   : > { %v1868_v57 = vsel %vm7574_vm9, %v1867_v28, %v1866_v3 }
 0x626   : > { %v1870_v49 = vsel %vm7575_vm10, %v1869_v42, %v1868_v57 }
 0x627   : > { %v1875_v62 = vsel %vm7529_vm8, %v1870_v49, -inf }
 0x628   : > { %1876 = vmax.xlane.f32.xlu1 %v1875_v62 }
 0x637   : > { %2226 = vrot.lane.b32.xlu0 %v5731_v1, %s5236_s29 }
 0x63b   : > { %2632 = vrot.lane.b32.xlu0 %v5761_v55, %s5236_s29 }
 0x6ae   : > { %v6157_v19 = vpop.xlane.xlu0 %1880 }
 0x6af   : > { %7589 = vst [vmem:[#allocation11_spill] sm:$0xff] %v6157_v19  ;;  %v7515_v44 = vrot.slane %v6157_v19, 7 }
 0x6b1   : > { %vm6163_vm2 = vcmp.ge.f32.partialorder %v6130_v17, %v7515_v44 }
 0x6b2   : > { %v1914_v55 = vsel %vm6163_vm2, %v5587_v56, 16  ;;  %vm7600_vm2 = vmmov %vm7585_vm0 }
 0x6b3   : > { %v1927_v12 = vrot.slane %v1914_v55, 1 }
 0x6b5   : > { %v1877_v50 = vpop.xlane.xlu1 %1876 }
 0x6b6   : > { %v1884_v36 = vrot.slane %v1877_v50, 1  ;;  %v1885_v34 = vrot.slane %v1877_v50, 2  ;;  %v1886_v46 = vrot.slane %v1877_v50, 3  ;;  %v1887_v16 = vrot.slane %v1877_v50, 4 }
 0x6b7   : > { %v1888_v1 = vrot.slane %v1877_v50, 5  ;;  %v1889_v21 = vrot.slane %v1877_v50, 6  ;;  %v1962_v10 = vsub.f32 %v1843_v6, %v1877_v50  ;;  %vm1899_vm14 = vcmp.ge.f32.partialorder %v1843_v6, %v1877_v50 }
 0x6b8   : > { %vm1900_vm4 = vcmp.ge.f32.partialorder %v1844_v2, %v1884_v36  ;;  %vm1901_vm13 = vcmp.ge.f32.partialorder %v1845_v54, %v1885_v34  ;;  %vm6170_vm15 = vcmp.ge.f32.partialorder %v1846_v38, %v1886_v46  ;;  %vm6174_vm3 = vcmp.ge.f32.partialorder %v1847_v33, %v1887_v16 }
 0x6b9   : > { %vm6178_vm12 = vcmp.ge.f32.partialorder %v1848_v35, %v1888_v1  ;;  %vm6182_vm1 = vcmp.ge.f32.partialorder %v1849_v37, %v1889_v21  ;;  %v1908_v9 = vsel %vm1900_vm4, %v5587_v56, 16  ;;  %v1909_v6 = vsel %vm1901_vm13, %v5587_v56, 16  ;;  %vm7601_vm4 = vmmov %vm7586_vm5 }
 0x6ba   : > { %v1910_v11 = vsel %vm6170_vm15, %v5587_v56, 16  ;;  %v1911_v0 = vsel %vm6174_vm3, %v5587_v56, 16  ;;  %v1970_v28 = vmul.f32 1.442695, %v1962_v10  ;;  %v1915_v3 = vrot.slane %v1908_v9, 7  ;;  %vm7602_vm13 = vmmov %vm7587_vm6 }
 0x6bb   : > { %v1917_v42 = vrot.slane %v1909_v6, 6  ;;  %v1907_v57 = vsel %vm1899_vm14, %v5587_v56, 16  ;;  %v1912_v49 = vsel %vm6178_vm12, %v5587_v56, 16  ;;  %v1913_v62 = vsel %vm6182_vm1, %v5587_v56, 16  ;;  %vm7603_vm14 = vmmov %vm7588_vm7 }
 0x6bc   : > { %v1963_v50 = vsub.f32 %v1844_v2, %v1884_v36  ;;  %v1916_v5 = vsel %vm7585_vm0, %v1915_v3, %v1907_v57  ;;  %v1919_v8 = vrot.slane %v1910_v11, 5  ;;  %v1921_v31 = vrot.slane %v1911_v0, 4  ;;  %vm7604_vm15 = vmmov %vm7574_vm9 }
 0x6bd   : > { %v1964_v44 = vsub.f32 %v1845_v54, %v1885_v34  ;;  %v1918_v10 = vsel %vm7586_vm5, %v1917_v42, %v1916_v5  ;;  %v1965_v55 = vsub.f32 %v1846_v38, %v1886_v46  ;;  %v1966_v9 = vsub.f32 %v1847_v33, %v1887_v16  ;;  %vm7605_vm3 = vmmov %vm7575_vm10 }
 0x6be   : > { %v1967_v6 = vsub.f32 %v1848_v35, %v1888_v1  ;;  %v1920_v41 = vsel %vm7587_vm6, %v1919_v8, %v1918_v10  ;;  %v1923_v51 = vrot.slane %v1912_v49, 3  ;;  %v1925_v20 = vrot.slane %v1913_v62, 2 }
 0x6bf   : > { %v1968_v17 = vsub.f32 %v1849_v37, %v1889_v21  ;;  %v1922_v19 = vsel %vm7588_vm7, %v1921_v31, %v1920_v41  ;;  %v1972_v24 = vmul.f32 1.442695, %v1963_v50  ;;  %v1974_v15 = vmul.f32 1.442695, %v1964_v44 }
 0x6c0   : > { %v1976_v2 = vmul.f32 1.442695, %v1965_v55  ;;  %4980 = vpow2.f32 %v1970_v28  ;;  %v1924_v36 = vsel %vm7574_vm9, %v1923_v51, %v1922_v19  ;;  %v1978_v11 = vmul.f32 1.442695, %v1966_v9 }
 0x6c1   : > { %v1926_v54 = vsel %vm7575_vm10, %v1925_v20, %v1924_v36  ;;  %4982 = vpow2.f32 %v1972_v24  ;;  %v1980_v38 = vmul.f32 1.442695, %v1967_v6  ;;  %v1943_v35 = vsel %vm7520_vm11, %v1927_v12, 2147483647 }
 0x6c2   : > { %v1928_v33 = vsel %vm7529_vm8, %v1926_v54, 2147483647  ;;  %4984 = vpow2.f32 %v1974_v15  ;;  %v1982_v34 = vmul.f32 1.442695, %v1968_v17  ;;  %v1945_v44 = vshra.s32 %v1943_v35, 16 }
 0x6c3   : > { %v1930_v37 = vshra.s32 %v1928_v33, 16  ;;  %4986 = vpow2.f32 %v1976_v2  ;;  %v1929_v10 = vand.u32 65535, %v1928_v33  ;;  %v1944_v6 = vand.u32 65535, %v1943_v35 }
 0x6c4   : > { %4988 = vpow2.f32 %v1978_v11  ;;  %v1947_v51 = vcvt.s32.f32 %v1945_v44  ;;  %vm1569_vm0 = vcmp.eq.s32.totalorder %v5587_v56, 0  ;;  %vm1958_vm5 = vcmp.eq.s32.totalorder %v5587_v56, 1 }
 0x6c5   : > { %v1932_v41 = vcvt.s32.f32 %v1930_v37  ;;  %4990 = vpow2.f32 %v1980_v38  ;;  %v1931_v9 = vcvt.s32.f32 %v1929_v10  ;;  %v1946_v2 = vcvt.s32.f32 %v1944_v6 }
 0x6c6   : > { %4992 = vpow2.f32 %v1982_v34  ;;  %v6222_v33 = vsel %vm1569_vm0, %v5994_v7, 0 }
 0x6c7   : > { %1933 = vmin.xlane.f32.xlu1 %v1932_v41 }
 0x6ca   : > { %v4981_v19 = vpop.eup %4980 }
 0x6cb   : > { %v4983_v46 = vpop.eup %4982  ;;  %1948 = vmin.xlane.f32.xlu1 %v1947_v51 }
 0x6cc   : > { %v4985_v16 = vpop.eup %4984  ;;  %v1994_v1 = vrot.slane %v4983_v46, 7 }
 0x6cd   : > { %v4987_v21 = vpop.eup %4986  ;;  %v1996_v0 = vrot.slane %v4985_v16, 6 }
 0x6ce   : > { %v4989_v28 = vpop.eup %4988  ;;  %v1995_v15 = vsel %vm7600_vm2, %v1994_v1, %v4981_v19  ;;  %v1998_v17 = vrot.slane %v4987_v21, 5 }
 0x6cf   : > { %v4991_v12 = vpop.eup %4990  ;;  %v1997_v3 = vsel %vm7601_vm4, %v1996_v0, %v1995_v15  ;;  %v2000_v42 = vrot.slane %v4989_v28, 4  ;;  %v7606_v0 = vmov 0.0  }
 0x6d0   : > { %v4993_v57 = vpop.eup %4992  ;;  %v1999_v49 = vsel %vm7602_vm13, %v1998_v17, %v1997_v3  ;;  %v2002_v62 = vrot.slane %v4991_v12, 3 }
 0x6d1   : > { %v2001_v50 = vsel %vm7603_vm14, %v2000_v42, %v1999_v49  ;;  %v2004_v5 = vrot.slane %v4993_v57, 2 }
 0x6d2   : > { %v2003_v8 = vsel %vm7604_vm15, %v2002_v62, %v2001_v50 }
 0x6d3   : > { %v6215_v31 = vsel %vm7605_vm3, %v2004_v5, %v2003_v8 }
 0x754   : > { %v1934_v55 = vpop.xlane.xlu1 %1933 }
 0x755   : > { %vm1935_vm12 = vcmp.eq.f32.partialorder %v1932_v41, %v1934_v55  ;;  %v1940_v11 = vcvt.f32.s32 %v1934_v55  ;;  %v7521_v41 = vrot.slane %v6222_v33, 7 }
 0x756   : > { %v1936_v20 = vsel %vm1935_vm12, %v1931_v9, inf }
 0x757   : > { %1937 = vmin.xlane.f32.xlu1 %v1936_v20  ;;  %v1941_v38 = vshll.u32 %v1940_v11, 16 }
 0x758   : > { %v6217_v24 = vpop.xlane.xlu1 %1948 }
 0x759   : > { %vm1950_vm1 = vcmp.eq.f32.partialorder %v1947_v51, %v6217_v24  ;;  %v1955_v37 = vcvt.f32.s32 %v6217_v24  ;;  %v7621_v24 = vrot.slane %v6222_v33, 7 }
 0x75a   : > { %v1951_v36 = vsel %vm1950_vm1, %v1946_v2, inf }
 0x75b   : > { %1952 = vmin.xlane.f32.xlu1 %v1951_v36 }
 0x7e4   : > { %v1938_v54 = vpop.xlane.xlu1 %1937 }
 0x7e5   : > { %v1939_v34 = vcvt.f32.s32 %v1938_v54 }
 0x7e7   : > { %v1942_v35 = vadd.s32 %v1941_v38, %v1939_v34 }
 0x7e9   : > { %v2030_v44 = vrot.slane %v1942_v35, %v5439_v25  ;;  %v2034_v51 = vrot.slane %v1942_v35, %v5442_v26  ;;  %v2038_v19 = vrot.slane %v1942_v35, %v5445_v27  ;;  %v2042_v46 = vrot.slane %v1942_v35, %v5983_v43 }
 0x7ea   : > { %v2046_v16 = vrot.slane %v1942_v35, %v5986_v48  ;;  %v2050_v7 = vrot.slane %v1942_v35, %v5989_v52  ;;  %v2054_v1 = vrot.slane %v1942_v35, %v5992_v53  ;;  %v6238_v21 = vsel %vm1958_vm5, %v1942_v35, %v7521_v41 }
 0x7eb   : > { %vm2059_vm6 = vcmp.eq.s32.totalorder %v5428_v22, %v2030_v44  ;;  %vm2060_vm7 = vcmp.eq.s32.totalorder %v5997_v29, %v2030_v44  ;;  %vm2061_vm9 = vcmp.eq.s32.totalorder %v5428_v22, %v2034_v51  ;;  %vm2062_vm10 = vcmp.eq.s32.totalorder %v5997_v29, %v2034_v51 }
 0x7ec   : > { %vm2063_vm2 = vcmp.eq.s32.totalorder %v5428_v22, %v2038_v19  ;;  %vm2064_vm4 = vcmp.eq.s32.totalorder %v5997_v29, %v2038_v19  ;;  %vm2065_vm13 = vcmp.eq.s32.totalorder %v5428_v22, %v2042_v46  ;;  %vm2066_vm14 = vcmp.eq.s32.totalorder %v5997_v29, %v2042_v46 }
 0x7ed   : > { %vm2067_vm15 = vcmp.eq.s32.totalorder %v5428_v22, %v2046_v16  ;;  %vm2068_vm3 = vcmp.eq.s32.totalorder %v5997_v29, %v2046_v16  ;;  %vm2069_vm12 = vcmp.eq.s32.totalorder %v5428_v22, %v2050_v7  ;;  %vm2070_vm1 = vcmp.eq.s32.totalorder %v5997_v29, %v2050_v7 }
 0x7ee   : > { %vm2071_vm0 = vcmp.eq.s32.totalorder %v5428_v22, %v2054_v1  ;;  %vm2072_vm11 = vcmp.eq.s32.totalorder %v5997_v29, %v2054_v1  ;;  %v4670_v28 = vsel %vm2059_vm6, 1.0, %v7606_v0  ;;  %v4671_v15 = vsel %vm2060_vm7, 1.0, %v7606_v0 }
 0x7ef   : > { %v4672_v17 = vsel %vm2061_vm9, 1.0, %v7606_v0  ;;  %v4673_v12 = vsel %vm2062_vm10, 1.0, %v7606_v0  ;;  %v4674_v3 = vsel %vm2063_vm2, 1.0, %v7606_v0  ;;  %v4675_v42 = vsel %vm2064_vm4, 1.0, %v7606_v0 }
 0x7f0   : > { %v4676_v57 = vsel %vm2065_vm13, 1.0, %v7606_v0  ;;  %v4677_v49 = vsel %vm2066_vm14, 1.0, %v7606_v0  ;;  %v4678_v62 = vsel %vm2067_vm15, 1.0, %v7606_v0  ;;  %v4679_v50 = vsel %vm2068_vm3, 1.0, %v7606_v0 }
 0x7f1   : > { %v4680_v5 = vsel %vm2069_vm12, 1.0, %v7606_v0  ;;  %v4681_v8 = vsel %vm2070_vm1, 1.0, %v7606_v0  ;;  %v4682_v10 = vsel %vm2071_vm0, 1.0, %v7606_v0  ;;  %v4683_v55 = vsel %vm2072_vm11, 1.0, %v7606_v0 }
 0x7f2   : > { %v2107_v9 = vmul.f32 %v4670_v28, %v6043_v18  ;;  %v2108_v6 = vmul.f32 %v4671_v15, %v6045_v60  ;;  %v2109_v20 = vmul.f32 %v4672_v17, %v6043_v18  ;;  %v2110_v2 = vmul.f32 %v4673_v12, %v6045_v60 }
 0x7f3   : > { %v2111_v36 = vmul.f32 %v4674_v3, %v6043_v18  ;;  %v2112_v11 = vmul.f32 %v4675_v42, %v6045_v60  ;;  %v2113_v54 = vmul.f32 %v4676_v57, %v6043_v18  ;;  %v2114_v38 = vmul.f32 %v4677_v49, %v6045_v60 }
 0x7f4   : > { %v2115_v34 = vmul.f32 %v4678_v62, %v6043_v18  ;;  %v2116_v35 = vmul.f32 %v4679_v50, %v6045_v60  ;;  %v2117_v44 = vmul.f32 %v4680_v5, %v6043_v18  ;;  %v2118_v51 = vmul.f32 %v4681_v8, %v6045_v60 }
 0x7f5   : > { %vm7607_vm11 = vcmask 130048   ;;  %v2119_v57 = vmul.f32 %v4682_v10, %v6043_v18  ;;  %v2120_v50 = vmul.f32 %v4683_v55, %v6045_v60 }
 0x7f6   : > { %v2123_v19 = vsel %vm7607_vm11, %v2107_v9, 0.0  ;;  %vm7608_vm6 = vmmov %vm7607_vm11  ;;  %vm2362_vm11 = vcmask 1040384  }
 0x7f7   : > { %v2124_v46 = vsel %vm7608_vm6, %v2108_v6, 0.0  ;;  %vm7609_vm7 = vmmov %vm7608_vm6 }
 0x7f8   : > { %v2132_v16 = vsel %vm7609_vm7, %v2109_v20, 0.0  ;;  %vm7610_vm9 = vmmov %vm7608_vm6  ;;  %v2125_v1 = vadd.f32 %v2124_v46, %v2123_v19 }
 0x7f9   : > { %v2133_v7 = vsel %vm7610_vm9, %v2110_v2, 0.0  ;;  %vm7611_vm10 = vmmov %vm7608_vm6  ;;  %vm7622_vm9 = vcmask 1041409  }
 0x7fa   : > { %v2134_v28 = vadd.f32 %v2133_v7, %v2132_v16  ;;  %v2141_v15 = vsel %vm7611_vm10, %v2111_v36, 0.0  ;;  %vm7612_vm2 = vmmov %vm7608_vm6  ;;  %v2126_v49 = vrot.slane %v2125_v1, 4 }
 0x7fb   : > { %v2142_v17 = vsel %vm7612_vm2, %v2112_v11, 0.0  ;;  %vm7613_vm4 = vmmov %vm7612_vm2 }
 0x7fc   : > { %v2143_v12 = vadd.f32 %v2142_v17, %v2141_v15  ;;  %v2150_v3 = vsel %vm7613_vm4, %v2113_v54, 0.0  ;;  %vm7614_vm13 = vmmov %vm7612_vm2  ;;  %v2135_v62 = vrot.slane %v2134_v28, 4  ;;  %v2127_v2 = vadd.f32 %v2126_v49, %v2125_v1 }
 0x7fd   : > { %v2151_v42 = vsel %vm7614_vm13, %v2114_v38, 0.0  ;;  %vm7615_vm14 = vmmov %vm7612_vm2  ;;  %vm7626_vm4 = vcmask 1043459   ;;  %vm7627_vm13 = vcmask 1044484  }
 0x7fe   : > { %v2152_v5 = vadd.f32 %v2151_v42, %v2150_v3  ;;  %v2144_v8 = vrot.slane %v2143_v12, 4  ;;  %v2159_v9 = vsel %vm7615_vm14, %v2115_v34, 0.0  ;;  %vm7616_vm15 = vmmov %vm7612_vm2  ;;  %v2136_v36 = vadd.f32 %v2135_v62, %v2134_v28  ;;  %v1953_v34 = vpop.xlane.xlu1 %1952 }
 0x7ff   : > { %v2160_v6 = vsel %vm7616_vm15, %v2116_v35, 0.0  ;;  %vm7617_vm3 = vmmov %vm7612_vm2  ;;  %v2128_v55 = vrot.slane %v2127_v2, 2  ;;  %vm7628_vm14 = vcmask 1045509   ;;  %vm7629_vm15 = vcmask 1046534  }
 0x800   : > { %v2168_v20 = vsel %vm7617_vm3, %v2117_v44, 0.0  ;;  %v2153_v11 = vrot.slane %v2152_v5, 4  ;;  %v2161_v54 = vadd.f32 %v2160_v6, %v2159_v9  ;;  %v2145_v19 = vadd.f32 %v2144_v8, %v2143_v12  ;;  %vm7618_vm12 = vmmov %vm7612_vm2 }
 0x801   : > { %v2169_v38 = vsel %vm7618_vm12, %v2118_v51, 0.0  ;;  %vm7619_vm1 = vmmov %vm7612_vm2  ;;  %v2137_v16 = vrot.slane %v2136_v36, 2  ;;  %v1956_v44 = vshll.u32 %v1955_v37, 16  ;;  %v2129_v1 = vadd.f32 %v2128_v55, %v2127_v2 }
 0x802   : > { %v2177_v10 = vsel %vm7619_vm1, %v2119_v57, 0.0  ;;  %vm7620_vm0 = vmmov %vm7619_vm1  ;;  %v2154_v7 = vadd.f32 %v2153_v11, %v2152_v5  ;;  %v2162_v15 = vrot.slane %v2161_v54, 4  ;;  %v2146_v17 = vrot.slane %v2145_v19, 2 }
 0x803   : > { %v2178_v46 = vsel %vm7620_vm0, %v2120_v50, 0.0  ;;  %v2170_v35 = vadd.f32 %v2169_v38, %v2168_v20  ;;  %v2138_v28 = vadd.f32 %v2137_v16, %v2136_v36  ;;  %v1954_v57 = vcvt.f32.s32 %v1953_v34  ;;  %vm7624_vm10 = vmmov %vm7620_vm0 }
 0x804   : > { %v2179_v3 = vadd.f32 %v2178_v46, %v2177_v10  ;;  %v2163_v12 = vadd.f32 %v2162_v15, %v2161_v54  ;;  %v2147_v42 = vadd.f32 %v2146_v17, %v2145_v19  ;;  %v2155_v51 = vrot.slane %v2154_v7, 2  ;;  %vm7625_vm2 = vmmov %vm7620_vm0 }
 0x805   : > { %v2171_v49 = vrot.slane %v2170_v35, 4  ;;  %v2130_v62 = vrot.slane %v2129_v1, 1  ;;  %v2139_v50 = vrot.slane %v2138_v28, 1  ;;  %v1957_v5 = vadd.s32 %v1956_v44, %v1954_v57 }
 0x806   : > { %v2180_v8 = vrot.slane %v2179_v3, 4  ;;  %v2148_v6 = vrot.slane %v2147_v42, 1  ;;  %v2164_v11 = vrot.slane %v2163_v12, 2  ;;  %v2156_v38 = vadd.f32 %v2155_v51, %v2154_v7 }
 0x807   : > { %v2172_v9 = vadd.f32 %v2171_v49, %v2170_v35  ;;  %v2131_v41 = vadd.f32 %v2130_v62, %v2129_v1  ;;  %v2140_v20 = vadd.f32 %v2139_v50, %v2138_v28  ;;  %v1961_v37 = vsel %vm1958_vm5, %v1957_v5, %v7621_v24 }
 0x808   : > { %v2181_v2 = vadd.f32 %v2180_v8, %v2179_v3  ;;  %v2058_v36 = vrot.slane %v1957_v5, %v5434_v23  ;;  %v2363_v19 = vrot.slane %v6238_v21, 7  ;;  %v2364_v10 = vrot.slane %v1961_v37, 7 }
 0x809   : > { %v2173_v54 = vrot.slane %v2172_v9, 2  ;;  %v2149_v46 = vadd.f32 %v2148_v6, %v2147_v42  ;;  %v2165_v55 = vadd.f32 %v2164_v11, %v2163_v12  ;;  %v2157_v16 = vrot.slane %v2156_v38, 1 }
 0x80a   : > { %vm2073_vm6 = vcmp.eq.s32.totalorder %v5428_v22, %v2058_v36  ;;  %vm2074_vm7 = vcmp.eq.s32.totalorder %v5997_v29, %v2058_v36  ;;  %v2203_v33 = vsel %vm7622_vm9, %v2140_v20, %v2131_v41  ;;  %v2182_v34 = vrot.slane %v2181_v2, 2 }
 0x80b   : > { %v4684_v7 = vsel %vm2073_vm6, 1.0, %v7606_v0  ;;  %v4685_v15 = vsel %vm2074_vm7, 1.0, %v7606_v0  ;;  %v6314_v3 = vsel %vm2362_vm11, %v2363_v19, %v2364_v10  ;;  %v2174_v44 = vadd.f32 %v2173_v54, %v2172_v9  ;;  %v2227_v10 = vpop.permute.xlu0 %2226 }
 0x80c   : > { %v2121_v17 = vmul.f32 %v4684_v7, %v6043_v18  ;;  %v2122_v35 = vmul.f32 %v4685_v15, %v6045_v60  ;;  %v2166_v1 = vrot.slane %v2165_v55, 1  ;;  %vm7623_vm5 = vcmask 1042434  }
 0x80d   : > { %v2204_v28 = vsel %vm7623_vm5, %v2149_v46, %v2203_v33  ;;  %v2158_v42 = vadd.f32 %v2157_v16, %v2156_v38  ;;  %v2183_v49 = vadd.f32 %v2182_v34, %v2181_v2  ;;  %v2175_v57 = vrot.slane %v2174_v44, 1 }
 0x80e   : > { %v2186_v41 = vsel %vm7624_vm10, %v2121_v17, 0.0  ;;  %v2187_v12 = vsel %vm7625_vm2, %v2122_v35, 0.0  ;;  %v2167_v62 = vadd.f32 %v2166_v1, %v2165_v55  ;;  %vm7630_vm3 = vcmask 1047559   ;;  %vm7638_vm10 = vmmov %vm7626_vm4 }
 0x80f   : > { %v2188_v51 = vadd.f32 %v2187_v12, %v2186_v41  ;;  %v2205_v18 = vsel %vm7626_vm4, %v2158_v42, %v2204_v28  ;;  %v2184_v8 = vrot.slane %v2183_v49, 1  ;;  %v2176_v9 = vadd.f32 %v2175_v57, %v2174_v44  ;;  %vm7640_vm4 = vmmov %vm7627_vm13 }
 0x810   : > { %v2206_v5 = vsel %vm7627_vm13, %v2167_v62, %v2205_v18  ;;  %vm7631_vm12 = vcmp.gt.f32.partialorder %v5842_v32, 0.0  ;;  %vm7632_vm1 = vcmp.gt.f32.partialorder %v5839_v4, 0.0  ;;  %vm7633_vm0 = vcmp.gt.f32.partialorder %v5845_v14, 0.0 }
 0x811   : > { %v2189_v60 = vrot.slane %v2188_v51, 4  ;;  %v2207_v11 = vsel %vm7628_vm14, %v2176_v9, %v2206_v5  ;;  %v2185_v24 = vadd.f32 %v2184_v8, %v2183_v49  ;;  %vm7634_vm6 = vcmp.gt.f32.partialorder %v5849_v39, 0.0 }
 0x812   : > { %vm7635_vm7 = vcmp.gt.f32.partialorder %v5852_v40, 0.0  ;;  %vm7636_vm9 = vcmp.gt.f32.partialorder %v5855_v45, 0.0  ;;  %vm7637_vm5 = vcmp.gt.f32.partialorder %v5861_v47, 0.0  ;;  %vm7639_vm2 = vcmp.gt.f32.partialorder %v5864_v59, 0.0 }
 0x813   : > { %v2190_v50 = vadd.f32 %v2189_v60, %v2188_v51  ;;  %v2208_v38 = vsel %vm7629_vm15, %v2185_v24, %v2207_v11  ;;  %vm7528_vm13 = vcmask 130050  }
 0x815   : > { %v2191_v6 = vrot.slane %v2190_v50, 2 }
 0x817   : > { %v2192_v20 = vadd.f32 %v2191_v6, %v2190_v50 }
 0x819   : > { %v2193_v37 = vrot.slane %v2192_v20, 1 }
 0x81b   : > { %v2194_v36 = vadd.f32 %v2193_v37, %v2192_v20 }
 0x81d   : > { %v2209_v2 = vsel %vm7630_vm3, %v2194_v36, %v2208_v38 }
 0x81e   : > { %v6325_v54 = vadd.f32 %v2209_v2, %v6123_v58 }
 0x820   : > { %v2229_v46 = vadd.f32 %v2227_v10, %v6325_v54 }
 0x822   : > { %v2231_v55 = vrot.slane %v2229_v46, 6  ;;  %v2232_v16 = vrot.slane %v2229_v46, 7  ;;  %v2233_v33 = vrot.slane %v2229_v46, 1  ;;  %v2234_v7 = vrot.slane %v2229_v46, 2 }
 0x823   : > { %v2235_v15 = vrot.slane %v2229_v46, 3  ;;  %v6330_v34 = vsel %vm7631_vm12, %v2229_v46, -1e+09  ;;  %v2236_v17 = vrot.slane %v2229_v46, 4  ;;  %v2237_v35 = vrot.slane %v2229_v46, 5 }
 0x824   : > { %v2247_v44 = vsel %vm7632_vm1, %v2232_v16, -1e+09  ;;  %v6336_v58 = vsel %vm7633_vm0, %v2233_v33, -1e+09  ;;  %v2246_v1 = vsel %vm7634_vm6, %v2231_v55, -1e+09 }
 0x825   : > { %v6342_v28 = vsel %vm7635_vm7, %v2234_v7, -1e+09  ;;  %v2262_v41 = vrot.slane %v2247_v44, 7  ;;  %v6346_v12 = vsel %vm7636_vm9, %v2235_v15, -1e+09  ;;  %v2264_v42 = vrot.slane %v6330_v34, 6 }
 0x826   : > { %v2252_v51 = vsel %vm7637_vm5, %v2236_v17, -1e+09  ;;  %v2266_v57 = vrot.slane %v6336_v58, 5  ;;  %v2253_v18 = vsel %vm7639_vm2, %v2237_v35, -1e+09  ;;  %v2268_v62 = vrot.slane %v6342_v28, 4 }
 0x827   : > { %v2263_v49 = vsel %vm7638_vm10, %v2262_v41, %v2246_v1  ;;  %v2270_v8 = vrot.slane %v6346_v12, 3  ;;  %v2272_v5 = vrot.slane %v2252_v51, 2  ;;  %v2273_v9 = vrot.slane %v2253_v18, 1 }
 0x828   : > { %v2265_v60 = vsel %vm7640_vm4, %v2264_v42, %v2263_v49  ;;  %vm7641_vm12 = vcmask 1041409   ;;  %vm7522_vm1 = vcmask 123904  }
 0x829   : > { %v2267_v50 = vsel %vm7628_vm14, %v2266_v57, %v2265_v60  ;;  %v2274_v24 = vsel %vm7641_vm12, %v2273_v9, %v2272_v5  ;;  %vm7652_vm14 = vcmask 1043459  }
 0x82a   : > { %v2269_v6 = vsel %vm7629_vm15, %v2268_v62, %v2267_v50  ;;  %v2282_v37 = vsel %vm7522_vm1, %v2274_v24, -inf  ;;  %vm7653_vm15 = vcmask 1044484  }
 0x82b   : > { %v2271_v11 = vsel %vm7630_vm3, %v2270_v8, %v2269_v6  ;;  %vm7654_vm3 = vcmask 1045509  }
 0x82c   : > { %v2278_v20 = vsel %vm7528_vm13, %v2271_v11, -inf }
 0x82d   : > { %2279 = vmax.xlane.f32.xlu1 %v2278_v20 }
 0x831   : > { %2283 = vmax.xlane.f32.xlu1 %v2282_v37 }
 0x8ba   : > { %v2280_v38 = vpop.xlane.xlu1 %2279 }
 0x8bb   : > { %v2287_v36 = vrot.slane %v2280_v38, 1  ;;  %v2288_v2 = vrot.slane %v2280_v38, 2  ;;  %v2289_v10 = vrot.slane %v2280_v38, 3  ;;  %vm2302_vm0 = vcmp.ge.f32.partialorder %v2246_v1, %v2280_v38 }
 0x8bc   : > { %v2368_v46 = vsub.f32 %v2246_v1, %v2280_v38  ;;  %v2290_v55 = vrot.slane %v2280_v38, 4  ;;  %v2291_v16 = vrot.slane %v2280_v38, 5  ;;  %v2310_v42 = vsel %vm2302_vm0, %v5587_v56, 16 }
 0x8bd   : > { %vm6364_vm6 = vcmp.ge.f32.partialorder %v2247_v44, %v2287_v36  ;;  %vm6369_vm7 = vcmp.ge.f32.partialorder %v6330_v34, %v2288_v2  ;;  %vm6374_vm9 = vcmp.ge.f32.partialorder %v6336_v58, %v2289_v10  ;;  %v2369_v17 = vsub.f32 %v2247_v44, %v2287_v36 }
 0x8be   : > { %v2284_v35 = vpop.xlane.xlu1 %2283  ;;  %vm6379_vm5 = vcmp.ge.f32.partialorder %v6342_v28, %v2290_v55  ;;  %vm6384_vm10 = vcmp.ge.f32.partialorder %v6346_v12, %v2291_v16  ;;  %v2311_v60 = vsel %vm6364_vm6, %v5587_v56, 16  ;;  %v2312_v44 = vsel %vm6369_vm7, %v5587_v56, 16  ;;  %vm7657_vm7 = vmmov %vm7641_vm12 }
 0x8bf   : > { %v2292_v49 = vrot.slane %v2284_v35, 6  ;;  %v2293_v57 = vrot.slane %v2284_v35, 7  ;;  %v2376_v62 = vmul.f32 1.442695, %v2368_v46  ;;  %v2313_v50 = vsel %vm6374_vm9, %v5587_v56, 16  ;;  %vm7658_vm9 = vmmov %vm7652_vm14 }
 0x8c0   : > { %v2314_v8 = vsel %vm6379_vm5, %v5587_v56, 16  ;;  %v2315_v5 = vsel %vm6384_vm10, %v5587_v56, 16  ;;  %v2318_v24 = vrot.slane %v2311_v60, 7  ;;  %v2320_v37 = vrot.slane %v2312_v44, 6  ;;  %vm7659_vm5 = vmmov %vm7653_vm15 }
 0x8c1   : > { %vm2308_vm2 = vcmp.ge.f32.partialorder %v2252_v51, %v2292_v49  ;;  %vm2309_vm4 = vcmp.ge.f32.partialorder %v2253_v18, %v2293_v57  ;;  %v2374_v9 = vsub.f32 %v2252_v51, %v2292_v49  ;;  %v2375_v6 = vsub.f32 %v2253_v18, %v2293_v57  ;;  %vm7660_vm10 = vmmov %vm7654_vm3 }
 0x8c2   : > { %v2316_v11 = vsel %vm2308_vm2, %v5587_v56, 16  ;;  %v2317_v20 = vsel %vm2309_vm4, %v5587_v56, 16  ;;  %v2378_v7 = vmul.f32 1.442695, %v2369_v17  ;;  %v2319_v15 = vsel %vm7652_vm14, %v2318_v24, %v2310_v42 }
 0x8c3   : > { %v2328_v38 = vrot.slane %v2316_v11, 2  ;;  %v2329_v36 = vrot.slane %v2317_v20, 1  ;;  %v2388_v46 = vmul.f32 1.442695, %v2374_v9  ;;  %v2390_v33 = vmul.f32 1.442695, %v2375_v6 }
 0x8c4   : > { %v2322_v35 = vrot.slane %v2313_v50, 5  ;;  %v2324_v1 = vrot.slane %v2314_v8, 4  ;;  %v2321_v41 = vsel %vm7653_vm15, %v2320_v37, %v2319_v15  ;;  %v2326_v51 = vrot.slane %v2315_v5, 3 }
 0x8c5   : > { %4994 = vpow2.f32 %v2388_v46  ;;  %v2370_v18 = vsub.f32 %v6330_v34, %v2288_v2  ;;  %v2330_v57 = vsel %vm7641_vm12, %v2329_v36, %v2328_v38  ;;  %v2371_v60 = vsub.f32 %v6336_v58, %v2289_v10 }
 0x8c6   : > { %4996 = vpow2.f32 %v2390_v33  ;;  %v2323_v49 = vsel %vm7654_vm3, %v2322_v35, %v2321_v41  ;;  %vm7655_vm0 = vcmask 1046534   ;;  %v2372_v17 = vsub.f32 %v6342_v28, %v2290_v55 }
 0x8c7   : > { %v2325_v44 = vsel %vm7655_vm0, %v2324_v1, %v2323_v49  ;;  %vm7656_vm6 = vcmask 1047559   ;;  %v2373_v50 = vsub.f32 %v6346_v12, %v2291_v16  ;;  %4998 = vpow2.f32 %v2378_v7  ;;  %vm7661_vm2 = vmmov %vm7655_vm0 }
 0x8c8   : > { %v2327_v42 = vsel %vm7656_vm6, %v2326_v51, %v2325_v44  ;;  %v2380_v8 = vmul.f32 1.442695, %v2370_v18  ;;  %5000 = vpow2.f32 %v2376_v62  ;;  %v2346_v2 = vsel %vm7522_vm1, %v2330_v57, 2147483647  ;;  %vm7662_vm4 = vmmov %vm7656_vm6 }
 0x8c9   : > { %v2331_v34 = vsel %vm7528_vm13, %v2327_v42, 2147483647  ;;  %v2382_v5 = vmul.f32 1.442695, %v2371_v60  ;;  %v2384_v6 = vmul.f32 1.442695, %v2372_v17 }
 0x8ca   : > { %v2333_v9 = vshra.s32 %v2331_v34, 16  ;;  %5002 = vpow2.f32 %v2380_v8  ;;  %v2386_v58 = vmul.f32 1.442695, %v2373_v50  ;;  %v2348_v11 = vshra.s32 %v2346_v2, 16 }
 0x8cb   : > { %5004 = vpow2.f32 %v2382_v5  ;;  %v2332_v44 = vand.u32 65535, %v2331_v34  ;;  %v2347_v50 = vand.u32 65535, %v2346_v2  ;;  %vm2361_vm3 = vcmp.eq.s32.totalorder %v5587_v56, 2 }
 0x8cc   : > { %v2335_v10 = vcvt.s32.f32 %v2333_v9  ;;  %5006 = vpow2.f32 %v2384_v6  ;;  %v2350_v55 = vcvt.s32.f32 %v2348_v11 }
 0x8cd   : > { %5008 = vpow2.f32 %v2386_v58  ;;  %v2334_v42 = vcvt.s32.f32 %v2332_v44  ;;  %v2349_v9 = vcvt.s32.f32 %v2347_v50  ;;  %v6473_v50 = vld [vmem:[#allocation4 + $0x58] sm:$0xff] }
 0x8ce   : > { %2336 = vmin.xlane.f32.xlu1 %v2335_v10 }
 0x8cf   : > { %v4995_v28 = vpop.eup %4994 }
 0x8d0   : > { %v4997_v12 = vpop.eup %4996  ;;  %v2410_v16 = vrot.slane %v4995_v28, 2 }
 0x8d1   : > { %v2411_v62 = vrot.slane %v4997_v12, 1  ;;  %v4999_v20 = vpop.eup %4998 }
 0x8d2   : > { %2351 = vmin.xlane.f32.xlu1 %v2350_v55  ;;  %v5001_v24 = vpop.eup %5000  ;;  %v2400_v37 = vrot.slane %v4999_v20, 7 }
 0x8d3   : > { %v6419_v38 = vsel %vm7657_vm7, %v2411_v62, %v2410_v16 }
 0x8d4   : > { %v5003_v36 = vpop.eup %5002  ;;  %v2401_v33 = vsel %vm7658_vm9, %v2400_v37, %v5001_v24 }
 0x8d5   : > { %v5005_v46 = vpop.eup %5004  ;;  %v2402_v7 = vrot.slane %v5003_v36, 6 }
 0x8d6   : > { %v5007_v15 = vpop.eup %5006  ;;  %v2404_v35 = vrot.slane %v5005_v46, 5 }
 0x8d7   : > { %v5009_v1 = vpop.eup %5008  ;;  %v2403_v41 = vsel %vm7659_vm5, %v2402_v7, %v2401_v33  ;;  %v2406_v51 = vrot.slane %v5007_v15, 4 }
 0x8d8   : > { %v2405_v18 = vsel %vm7660_vm10, %v2404_v35, %v2403_v41  ;;  %v2408_v49 = vrot.slane %v5009_v1, 3 }
 0x8d9   : > { %v2407_v57 = vsel %vm7661_vm2, %v2406_v51, %v2405_v18 }
 0x8da   : > { %v6426_v60 = vsel %vm7662_vm4, %v2408_v49, %v2407_v57 }
 0x95b   : > { %v2337_v17 = vpop.xlane.xlu1 %2336 }
 0x95c   : > { %vm2338_vm14 = vcmp.eq.f32.partialorder %v2335_v10, %v2337_v17  ;;  %v2343_v58 = vcvt.f32.s32 %v2337_v17  ;;  %v6470_v17 = vld [vmem:[#allocation4 + $0x50] sm:$0xff] }
 0x95d   : > { %v2339_v8 = vsel %vm2338_vm14, %v2334_v42, inf }
 0x95e   : > { %2340 = vmin.xlane.f32.xlu1 %v2339_v8  ;;  %v2344_v12 = vshll.u32 %v2343_v58, 16 }
 0x95f   : > { %v2352_v5 = vpop.xlane.xlu1 %2351 }
 0x960   : > { %vm2353_vm15 = vcmp.eq.f32.partialorder %v2350_v55, %v2352_v5  ;;  %v2358_v11 = vcvt.f32.s32 %v2352_v5 }
 0x961   : > { %v2354_v6 = vsel %vm2353_vm15, %v2349_v9, inf }
 0x962   : > { %2355 = vmin.xlane.f32.xlu1 %v2354_v6  ;;  %v6429_v34 = vshll.u32 %v2358_v11, 16 }
 0x9eb   : > { %v2341_v28 = vpop.xlane.xlu1 %2340 }
 0x9ec   : > { %v2342_v16 = vcvt.f32.s32 %v2341_v28 }
 0x9ee   : > { %v2345_v62 = vadd.s32 %v2344_v12, %v2342_v16 }
 0x9ef   : > { %v6431_v20 = vpop.xlane.xlu1 %2355 }
 0x9f0   : > { %v2436_v2 = vrot.slane %v2345_v62, %v5442_v26  ;;  %v2440_v10 = vrot.slane %v2345_v62, %v5445_v27  ;;  %v2444_v55 = vrot.slane %v2345_v62, %v5983_v43  ;;  %v2448_v24 = vrot.slane %v2345_v62, %v5986_v48 }
 0x9f1   : > { %v2452_v37 = vrot.slane %v2345_v62, %v5989_v52  ;;  %v2456_v36 = vrot.slane %v2345_v62, %v5992_v53  ;;  %v6443_v46 = vsel %vm2361_vm3, %v2345_v62, %v2363_v19  ;;  %v2357_v33 = vcvt.f32.s32 %v6431_v20 }
 0x9f2   : > { %vm2465_vm12 = vcmp.eq.s32.totalorder %v5428_v22, %v2436_v2  ;;  %vm2466_vm0 = vcmp.eq.s32.totalorder %v5997_v29, %v2436_v2  ;;  %vm2467_vm6 = vcmp.eq.s32.totalorder %v5428_v22, %v2440_v10  ;;  %vm2468_vm7 = vcmp.eq.s32.totalorder %v5997_v29, %v2440_v10 }
 0x9f3   : > { %vm2469_vm9 = vcmp.eq.s32.totalorder %v5428_v22, %v2444_v55  ;;  %vm2470_vm5 = vcmp.eq.s32.totalorder %v5997_v29, %v2444_v55  ;;  %vm2471_vm10 = vcmp.eq.s32.totalorder %v5428_v22, %v2448_v24  ;;  %vm2472_vm2 = vcmp.eq.s32.totalorder %v5997_v29, %v2448_v24 }
 0x9f4   : > { %vm2473_vm4 = vcmp.eq.s32.totalorder %v5428_v22, %v2452_v37  ;;  %vm2474_vm14 = vcmp.eq.s32.totalorder %v5997_v29, %v2452_v37  ;;  %vm2475_vm15 = vcmp.eq.s32.totalorder %v5428_v22, %v2456_v36  ;;  %vm2476_vm1 = vcmp.eq.s32.totalorder %v5997_v29, %v2456_v36 }
 0x9f5   : > { %v4686_v21 = vsel %vm2465_vm12, 1.0, %v7606_v0  ;;  %v4687_v19 = vsel %vm2466_vm0, 1.0, %v7606_v0  ;;  %v4688_v7 = vsel %vm2467_vm6, 1.0, %v7606_v0  ;;  %v4689_v15 = vsel %vm2468_vm7, 1.0, %v7606_v0 }
 0x9f6   : > { %v4690_v35 = vsel %vm2469_vm9, 1.0, %v7606_v0  ;;  %v4691_v1 = vsel %vm2470_vm5, 1.0, %v7606_v0  ;;  %v4692_v41 = vsel %vm2471_vm10, 1.0, %v7606_v0  ;;  %v4693_v51 = vsel %vm2472_vm2, 1.0, %v7606_v0 }
 0x9f7   : > { %v4694_v18 = vsel %vm2473_vm4, 1.0, %v7606_v0  ;;  %v4695_v49 = vsel %vm2474_vm14, 1.0, %v7606_v0  ;;  %v4696_v57 = vsel %vm2475_vm15, 1.0, %v7606_v0  ;;  %v4697_v44 = vsel %vm2476_vm1, 1.0, %v7606_v0 }
 0x9f8   : > { %v2513_v42 = vmul.f32 %v6470_v17, %v4686_v21  ;;  %v2514_v8 = vmul.f32 %v6473_v50, %v4687_v19  ;;  %v2515_v5 = vmul.f32 %v6470_v17, %v4688_v7  ;;  %v2516_v9 = vmul.f32 %v6473_v50, %v4689_v15 }
 0x9f9   : > { %v2517_v6 = vmul.f32 %v6470_v17, %v4690_v35  ;;  %v2518_v58 = vmul.f32 %v6473_v50, %v4691_v1  ;;  %v2519_v11 = vmul.f32 %v6470_v17, %v4692_v41  ;;  %v2520_v28 = vmul.f32 %v6473_v50, %v4693_v51 }
 0x9fa   : > { %v2521_v12 = vmul.f32 %v6470_v17, %v4694_v18  ;;  %v2522_v16 = vmul.f32 %v6473_v50, %v4695_v49  ;;  %v2523_v62 = vmul.f32 %v6470_v17, %v4696_v57  ;;  %v2524_v2 = vmul.f32 %v6473_v50, %v4697_v44 }
 0x9fb   : > { %vm7663_vm1 = vcmask 130048  }
 0x9fc   : > { %v2529_v10 = vsel %vm7663_vm1, %v2513_v42, 0.0  ;;  %vm7664_vm12 = vmmov %vm7663_vm1 }
 0x9fd   : > { %v2530_v55 = vsel %vm7664_vm12, %v2514_v8, 0.0  ;;  %vm7665_vm0 = vmmov %vm7663_vm1 }
 0x9fe   : > { %v2538_v24 = vsel %vm7665_vm0, %v2515_v5, 0.0  ;;  %vm7666_vm6 = vmmov %vm7665_vm0  ;;  %v2531_v36 = vadd.f32 %v2530_v55, %v2529_v10 }
 0x9ff   : > { %v2539_v37 = vsel %vm7666_vm6, %v2516_v9, 0.0  ;;  %vm7667_vm7 = vmmov %vm7665_vm0  ;;  %vm7675_vm6 = vcmask 1041409  }
 0xa00   : > { %v2540_v21 = vadd.f32 %v2539_v37, %v2538_v24  ;;  %v2547_v19 = vsel %vm7667_vm7, %v2517_v6, 0.0  ;;  %vm7668_vm9 = vmmov %vm7665_vm0  ;;  %v2532_v51 = vrot.slane %v2531_v36, 4 }
 0xa01   : > { %v2548_v7 = vsel %vm7668_vm9, %v2518_v58, 0.0  ;;  %vm7669_vm5 = vmmov %vm7665_vm0 }
 0xa02   : > { %v2549_v15 = vadd.f32 %v2548_v7, %v2547_v19  ;;  %v2556_v35 = vsel %vm7669_vm5, %v2519_v11, 0.0  ;;  %vm7670_vm10 = vmmov %vm7665_vm0  ;;  %v2541_v18 = vrot.slane %v2540_v21, 4  ;;  %v2533_v9 = vadd.f32 %v2532_v51, %v2531_v36 }
 0xa03   : > { %v2557_v1 = vsel %vm7670_vm10, %v2520_v28, 0.0  ;;  %vm7671_vm2 = vmmov %vm7665_vm0  ;;  %v2360_v28 = vadd.s32 %v6429_v34, %v2357_v33 }
 0xa04   : > { %v2565_v41 = vsel %vm7671_vm2, %v2521_v12, 0.0  ;;  %v2558_v49 = vadd.f32 %v2557_v1, %v2556_v35  ;;  %vm7672_vm4 = vmmov %vm7665_vm0  ;;  %v2550_v44 = vrot.slane %v2549_v15, 4  ;;  %v2542_v6 = vadd.f32 %v2541_v18, %v2540_v21 }
 0xa05   : > { %v2566_v57 = vsel %vm7672_vm4, %v2522_v16, 0.0  ;;  %vm7673_vm14 = vmmov %vm7665_vm0  ;;  %v2534_v12 = vrot.slane %v2533_v9, 2  ;;  %v2464_v35 = vrot.slane %v2360_v28, %v5439_v25  ;;  %vm7681_vm4 = vcmask 1043459  }
 0xa06   : > { %v2567_v42 = vadd.f32 %v2566_v57, %v2565_v41  ;;  %v2574_v8 = vsel %vm7673_vm14, %v2523_v62, 0.0  ;;  %vm7674_vm15 = vmmov %vm7665_vm0  ;;  %v2559_v58 = vrot.slane %v2558_v49, 4  ;;  %v2551_v11 = vadd.f32 %v2550_v44, %v2549_v15 }
 0xa07   : > { %v2575_v5 = vsel %vm7674_vm15, %v2524_v2, 0.0  ;;  %v2543_v24 = vrot.slane %v2542_v6, 2  ;;  %v2367_v62 = vsel %vm2361_vm3, %v2360_v28, %v6314_v3  ;;  %v2460_v2 = vrot.slane %v2360_v28, %v5434_v23  ;;  %vm7676_vm7 = vmmov %vm7671_vm2 }
 0xa08   : > { %v2576_v10 = vadd.f32 %v2575_v5, %v2574_v8  ;;  %v2568_v55 = vrot.slane %v2567_v42, 4  ;;  %v2560_v37 = vadd.f32 %v2559_v58, %v2558_v49  ;;  %v2552_v16 = vrot.slane %v2551_v11, 2  ;;  %vm7677_vm9 = vmmov %vm7671_vm2 }
 0xa09   : > { %v2535_v36 = vadd.f32 %v2534_v12, %v2533_v9  ;;  %v2544_v21 = vadd.f32 %v2543_v24, %v2542_v6  ;;  %vm2477_vm1 = vcmp.eq.s32.totalorder %v5428_v22, %v2460_v2  ;;  %vm2478_vm12 = vcmp.eq.s32.totalorder %v5997_v29, %v2460_v2  ;;  %vm7678_vm5 = vmmov %vm7671_vm2 }
 0xa0a   : > { %v2569_v19 = vadd.f32 %v2568_v55, %v2567_v42  ;;  %v2577_v7 = vrot.slane %v2576_v10, 4  ;;  %v2553_v15 = vadd.f32 %v2552_v16, %v2551_v11  ;;  %v2561_v34 = vrot.slane %v2560_v37, 2  ;;  %vm7679_vm10 = vmmov %vm7671_vm2 }
 0xa0b   : > { %v2536_v20 = vrot.slane %v2535_v36, 1  ;;  %v2545_v1 = vrot.slane %v2544_v21, 1  ;;  %vm2479_vm3 = vcmp.eq.s32.totalorder %v5428_v22, %v2464_v35  ;;  %vm2480_vm0 = vcmp.eq.s32.totalorder %v5997_v29, %v2464_v35 }
 0xa0c   : > { %v2570_v33 = vrot.slane %v2569_v19, 2  ;;  %v2578_v41 = vadd.f32 %v2577_v7, %v2576_v10  ;;  %v2554_v3 = vrot.slane %v2553_v15, 1  ;;  %v4698_v51 = vsel %vm2477_vm1, 1.0, %v7606_v0 }
 0xa0d   : > { %v2537_v18 = vadd.f32 %v2536_v20, %v2535_v36  ;;  %v2546_v49 = vadd.f32 %v2545_v1, %v2544_v21  ;;  %v2562_v57 = vadd.f32 %v2561_v34, %v2560_v37  ;;  %v4699_v44 = vsel %vm2478_vm12, 1.0, %v7606_v0 }
 0xa0e   : > { %v2768_v42 = vrot.slane %v6443_v46, 7  ;;  %v4700_v8 = vsel %vm2479_vm3, 1.0, %v7606_v0  ;;  %v4701_v5 = vsel %vm2480_vm0, 1.0, %v7606_v0  ;;  %v2571_v9 = vadd.f32 %v2570_v33, %v2569_v19 }
 0xa0f   : > { %v2579_v6 = vrot.slane %v2578_v41, 2  ;;  %v2525_v58 = vmul.f32 %v6470_v17, %v4698_v51  ;;  %v2526_v10 = vmul.f32 %v6473_v50, %v4699_v44  ;;  %v2555_v11 = vadd.f32 %v2554_v3, %v2553_v15 }
 0xa10   : > { %v2527_v55 = vmul.f32 %v6470_v17, %v4700_v8  ;;  %v2528_v28 = vmul.f32 %v6473_v50, %v4701_v5  ;;  %v2769_v12 = vrot.slane %v2367_v62, 7  ;;  %v2563_v24 = vrot.slane %v2562_v57, 1 }
 0xa11   : > { %v2609_v37 = vsel %vm7675_vm6, %v2546_v49, %v2537_v18  ;;  %v2583_v16 = vsel %vm7676_vm7, %v2525_v58, 0.0  ;;  %v2584_v2 = vsel %vm7677_vm9, %v2526_v10, 0.0  ;;  %v2580_v15 = vadd.f32 %v2579_v6, %v2578_v41 }
 0xa12   : > { %v2585_v36 = vadd.f32 %v2584_v2, %v2583_v16  ;;  %v2592_v21 = vsel %vm7678_vm5, %v2527_v55, 0.0  ;;  %v2593_v19 = vsel %vm7679_vm10, %v2528_v28, 0.0  ;;  %v6527_v7 = vsel %vm2362_vm11, %v2768_v42, %v2769_v12 }
 0xa13   : > { %v2594_v35 = vadd.f32 %v2593_v19, %v2592_v21  ;;  %v2572_v62 = vrot.slane %v2571_v9, 1  ;;  %vm7680_vm2 = vcmask 1042434   ;;  %v2564_v34 = vadd.f32 %v2563_v24, %v2562_v57 }
 0xa14   : > { %v2610_v20 = vsel %vm7680_vm2, %v2555_v11, %v2609_v37  ;;  %v2586_v1 = vrot.slane %v2585_v36, 4  ;;  %v2581_v51 = vrot.slane %v2580_v15, 1  ;;  %vm7682_vm14 = vcmask 1044484  }
 0xa15   : > { %v2595_v33 = vrot.slane %v2594_v35, 4  ;;  %v2611_v18 = vsel %vm7681_vm4, %v2564_v34, %v2610_v20  ;;  %v2573_v44 = vadd.f32 %v2572_v62, %v2571_v9  ;;  %vm7683_vm15 = vcmask 1045509   ;;  %v2633_v9 = vpop.permute.xlu0 %2632 }
 0xa16   : > { %v2587_v3 = vadd.f32 %v2586_v1, %v2585_v36  ;;  %v2582_v55 = vadd.f32 %v2581_v51, %v2580_v15  ;;  %vm7684_vm1 = vcmask 1046534   ;;  %vm7685_vm12 = vcmask 1047559  }
 0xa17   : > { %v2596_v49 = vadd.f32 %v2595_v33, %v2594_v35  ;;  %v2612_v58 = vsel %vm7682_vm14, %v2573_v44, %v2611_v18  ;;  %vm7686_vm3 = vcmp.gt.f32.partialorder %v5855_v45, 0.0  ;;  %vm7687_vm0 = vcmp.gt.f32.partialorder %v5861_v47, 0.0 }
 0xa18   : > { %v2588_v8 = vrot.slane %v2587_v3, 2  ;;  %v2613_v28 = vsel %vm7683_vm15, %v2582_v55, %v2612_v58  ;;  %vm7688_vm6 = vcmp.gt.f32.partialorder %v5864_v59, 0.0  ;;  %vm7526_vm7 = vcmask 124928  }
 0xa19   : > { %v2597_v5 = vrot.slane %v2596_v49, 2  ;;  %vm7689_vm9 = vcmp.gt.f32.partialorder %v5839_v4, 0.0  ;;  %vm7690_vm5 = vcmp.gt.f32.partialorder %v5842_v32, 0.0  ;;  %vm7691_vm10 = vcmp.gt.f32.partialorder %v5845_v14, 0.0 }
 0xa1a   : > { %v2589_v10 = vadd.f32 %v2588_v8, %v2587_v3  ;;  %vm7692_vm2 = vcmask 1041409   ;;  %vm7693_vm4 = vcmp.gt.f32.partialorder %v5852_v40, 0.0  ;;  %vm7694_vm14 = vcmask 1042434  }
 0xa1b   : > { %v2598_v41 = vadd.f32 %v2597_v5, %v2596_v49  ;;  %vm7695_vm15 = vcmp.gt.f32.partialorder %v5849_v39, 0.0 }
 0xa1c   : > { %v2590_v6 = vrot.slane %v2589_v10, 1 }
 0xa1d   : > { %v2599_v11 = vrot.slane %v2598_v41, 1 }
 0xa1e   : > { %v2591_v12 = vadd.f32 %v2590_v6, %v2589_v10 }
 0xa1f   : > { %v2600_v57 = vadd.f32 %v2599_v11, %v2598_v41 }
 0xa20   : > { %v2614_v24 = vsel %vm7684_vm1, %v2591_v12, %v2613_v28  ;;  %vm7696_vm1 = vcmask 1044484  }
 0xa21   : > { %v2615_v37 = vsel %vm7685_vm12, %v2600_v57, %v2614_v24  ;;  %vm7697_vm12 = vcmask 1045509  }
 0xa22   : > { %v6536_v16 = vadd.f32 %v2615_v37, %v6325_v54 }
 0xa24   : > { %v2635_v2 = vadd.f32 %v2633_v9, %v6536_v16 }
 0xa26   : > { %v2641_v36 = vrot.slane %v2635_v2, 2  ;;  %v2642_v21 = vrot.slane %v2635_v2, 3  ;;  %v2643_v19 = vrot.slane %v2635_v2, 4  ;;  %v2637_v15 = vrot.slane %v2635_v2, 5 }
 0xa27   : > { %v2638_v35 = vrot.slane %v2635_v2, 6  ;;  %v2639_v62 = vrot.slane %v2635_v2, 7  ;;  %v2640_v20 = vrot.slane %v2635_v2, 1  ;;  %v6551_v44 = vsel %vm7691_vm10, %v2635_v2, -1e+09 }
 0xa28   : > { %v2657_v1 = vsel %vm7686_vm3, %v2641_v36, -1e+09  ;;  %v2658_v34 = vsel %vm7687_vm0, %v2642_v21, -1e+09  ;;  %v2659_v54 = vsel %vm7688_vm6, %v2643_v19, -1e+09 }
 0xa29   : > { %v2676_v33 = vrot.slane %v2657_v1, 3  ;;  %v2677_v3 = vrot.slane %v2658_v34, 2  ;;  %v2679_v51 = vrot.slane %v2659_v54, 1  ;;  %v2653_v18 = vsel %vm7689_vm9, %v2638_v35, -1e+09 }
 0xa2a   : > { %v2654_v49 = vsel %vm7690_vm5, %v2639_v62, -1e+09  ;;  %v6556_v5 = vsel %vm7693_vm4, %v2640_v20, -1e+09  ;;  %v2668_v58 = vrot.slane %v2653_v18, 7  ;;  %v2672_v11 = vrot.slane %v6551_v44, 5 }
 0xa2b   : > { %v2678_v8 = vsel %vm7692_vm2, %v2677_v3, %v2676_v33  ;;  %v2670_v10 = vrot.slane %v2654_v49, 6  ;;  %v2652_v41 = vsel %vm7695_vm15, %v2637_v15, -1e+09  ;;  %v2674_v57 = vrot.slane %v6556_v5, 4 }
 0xa2c   : > { %v2680_v55 = vsel %vm7694_vm14, %v2679_v51, %v2678_v8  ;;  %v2669_v28 = vsel %vm7696_vm1, %v2668_v58, %v2652_v41  ;;  %vm2683_vm3 = vcmask 130051   ;;  %vm7698_vm0 = vcmask 1046534  }
 0xa2d   : > { %v2688_v6 = vsel %vm7526_vm7, %v2680_v55, -inf  ;;  %v2671_v12 = vsel %vm7697_vm12, %v2670_v10, %v2669_v28  ;;  %vm7699_vm6 = vcmask 1047559   ;;  %vm7704_vm12 = vcmask 1044484  }
 0xa2e   : > { %2689 = vmax.xlane.f32.xlu0 %v2688_v6  ;;  %v2673_v24 = vsel %vm7698_vm0, %v2672_v11, %v2671_v12  ;;  %vm7705_vm0 = vcmask 1041409  }
 0xa2f   : > { %v2675_v37 = vsel %vm7699_vm6, %v2674_v57, %v2673_v24  ;;  %vm7706_vm6 = vcmask 1045509  }
 0xa30   : > { %v2684_v9 = vsel %vm2683_vm3, %v2675_v37, -inf }
 0xa31   : > { %2685 = vmax.xlane.f32.xlu1 %v2684_v9 }
 0xabb   : > { %v2690_v2 = vpop.xlane.xlu0 %2689 }
 0xabc   : > { %v2697_v36 = vrot.slane %v2690_v2, 5  ;;  %v2698_v21 = vrot.slane %v2690_v2, 6  ;;  %v2699_v19 = vrot.slane %v2690_v2, 7 }
 0xabe   : > { %vm2713_vm9 = vcmp.ge.f32.partialorder %v2657_v1, %v2697_v36  ;;  %vm2714_vm5 = vcmp.ge.f32.partialorder %v2658_v34, %v2698_v21  ;;  %vm6569_vm10 = vcmp.ge.f32.partialorder %v2659_v54, %v2699_v19  ;;  %v2778_v35 = vsub.f32 %v2657_v1, %v2697_v36  ;;  %v2686_v3 = vpop.xlane.xlu1 %2685 }
 0xabf   : > { %v2721_v62 = vsel %vm2713_vm9, %v5587_v56, 16  ;;  %v2722_v20 = vsel %vm2714_vm5, %v5587_v56, 16  ;;  %v2779_v33 = vsub.f32 %v2658_v34, %v2698_v21  ;;  %v2723_v51 = vsel %vm6569_vm10, %v5587_v56, 16 }
 0xac0   : > { %v2732_v8 = vrot.slane %v2721_v62, 3  ;;  %v2733_v58 = vrot.slane %v2722_v20, 2  ;;  %v2780_v10 = vsub.f32 %v2659_v54, %v2699_v19  ;;  %v2791_v55 = vmul.f32 1.442695, %v2778_v35 }
 0xac1   : > { %v2793_v6 = vmul.f32 1.442695, %v2779_v33  ;;  %v2693_v28 = vrot.slane %v2686_v3, 1  ;;  %v2694_v11 = vrot.slane %v2686_v3, 2  ;;  %v2695_v57 = vrot.slane %v2686_v3, 3 }
 0xac2   : > { %v2795_v12 = vmul.f32 1.442695, %v2780_v10  ;;  %vm2708_vm2 = vcmp.ge.f32.partialorder %v2652_v41, %v2686_v3  ;;  %v2773_v1 = vsub.f32 %v2652_v41, %v2686_v3  ;;  %v2735_v24 = vrot.slane %v2723_v51, 1 }
 0xac3   : > { %5010 = vpow2.f32 %v2791_v55  ;;  %vm2709_vm4 = vcmp.ge.f32.partialorder %v2653_v18, %v2693_v28  ;;  %vm6578_vm14 = vcmp.ge.f32.partialorder %v2654_v49, %v2694_v11  ;;  %v2716_v37 = vsel %vm2708_vm2, %v5587_v56, 16  ;;  %vm7710_vm2 = vmmov %vm7705_vm0 }
 0xac4   : > { %5012 = vpow2.f32 %v2793_v6  ;;  %v2717_v54 = vsel %vm2709_vm4, %v5587_v56, 16  ;;  %v2774_v9 = vsub.f32 %v2653_v18, %v2693_v28  ;;  %v2775_v36 = vsub.f32 %v2654_v49, %v2694_v11 }
 0xac5   : > { %5014 = vpow2.f32 %v2795_v12  ;;  %v2724_v2 = vrot.slane %v2717_v54, 7  ;;  %v2696_v21 = vrot.slane %v2686_v3, 4  ;;  %v2781_v19 = vmul.f32 1.442695, %v2773_v1 }
 0xac6   : > { %v2783_v15 = vmul.f32 1.442695, %v2774_v9  ;;  %vm2711_vm15 = vcmp.ge.f32.partialorder %v6551_v44, %v2695_v57  ;;  %v2718_v41 = vsel %vm6578_vm14, %v5587_v56, 16  ;;  %v2734_v18 = vsel %vm7705_vm0, %v2733_v58, %v2732_v8  ;;  %vm7713_vm14 = vmmov %vm7704_vm12 }
 0xac7   : > { %vm2712_vm1 = vcmp.ge.f32.partialorder %v6556_v5, %v2696_v21  ;;  %v2719_v35 = vsel %vm2711_vm15, %v5587_v56, 16  ;;  %v2725_v62 = vsel %vm7704_vm12, %v2724_v2, %v2716_v37  ;;  %v2726_v20 = vrot.slane %v2718_v41, 6  ;;  %vm7714_vm15 = vmmov %vm7706_vm6 }
 0xac8   : > { %5016 = vpow2.f32 %v2783_v15  ;;  %v2720_v49 = vsel %vm2712_vm1, %v5587_v56, 16  ;;  %v2728_v33 = vrot.slane %v2719_v35, 5  ;;  %v2776_v3 = vsub.f32 %v6551_v44, %v2695_v57 }
 0xac9   : > { %v2777_v51 = vsub.f32 %v6556_v5, %v2696_v21  ;;  %v2727_v10 = vsel %vm7706_vm6, %v2726_v20, %v2725_v62  ;;  %v2730_v55 = vrot.slane %v2720_v49, 4  ;;  %vm7707_vm9 = vcmask 1042434  }
 0xaca   : > { %v2736_v6 = vsel %vm7707_vm9, %v2735_v24, %v2734_v18  ;;  %v2785_v28 = vmul.f32 1.442695, %v2775_v36  ;;  %5018 = vpow2.f32 %v2781_v19  ;;  %vm7708_vm5 = vcmask 1046534   ;;  %vm7711_vm4 = vmmov %vm7707_vm9 }
 0xacb   : > { %v2729_v11 = vsel %vm7708_vm5, %v2728_v33, %v2727_v10  ;;  %v2787_v12 = vmul.f32 1.442695, %v2776_v3  ;;  %vm7709_vm10 = vcmask 1047559   ;;  %v2789_v58 = vmul.f32 1.442695, %v2777_v51  ;;  %vm7715_vm1 = vmmov %vm7708_vm5 }
 0xacc   : > { %v2731_v8 = vsel %vm7709_vm10, %v2730_v55, %v2729_v11  ;;  %5020 = vpow2.f32 %v2785_v28  ;;  %v2752_v44 = vsel %vm7526_vm7, %v2736_v6, 2147483647  ;;  %vm7716_vm12 = vmmov %vm7709_vm10  ;;  %vm2767_vm9 = vcmp.eq.s32.totalorder %v5587_v56, 3 }
 0xacd   : > { %v5011_v1 = vpop.eup %5010  ;;  %v2737_v34 = vsel %vm2683_vm3, %v2731_v8, 2147483647  ;;  %5022 = vpow2.f32 %v2787_v12  ;;  %v2754_v2 = vshra.s32 %v2752_v44, 16  ;;  %vm7867_vm7 = vcmask 1043459  }
 0xace   : > { %v5013_v5 = vpop.eup %5012  ;;  %v2739_v57 = vshra.s32 %v2737_v34, 16  ;;  %5024 = vpow2.f32 %v2789_v58  ;;  %v2813_v37 = vrot.slane %v5011_v1, 3  ;;  %v2738_v11 = vand.u32 65535, %v2737_v34 }
 0xacf   : > { %v5015_v24 = vpop.eup %5014  ;;  %v2814_v54 = vrot.slane %v5013_v5, 2  ;;  %v2756_v35 = vcvt.s32.f32 %v2754_v2  ;;  %v2753_v58 = vand.u32 65535, %v2752_v44 }
 0xad0   : > { %v2741_v9 = vcvt.s32.f32 %v2739_v57  ;;  %v2816_v36 = vrot.slane %v5015_v24, 1  ;;  %v2740_v8 = vcvt.s32.f32 %v2738_v11 }
 0xad1   : > { %v2815_v21 = vsel %vm7710_vm2, %v2814_v54, %v2813_v37  ;;  %v2755_v57 = vcvt.s32.f32 %v2753_v58 }
 0xad2   : > { %v5017_v19 = vpop.eup %5016  ;;  %2742 = vmin.xlane.f32.xlu1 %v2741_v9  ;;  %v6603_v15 = vsel %vm7711_vm4, %v2816_v36, %v2815_v21 }
 0xad3   : > { %7712 = vst [vmem:[#allocation12_spill] sm:$0xff] %v6603_v15  ;;  %v2805_v41 = vrot.slane %v5017_v19, 7 }
 0xad4   : > { %v5019_v62 = vpop.eup %5018 }
 0xad5   : > { %v2806_v49 = vsel %vm7713_vm14, %v2805_v41, %v5019_v62 }
 0xad6   : > { %v5021_v18 = vpop.eup %5020  ;;  %2757 = vmin.xlane.f32.xlu1 %v2756_v35 }
 0xad7   : > { %v5023_v20 = vpop.eup %5022  ;;  %v2807_v33 = vrot.slane %v5021_v18, 6 }
 0xad8   : > { %v5025_v3 = vpop.eup %5024  ;;  %v2809_v51 = vrot.slane %v5023_v20, 5 }
 0xad9   : > { %v2808_v10 = vsel %vm7714_vm15, %v2807_v33, %v2806_v49  ;;  %v2811_v55 = vrot.slane %v5025_v3, 4 }
 0xada   : > { %v2810_v6 = vsel %vm7715_vm1, %v2809_v51, %v2808_v10 }
 0xadb   : > { %v6609_v28 = vsel %vm7716_vm12, %v2811_v55, %v2810_v6 }
 0xb5f   : > { %v2743_v12 = vpop.xlane.xlu1 %2742 }
 0xb60   : > { %vm2744_vm0 = vcmp.eq.f32.partialorder %v2741_v9, %v2743_v12  ;;  %v2749_v24 = vcvt.f32.s32 %v2743_v12 }
 0xb61   : > { %v2745_v1 = vsel %vm2744_vm0, %v2740_v8, inf }
 0xb62   : > { %2746 = vmin.xlane.f32.xlu1 %v2745_v1  ;;  %v2750_v2 = vshll.u32 %v2749_v24, 16 }
 0xb63   : > { %v2758_v5 = vpop.xlane.xlu1 %2757 }
 0xb64   : > { %vm2759_vm6 = vcmp.eq.f32.partialorder %v2756_v35, %v2758_v5  ;;  %v2764_v21 = vcvt.f32.s32 %v2758_v5 }
 0xb65   : > { %v2760_v37 = vsel %vm2759_vm6, %v2755_v57, inf }
 0xb66   : > { %2761 = vmin.xlane.f32.xlu1 %v2760_v37  ;;  %v2765_v62 = vshll.u32 %v2764_v21, 16 }
 0xb77   : > { %3037 = vrot.lane.b32.xlu1 %v5776_v63, %s5236_s29 }
 0xbef   : > { %v2747_v54 = vpop.xlane.xlu1 %2746 }
 0xbf0   : > { %v2748_v36 = vcvt.f32.s32 %v2747_v54 }
 0xbf2   : > { %v2751_v34 = vadd.s32 %v2750_v2, %v2748_v36 }
 0xbf3   : > { %v2762_v44 = vpop.xlane.xlu1 %2761 }
 0xbf4   : > { %v2841_v9 = vrot.slane %v2751_v34, %v5445_v27  ;;  %v2845_v19 = vrot.slane %v2751_v34, %v5983_v43  ;;  %v2849_v41 = vrot.slane %v2751_v34, %v5986_v48  ;;  %v2853_v35 = vrot.slane %v2751_v34, %v5989_v52 }
 0xbf5   : > { %v2857_v63 = vrot.slane %v2751_v34, %v5992_v53  ;;  %v6623_v18 = vsel %vm2767_vm9, %v2751_v34, %v2768_v42  ;;  %v2763_v49 = vcvt.f32.s32 %v2762_v44 }
 0xbf6   : > { %vm2870_vm5 = vcmp.eq.s32.totalorder %v5428_v22, %v2841_v9  ;;  %vm2871_vm10 = vcmp.eq.s32.totalorder %v5997_v29, %v2841_v9  ;;  %vm2872_vm2 = vcmp.eq.s32.totalorder %v5428_v22, %v2845_v19  ;;  %vm2873_vm4 = vcmp.eq.s32.totalorder %v5997_v29, %v2845_v19 }
 0xbf7   : > { %vm2874_vm14 = vcmp.eq.s32.totalorder %v5428_v22, %v2849_v41  ;;  %vm2875_vm15 = vcmp.eq.s32.totalorder %v5997_v29, %v2849_v41  ;;  %vm2876_vm1 = vcmp.eq.s32.totalorder %v5428_v22, %v2853_v35  ;;  %vm2877_vm12 = vcmp.eq.s32.totalorder %v5997_v29, %v2853_v35 }
 0xbf8   : > { %vm2878_vm0 = vcmp.eq.s32.totalorder %v5428_v22, %v2857_v63  ;;  %vm2879_vm6 = vcmp.eq.s32.totalorder %v5997_v29, %v2857_v63  ;;  %v4702_v46 = vsel %vm2870_vm5, 1.0, %v7606_v0  ;;  %v4703_v42 = vsel %vm2871_vm10, 1.0, %v7606_v0 }
 0xbf9   : > { %v4704_v20 = vsel %vm2872_vm2, 1.0, %v7606_v0  ;;  %v4705_v33 = vsel %vm2873_vm4, 1.0, %v7606_v0  ;;  %v4706_v3 = vsel %vm2874_vm14, 1.0, %v7606_v0  ;;  %v4707_v51 = vsel %vm2875_vm15, 1.0, %v7606_v0 }
 0xbfa   : > { %v4708_v10 = vsel %vm2876_vm1, 1.0, %v7606_v0  ;;  %v4709_v55 = vsel %vm2877_vm12, 1.0, %v7606_v0  ;;  %v4710_v6 = vsel %vm2878_vm0, 1.0, %v7606_v0  ;;  %v4711_v11 = vsel %vm2879_vm6, 1.0, %v7606_v0 }
 0xbfb   : > { %v2918_v12 = vmul.f32 %v6470_v17, %v4702_v46  ;;  %v2919_v8 = vmul.f32 %v6473_v50, %v4703_v42  ;;  %v2920_v58 = vmul.f32 %v6470_v17, %v4704_v20  ;;  %v2921_v1 = vmul.f32 %v6473_v50, %v4705_v33 }
 0xbfc   : > { %v2922_v5 = vmul.f32 %v6470_v17, %v4706_v3  ;;  %v2923_v57 = vmul.f32 %v6473_v50, %v4707_v51  ;;  %v2924_v37 = vmul.f32 %v6470_v17, %v4708_v10  ;;  %v2925_v24 = vmul.f32 %v6473_v50, %v4709_v55 }
 0xbfd   : > { %vm7717_vm5 = vcmask 130048   ;;  %v7523_v34 = vrot.slane %v6623_v18, 7  ;;  %v2766_v44 = vadd.s32 %v2765_v62, %v2763_v49  ;;  %v2926_v9 = vmul.f32 %v6470_v17, %v4710_v6 }
 0xbfe   : > { %v2934_v54 = vsel %vm7717_vm5, %v2918_v12, 0.0  ;;  %vm7718_vm10 = vmmov %vm7717_vm5  ;;  %v2927_v19 = vmul.f32 %v6473_v50, %v4711_v11 }
 0xbff   : > { %v2935_v2 = vsel %vm7718_vm10, %v2919_v8, 0.0  ;;  %vm7719_vm2 = vmmov %vm7717_vm5  ;;  %v2772_v42 = vsel %vm2767_vm9, %v2766_v44, %v6527_v7  ;;  %v2861_v20 = vrot.slane %v2766_v44, %v5434_v23  ;;  %v2865_v33 = vrot.slane %v2766_v44, %v5439_v25 }
 0xc00   : > { %v2943_v36 = vsel %vm7719_vm2, %v2920_v58, 0.0  ;;  %vm7720_vm4 = vmmov %vm7719_vm2  ;;  %v2936_v41 = vadd.f32 %v2935_v2, %v2934_v54  ;;  %v2869_v62 = vrot.slane %v2766_v44, %v5442_v26  ;;  %v3174_v49 = vrot.slane %v2772_v42, 7 }
 0xc01   : > { %v2944_v21 = vsel %vm7720_vm4, %v2921_v1, 0.0  ;;  %vm7721_vm14 = vmmov %vm7719_vm2  ;;  %vm2880_vm1 = vcmp.eq.s32.totalorder %v5428_v22, %v2861_v20  ;;  %vm2881_vm12 = vcmp.eq.s32.totalorder %v5997_v29, %v2861_v20  ;;  %vm2882_vm0 = vcmp.eq.s32.totalorder %v5428_v22, %v2865_v33 }
 0xc02   : > { %v2945_v35 = vadd.f32 %v2944_v21, %v2943_v36  ;;  %v2952_v63 = vsel %vm7721_vm14, %v2922_v5, 0.0  ;;  %vm7722_vm15 = vmmov %vm7719_vm2  ;;  %v2937_v3 = vrot.slane %v2936_v41, 4  ;;  %vm2883_vm6 = vcmp.eq.s32.totalorder %v5997_v29, %v2865_v33 }
 0xc03   : > { %v2953_v46 = vsel %vm7722_vm15, %v2923_v57, 0.0  ;;  %vm2884_vm9 = vcmp.eq.s32.totalorder %v5428_v22, %v2869_v62  ;;  %vm2885_vm5 = vcmp.eq.s32.totalorder %v5997_v29, %v2869_v62  ;;  %v4712_v7 = vsel %vm2880_vm1, 1.0, %v7606_v0  ;;  %vm7723_vm10 = vmmov %vm7719_vm2 }
 0xc04   : > { %v2946_v51 = vrot.slane %v2945_v35, 4  ;;  %v2954_v10 = vadd.f32 %v2953_v46, %v2952_v63  ;;  %v4713_v55 = vsel %vm2881_vm12, 1.0, %v7606_v0  ;;  %v4714_v6 = vsel %vm2882_vm0, 1.0, %v7606_v0  ;;  %vm7724_vm4 = vmmov %vm7719_vm2 }
 0xc05   : > { %v4715_v11 = vsel %vm2883_vm6, 1.0, %v7606_v0  ;;  %v4716_v12 = vsel %vm2884_vm9, 1.0, %v7606_v0  ;;  %v4717_v8 = vsel %vm2885_vm5, 1.0, %v7606_v0  ;;  %v2928_v58 = vmul.f32 %v6470_v17, %v4712_v7  ;;  %vm7725_vm14 = vmmov %vm7719_vm2 }
 0xc06   : > { %v2929_v1 = vmul.f32 %v6473_v50, %v4713_v55  ;;  %v2930_v5 = vmul.f32 %v6470_v17, %v4714_v6  ;;  %v2931_v57 = vmul.f32 %v6473_v50, %v4715_v11  ;;  %v2932_v54 = vmul.f32 %v6470_v17, %v4716_v12  ;;  %vm7726_vm15 = vmmov %vm7719_vm2 }
 0xc07   : > { %v2933_v2 = vmul.f32 %v6473_v50, %v4717_v8  ;;  %v6689_v36 = vsel %vm2362_vm11, %v7523_v34, %v3174_v49  ;;  %v2938_v21 = vadd.f32 %v2937_v3, %v2936_v41  ;;  %v2979_v44 = vsel %vm7723_vm10, %v2928_v58, 0.0  ;;  %vm7727_vm1 = vmmov %vm7719_vm2 }
 0xc08   : > { %v2980_v63 = vsel %vm7719_vm2, %v2929_v1, 0.0  ;;  %v2988_v46 = vsel %vm7724_vm4, %v2930_v5, 0.0  ;;  %v2989_v42 = vsel %vm7725_vm14, %v2931_v57, 0.0  ;;  %v2947_v62 = vadd.f32 %v2946_v51, %v2945_v35  ;;  %vm7728_vm12 = vmmov %vm7727_vm1 }
 0xc09   : > { %v2981_v20 = vadd.f32 %v2980_v63, %v2979_v44  ;;  %v2939_v33 = vrot.slane %v2938_v21, 2  ;;  %v2955_v17 = vrot.slane %v2954_v10, 4  ;;  %v2961_v50 = vsel %vm7726_vm15, %v2924_v37, 0.0  ;;  %vm7729_vm0 = vmmov %vm7727_vm1 }
 0xc0a   : > { %v2962_v7 = vsel %vm7727_vm1, %v2925_v24, 0.0  ;;  %v2970_v49 = vsel %vm7728_vm12, %v2926_v9, 0.0  ;;  %v2971_v41 = vsel %vm7729_vm0, %v2927_v19, 0.0  ;;  %v2948_v55 = vrot.slane %v2947_v62, 2  ;;  %vm7730_vm6 = vmmov %vm7729_vm0 }
 0xc0b   : > { %v2940_v3 = vadd.f32 %v2939_v33, %v2938_v21  ;;  %v2956_v6 = vadd.f32 %v2955_v17, %v2954_v10  ;;  %v2963_v11 = vadd.f32 %v2962_v7, %v2961_v50  ;;  %v2972_v12 = vadd.f32 %v2971_v41, %v2970_v49  ;;  %vm7731_vm9 = vmmov %vm7729_vm0 }
 0xc0c   : > { %v2982_v8 = vrot.slane %v2981_v20, 4  ;;  %v2990_v58 = vadd.f32 %v2989_v42, %v2988_v46  ;;  %v2997_v1 = vsel %vm7730_vm6, %v2932_v54, 0.0  ;;  %v2949_v35 = vadd.f32 %v2948_v55, %v2947_v62 }
 0xc0d   : > { %v2941_v5 = vrot.slane %v2940_v3, 1  ;;  %v2957_v51 = vrot.slane %v2956_v6, 2  ;;  %v2964_v57 = vrot.slane %v2963_v11, 4  ;;  %v2973_v37 = vrot.slane %v2972_v12, 4 }
 0xc0e   : > { %v2983_v44 = vadd.f32 %v2982_v8, %v2981_v20  ;;  %v2991_v24 = vrot.slane %v2990_v58, 4  ;;  %v2998_v9 = vsel %vm7731_vm9, %v2933_v2, 0.0  ;;  %v2950_v19 = vrot.slane %v2949_v35, 1 }
 0xc0f   : > { %v2942_v63 = vadd.f32 %v2941_v5, %v2940_v3  ;;  %v2958_v21 = vadd.f32 %v2957_v51, %v2956_v6  ;;  %v2965_v33 = vadd.f32 %v2964_v57, %v2963_v11  ;;  %v2974_v10 = vadd.f32 %v2973_v37, %v2972_v12 }
 0xc10   : > { %v2984_v17 = vrot.slane %v2983_v44, 2  ;;  %v2992_v50 = vadd.f32 %v2991_v24, %v2990_v58  ;;  %v2999_v7 = vadd.f32 %v2998_v9, %v2997_v1  ;;  %v2951_v46 = vadd.f32 %v2950_v19, %v2949_v35 }
 0xc11   : > { %v2959_v42 = vrot.slane %v2958_v21, 1  ;;  %v2966_v54 = vrot.slane %v2965_v33, 2  ;;  %v2975_v49 = vrot.slane %v2974_v10, 2  ;;  %vm7732_vm5 = vcmask 1041409  }
 0xc12   : > { %v2985_v62 = vadd.f32 %v2984_v17, %v2983_v44  ;;  %v2993_v41 = vrot.slane %v2992_v50, 2  ;;  %v3000_v55 = vrot.slane %v2999_v7, 4  ;;  %v3014_v8 = vsel %vm7732_vm5, %v2951_v46, %v2942_v63 }
 0xc13   : > { %v2960_v34 = vadd.f32 %v2959_v42, %v2958_v21  ;;  %v2967_v20 = vadd.f32 %v2966_v54, %v2965_v33  ;;  %v2976_v2 = vadd.f32 %v2975_v49, %v2974_v10  ;;  %vm7733_vm10 = vcmask 1042434  }
 0xc14   : > { %v2986_v3 = vrot.slane %v2985_v62, 1  ;;  %v2994_v5 = vadd.f32 %v2993_v41, %v2992_v50  ;;  %v3001_v6 = vadd.f32 %v3000_v55, %v2999_v7  ;;  %vm7734_vm2 = vcmask 1043459  }
 0xc15   : > { %v2968_v11 = vrot.slane %v2967_v20, 1  ;;  %v2977_v12 = vrot.slane %v2976_v2, 1  ;;  %v3015_v1 = vsel %vm7733_vm10, %v2960_v34, %v3014_v8  ;;  %vm7735_vm4 = vcmask 1044484   ;;  %v3038_v34 = vpop.permute.xlu1 %3037 }
 0xc16   : > { %v2995_v51 = vrot.slane %v2994_v5, 1  ;;  %v3002_v58 = vrot.slane %v3001_v6, 2  ;;  %v2987_v57 = vadd.f32 %v2986_v3, %v2985_v62  ;;  %vm7736_vm14 = vcmask 1045509  }
 0xc17   : > { %v2969_v35 = vadd.f32 %v2968_v11, %v2967_v20  ;;  %v2978_v37 = vadd.f32 %v2977_v12, %v2976_v2  ;;  %vm7737_vm15 = vcmask 1046534   ;;  %vm7738_vm1 = vcmask 1047559  }
 0xc18   : > { %v2996_v44 = vadd.f32 %v2995_v51, %v2994_v5  ;;  %v3003_v24 = vadd.f32 %v3002_v58, %v3001_v6  ;;  %vm7739_vm12 = vcmp.gt.f32.partialorder %v5852_v40, 0.0  ;;  %vm7740_vm0 = vcmp.gt.f32.partialorder %v5849_v39, 0.0 }
 0xc19   : > { %v3016_v9 = vsel %vm7734_vm2, %v2969_v35, %v3015_v1  ;;  %vm7741_vm6 = vcmp.gt.f32.partialorder %v5839_v4, 0.0  ;;  %vm7742_vm9 = vcmp.gt.f32.partialorder %v5842_v32, 0.0  ;;  %vm7743_vm5 = vcmp.gt.f32.partialorder %v5845_v14, 0.0 }
 0xc1a   : > { %v3004_v19 = vrot.slane %v3003_v24, 1  ;;  %v3017_v63 = vsel %vm7735_vm4, %v2978_v37, %v3016_v9  ;;  %vm7744_vm10 = vcmp.gt.f32.partialorder %v5855_v45, 0.0  ;;  %vm3088_vm2 = vcmask 130052  }
 0xc1b   : > { %v3018_v21 = vsel %vm7736_vm14, %v2987_v57, %v3017_v63  ;;  %vm7745_vm4 = vcmp.gt.f32.partialorder %v5861_v47, 0.0  ;;  %vm7746_vm14 = vcmp.gt.f32.partialorder %v5864_v59, 0.0 }
 0xc1c   : > { %v3005_v33 = vadd.f32 %v3004_v19, %v3003_v24  ;;  %v3019_v10 = vsel %vm7737_vm15, %v2996_v44, %v3018_v21  ;;  %vm7747_vm15 = vcmask 1045509  }
 0xc1e   : > { %v3020_v17 = vsel %vm7738_vm1, %v3005_v33, %v3019_v10  ;;  %vm7748_vm1 = vcmask 1046534  }
 0xc1f   : > { %v6709_v50 = vadd.f32 %v3020_v17, %v6536_v16 }
 0xc21   : > { %v3040_v7 = vadd.f32 %v3038_v34, %v6709_v50 }
 0xc23   : > { %v3042_v46 = vrot.slane %v3040_v7, 4  ;;  %v3043_v42 = vrot.slane %v3040_v7, 5  ;;  %v3044_v54 = vrot.slane %v3040_v7, 6  ;;  %v3045_v49 = vrot.slane %v3040_v7, 7 }
 0xc24   : > { %v3046_v62 = vrot.slane %v3040_v7, 1  ;;  %v3047_v41 = vrot.slane %v3040_v7, 2  ;;  %v3048_v55 = vrot.slane %v3040_v7, 3  ;;  %v3061_v20 = vsel %vm7739_vm12, %v3040_v7, -1e+09 }
 0xc25   : > { %v3057_v8 = vsel %vm7740_vm0, %v3042_v46, -1e+09  ;;  %v3058_v16 = vsel %vm7741_vm6, %v3043_v42, -1e+09  ;;  %v3059_v2 = vsel %vm7742_vm9, %v3044_v54, -1e+09 }
 0xc26   : > { %v6722_v3 = vsel %vm7743_vm5, %v3045_v49, -1e+09  ;;  %v3073_v5 = vrot.slane %v3058_v16, 7  ;;  %v3075_v6 = vrot.slane %v3059_v2, 6  ;;  %v3062_v11 = vsel %vm7744_vm10, %v3046_v62, -1e+09 }
 0xc27   : > { %v3077_v12 = vrot.slane %v6722_v3, 5  ;;  %v3063_v51 = vsel %vm7745_vm4, %v3047_v41, -1e+09  ;;  %v3064_v58 = vsel %vm7746_vm14, %v3048_v55, -1e+09  ;;  %v3079_v35 = vrot.slane %v3061_v20, 4 }
 0xc28   : > { %v3074_v1 = vsel %vm7747_vm15, %v3073_v5, %v3057_v8  ;;  %v3080_v57 = vrot.slane %v3062_v11, 3  ;;  %v3082_v37 = vrot.slane %v3063_v51, 2  ;;  %vm7749_vm12 = vcmask 1047559  }
 0xc29   : > { %v3076_v44 = vsel %vm7748_vm1, %v3075_v6, %v3074_v1  ;;  %vm7750_vm0 = vcmask 1041409   ;;  %v3084_v19 = vrot.slane %v3064_v58, 1  ;;  %vm7751_vm6 = vcmask 1042434  }
 0xc2a   : > { %v3078_v24 = vsel %vm7749_vm12, %v3077_v12, %v3076_v44  ;;  %v3081_v9 = vsel %vm7750_vm0, %v3080_v57, %v3079_v35  ;;  %vm7752_vm9 = vcmask 1043459   ;;  %vm7525_vm5 = vcmask 125952  }
 0xc2b   : > { %v3089_v63 = vsel %vm3088_vm2, %v3078_v24, -inf  ;;  %v3083_v21 = vsel %vm7751_vm6, %v3082_v37, %v3081_v9 }
 0xc2c   : > { %3090 = vmax.xlane.f32.xlu0 %v3089_v63  ;;  %v3085_v33 = vsel %vm7752_vm9, %v3084_v19, %v3083_v21  ;;  %vm7759_vm9 = vcmask 1045509  }
 0xc2d   : > { %v3093_v10 = vsel %vm7525_vm5, %v3085_v33, -inf }
 0xc30   : > { %3094 = vmax.xlane.f32.xlu0 %v3093_v10 }
 0xcb9   : > { %v3091_v17 = vpop.xlane.xlu0 %3090 }
 0xcba   : > { %v3098_v34 = vrot.slane %v3091_v17, 1  ;;  %v3099_v7 = vrot.slane %v3091_v17, 2  ;;  %v3100_v46 = vrot.slane %v3091_v17, 3  ;;  %vm3113_vm10 = vcmp.ge.f32.partialorder %v3057_v8, %v3091_v17 }
 0xcbb   : > { %v3121_v42 = vsel %vm3113_vm10, %v5587_v56, 16  ;;  %v3178_v54 = vsub.f32 %v3057_v8, %v3091_v17  ;;  %vm7760_vm10 = vcmask 1046534  }
 0xcbc   : > { %vm3114_vm4 = vcmp.ge.f32.partialorder %v3058_v16, %v3098_v34  ;;  %vm6740_vm14 = vcmp.ge.f32.partialorder %v3059_v2, %v3099_v7  ;;  %v3179_v62 = vsub.f32 %v3058_v16, %v3098_v34  ;;  %v3180_v41 = vsub.f32 %v3059_v2, %v3099_v7 }
 0xcbd   : > { %v3122_v55 = vsel %vm3114_vm4, %v5587_v56, 16  ;;  %v3186_v5 = vmul.f32 1.442695, %v3178_v54  ;;  %v3095_v6 = vpop.xlane.xlu0 %3094  ;;  %vm6746_vm15 = vcmp.ge.f32.partialorder %v6722_v3, %v3100_v46  ;;  %v3123_v8 = vsel %vm6740_vm14, %v5587_v56, 16 }
 0xcbe   : > { %v3129_v1 = vrot.slane %v3122_v55, 7  ;;  %v3188_v35 = vmul.f32 1.442695, %v3179_v62  ;;  %v3190_v57 = vmul.f32 1.442695, %v3180_v41  ;;  %v3101_v37 = vrot.slane %v3095_v6, 4 }
 0xcbf   : > { %5026 = vpow2.f32 %v3186_v5  ;;  %v3102_v16 = vrot.slane %v3095_v6, 5  ;;  %v3103_v2 = vrot.slane %v3095_v6, 6  ;;  %v3104_v44 = vrot.slane %v3095_v6, 7 }
 0xcc0   : > { %5028 = vpow2.f32 %v3188_v35  ;;  %vm3117_vm1 = vcmp.ge.f32.partialorder %v3061_v20, %v3101_v37  ;;  %v3182_v24 = vsub.f32 %v3061_v20, %v3101_v37  ;;  %v3124_v9 = vsel %vm6746_vm15, %v5587_v56, 16 }
 0xcc1   : > { %vm3118_vm12 = vcmp.ge.f32.partialorder %v3062_v11, %v3102_v16  ;;  %vm3119_vm0 = vcmp.ge.f32.partialorder %v3063_v51, %v3103_v2  ;;  %vm6756_vm6 = vcmp.ge.f32.partialorder %v3064_v58, %v3104_v44  ;;  %v3125_v63 = vsel %vm3117_vm1, %v5587_v56, 16 }
 0xcc2   : > { %v3126_v21 = vsel %vm3118_vm12, %v5587_v56, 16  ;;  %v3127_v33 = vsel %vm3119_vm0, %v5587_v56, 16  ;;  %v3135_v10 = vrot.slane %v3125_v63, 4  ;;  %v3183_v17 = vsub.f32 %v3062_v11, %v3102_v16  ;;  %vm7765_vm12 = vmmov %vm7759_vm9 }
 0xcc3   : > { %v3136_v34 = vrot.slane %v3126_v21, 3  ;;  %v3138_v20 = vrot.slane %v3127_v33, 2  ;;  %v3184_v7 = vsub.f32 %v3063_v51, %v3103_v2  ;;  %v3185_v54 = vsub.f32 %v3064_v58, %v3104_v44 }
 0xcc4   : > { %v3194_v49 = vmul.f32 1.442695, %v3182_v24  ;;  %v3196_v62 = vmul.f32 1.442695, %v3183_v17  ;;  %v3130_v41 = vsel %vm7759_vm9, %v3129_v1, %v3121_v42  ;;  %v3131_v55 = vrot.slane %v3123_v8, 6  ;;  %vm7768_vm9 = vmmov %vm7760_vm10 }
 0xcc5   : > { %v3198_v5 = vmul.f32 1.442695, %v3184_v7  ;;  %v3200_v6 = vmul.f32 1.442695, %v3185_v54  ;;  %v3133_v12 = vrot.slane %v3124_v9, 5  ;;  %v3128_v35 = vsel %vm6756_vm6, %v5587_v56, 16 }
 0xcc6   : > { %5030 = vpow2.f32 %v3194_v49  ;;  %v3132_v37 = vsel %vm7760_vm10, %v3131_v55, %v3130_v41  ;;  %vm7761_vm4 = vcmask 1041409   ;;  %v3140_v16 = vrot.slane %v3128_v35, 1 }
 0xcc7   : > { %v3137_v11 = vsel %vm7761_vm4, %v3136_v34, %v3135_v10  ;;  %5032 = vpow2.f32 %v3196_v62  ;;  %vm7762_vm14 = vcmask 1047559   ;;  %vm7763_vm15 = vcmask 1042434   ;;  %vm7766_vm0 = vmmov %vm7761_vm4 }
 0xcc8   : > { %v3134_v51 = vsel %vm7762_vm14, %v3133_v12, %v3132_v37  ;;  %v3139_v58 = vsel %vm7763_vm15, %v3138_v20, %v3137_v11  ;;  %v3181_v42 = vsub.f32 %v6722_v3, %v3100_v46  ;;  %5034 = vpow2.f32 %v3198_v5  ;;  %vm7767_vm6 = vmmov %vm7763_vm15 }
 0xcc9   : > { %v3142_v8 = vsel %vm3088_vm2, %v3134_v51, 2147483647  ;;  %vm7764_vm1 = vcmask 1043459   ;;  %v5027_v2 = vpop.eup %5026  ;;  %5036 = vpow2.f32 %v3190_v57  ;;  %vm7771_vm4 = vmmov %vm7762_vm14 }
 0xcca   : > { %v3141_v1 = vsel %vm7764_vm1, %v3140_v16, %v3139_v58  ;;  %v3144_v44 = vshra.s32 %v3142_v8, 16  ;;  %v5029_v9 = vpop.eup %5028  ;;  %v3192_v63 = vmul.f32 1.442695, %v3181_v42  ;;  %5038 = vpow2.f32 %v3200_v6  ;;  %vm7769_vm10 = vmmov %vm7764_vm1 }
 0xccb   : > { %v3157_v24 = vsel %vm7525_vm5, %v3141_v1, 2147483647  ;;  %v3210_v33 = vrot.slane %v5029_v9, 7  ;;  %v3143_v16 = vand.u32 65535, %v3142_v8  ;;  %vm3172_vm1 = vcmp.eq.s32.totalorder %v5587_v56, 4 }
 0xccc   : > { %v3159_v19 = vshra.s32 %v3157_v24, 16  ;;  %v3146_v21 = vcvt.s32.f32 %v3144_v44  ;;  %5040 = vpow2.f32 %v3192_v63  ;;  %v3158_v51 = vand.u32 65535, %v3157_v24 }
 0xccd   : > { %v3211_v3 = vsel %vm7765_vm12, %v3210_v33, %v5027_v2  ;;  %v3145_v42 = vcvt.s32.f32 %v3143_v16  ;;  %v6817_v16 = vld [vmem:[#allocation4 + $0x58] sm:$0xff] }
 0xcce   : > { %v3161_v10 = vcvt.s32.f32 %v3159_v19  ;;  %3147 = vmin.xlane.f32.xlu1 %v3146_v21  ;;  %v3160_v44 = vcvt.s32.f32 %v3158_v51 }
 0xcd0   : > { %3162 = vmin.xlane.f32.xlu0 %v3161_v10  ;;  %v5031_v46 = vpop.eup %5030 }
 0xcd1   : > { %v5033_v17 = vpop.eup %5032  ;;  %v3216_v34 = vrot.slane %v5031_v46, 4 }
 0xcd2   : > { %v5035_v20 = vpop.eup %5034  ;;  %v3217_v7 = vrot.slane %v5033_v17, 3 }
 0xcd3   : > { %v5037_v54 = vpop.eup %5036  ;;  %v3219_v49 = vrot.slane %v5035_v20, 2 }
 0xcd4   : > { %v5039_v57 = vpop.eup %5038  ;;  %v3212_v62 = vrot.slane %v5037_v54, 6  ;;  %v3218_v41 = vsel %vm7766_vm0, %v3217_v7, %v3216_v34 }
 0xcd5   : > { %v3220_v55 = vsel %vm7767_vm6, %v3219_v49, %v3218_v41  ;;  %v3221_v5 = vrot.slane %v5039_v57, 1 }
 0xcd6   : > { %v5041_v6 = vpop.eup %5040  ;;  %v3213_v12 = vsel %vm7768_vm9, %v3212_v62, %v3211_v3 }
 0xcd7   : > { %v3214_v35 = vrot.slane %v5041_v6, 5  ;;  %v6780_v37 = vsel %vm7769_vm10, %v3221_v5, %v3220_v55 }
 0xcd8   : > { %7770 = vst [vmem:[#allocation13_spill] sm:$0xff] %v6780_v37 }
 0xcd9   : > { %v6783_v11 = vsel %vm7771_vm4, %v3214_v35, %v3213_v12  ;;  %v6814_v12 = vld [vmem:[#allocation4 + $0x50] sm:$0xff] }
 0xd5b   : > { %v3148_v58 = vpop.xlane.xlu1 %3147 }
 0xd5c   : > { %vm3149_vm14 = vcmp.eq.f32.partialorder %v3146_v21, %v3148_v58  ;;  %v3154_v19 = vcvt.f32.s32 %v3148_v58  ;;  %v7772_v21 = vrot.slane %v6623_v18, 7 }
 0xd5d   : > { %v3163_v1 = vpop.xlane.xlu0 %3162  ;;  %v3150_v2 = vsel %vm3149_vm14, %v3145_v42, inf }
 0xd5e   : > { %vm3164_vm15 = vcmp.eq.f32.partialorder %v3161_v10, %v3163_v1  ;;  %3151 = vmin.xlane.f32.xlu0 %v3150_v2  ;;  %v3155_v33 = vshll.u32 %v3154_v19, 16  ;;  %v3169_v46 = vcvt.f32.s32 %v3163_v1 }
 0xd5f   : > { %v3165_v9 = vsel %vm3164_vm15, %v3160_v44, inf }
 0xd60   : > { %v3170_v20 = vshll.u32 %v3169_v46, 16 }
 0xd62   : > { %3166 = vmin.xlane.f32.xlu0 %v3165_v9 }
 0xd78   : > { %3441 = vrot.lane.b32.xlu0 %v5791_v61, %s5236_s29 }
 0xdeb   : > { %v3152_v63 = vpop.xlane.xlu0 %3151 }
 0xdec   : > { %v3153_v3 = vcvt.f32.s32 %v3152_v63 }
 0xdee   : > { %v3156_v8 = vadd.s32 %v3155_v33, %v3153_v3 }
 0xdef   : > { %v3167_v24 = vpop.xlane.xlu0 %3166 }
 0xdf0   : > { %v6792_v10 = vsel %vm3172_vm1, %v3156_v8, %v7772_v21  ;;  %v3245_v17 = vrot.slane %v3156_v8, %v5983_v43  ;;  %v3249_v34 = vrot.slane %v3156_v8, %v5986_v48  ;;  %v3253_v61 = vrot.slane %v3156_v8, %v5989_v52 }
 0xdf1   : > { %v3257_v7 = vrot.slane %v3156_v8, %v5992_v53  ;;  %v3168_v54 = vcvt.f32.s32 %v3167_v24 }
 0xdf2   : > { %vm3274_vm12 = vcmp.eq.s32.totalorder %v5428_v22, %v3245_v17  ;;  %vm3275_vm0 = vcmp.eq.s32.totalorder %v5997_v29, %v3245_v17  ;;  %vm3276_vm6 = vcmp.eq.s32.totalorder %v5428_v22, %v3249_v34  ;;  %vm3277_vm9 = vcmp.eq.s32.totalorder %v5997_v29, %v3249_v34 }
 0xdf3   : > { %vm3278_vm10 = vcmp.eq.s32.totalorder %v5428_v22, %v3253_v61  ;;  %vm3279_vm4 = vcmp.eq.s32.totalorder %v5997_v29, %v3253_v61  ;;  %vm3280_vm14 = vcmp.eq.s32.totalorder %v5428_v22, %v3257_v7  ;;  %vm3281_vm15 = vcmp.eq.s32.totalorder %v5997_v29, %v3257_v7 }
 0xdf4   : > { %v4718_v18 = vsel %vm3274_vm12, 1.0, %v7606_v0  ;;  %v4719_v49 = vsel %vm3275_vm0, 1.0, %v7606_v0  ;;  %v4720_v57 = vsel %vm3276_vm6, 1.0, %v7606_v0  ;;  %v4721_v62 = vsel %vm3277_vm9, 1.0, %v7606_v0 }
 0xdf5   : > { %v4722_v41 = vsel %vm3278_vm10, 1.0, %v7606_v0  ;;  %v4723_v55 = vsel %vm3279_vm4, 1.0, %v7606_v0  ;;  %v4724_v5 = vsel %vm3280_vm14, 1.0, %v7606_v0  ;;  %v4725_v6 = vsel %vm3281_vm15, 1.0, %v7606_v0 }
 0xdf6   : > { %v3322_v35 = vmul.f32 %v6814_v12, %v4718_v18  ;;  %v3323_v51 = vmul.f32 %v6817_v16, %v4719_v49  ;;  %v3324_v58 = vmul.f32 %v6814_v12, %v4720_v57  ;;  %v3325_v42 = vmul.f32 %v6817_v16, %v4721_v62 }
 0xdf7   : > { %v3326_v1 = vmul.f32 %v6814_v12, %v4722_v41  ;;  %v3327_v2 = vmul.f32 %v6817_v16, %v4723_v55  ;;  %v3328_v44 = vmul.f32 %v6814_v12, %v4724_v5  ;;  %v3329_v9 = vmul.f32 %v6817_v16, %v4725_v6 }
 0xdf8   : > { %vm7773_vm12 = vcmask 130048   ;;  %v3171_v7 = vadd.s32 %v3170_v20, %v3168_v54 }
 0xdf9   : > { %v3338_v19 = vsel %vm7773_vm12, %v3322_v35, 0.0  ;;  %vm7774_vm0 = vmmov %vm7773_vm12 }
 0xdfa   : > { %v3339_v63 = vsel %vm7774_vm0, %v3323_v51, 0.0  ;;  %vm7775_vm6 = vmmov %vm7774_vm0  ;;  %v6838_v55 = vsel %vm3172_vm1, %v3171_v7, %v6689_v36  ;;  %v3261_v5 = vrot.slane %v3171_v7, %v5434_v23  ;;  %v3265_v6 = vrot.slane %v3171_v7, %v5439_v25 }
 0xdfb   : > { %v3347_v33 = vsel %vm7775_vm6, %v3324_v58, 0.0  ;;  %vm7776_vm9 = vmmov %vm7774_vm0  ;;  %v3340_v46 = vadd.f32 %v3339_v63, %v3338_v19  ;;  %v3269_v58 = vrot.slane %v3171_v7, %v5442_v26  ;;  %v3273_v20 = vrot.slane %v3171_v7, %v5445_v27 }
 0xdfc   : > { %v3348_v3 = vsel %vm7776_vm9, %v3325_v42, 0.0  ;;  %vm7777_vm10 = vmmov %vm7774_vm0  ;;  %vm3282_vm12 = vcmp.eq.s32.totalorder %v5428_v22, %v3261_v5  ;;  %vm3284_vm6 = vcmp.eq.s32.totalorder %v5428_v22, %v3265_v6  ;;  %vm3285_vm9 = vcmp.eq.s32.totalorder %v5997_v29, %v3265_v6 }
 0xdfd   : > { %v3349_v8 = vadd.f32 %v3348_v3, %v3347_v33  ;;  %v3356_v24 = vsel %vm7777_vm10, %v3326_v1, 0.0  ;;  %vm7778_vm4 = vmmov %vm7774_vm0  ;;  %v3341_v18 = vrot.slane %v3340_v46, 4  ;;  %vm3286_vm1 = vcmp.eq.s32.totalorder %v5428_v22, %v3269_v58 }
 0xdfe   : > { %v3357_v21 = vsel %vm7778_vm4, %v3327_v2, 0.0  ;;  %vm7779_vm14 = vmmov %vm7774_vm0  ;;  %vm3287_vm10 = vcmp.eq.s32.totalorder %v5997_v29, %v3269_v58  ;;  %vm3288_vm4 = vcmp.eq.s32.totalorder %v5428_v22, %v3273_v20  ;;  %v4726_v36 = vsel %vm3282_vm12, 1.0, %v7606_v0 }
 0xdff   : > { %v3358_v17 = vadd.f32 %v3357_v21, %v3356_v24  ;;  %v3365_v34 = vsel %vm7779_vm14, %v3328_v44, 0.0  ;;  %vm7780_vm15 = vmmov %vm7774_vm0  ;;  %v3350_v49 = vrot.slane %v3349_v8, 4  ;;  %v3342_v35 = vadd.f32 %v3341_v18, %v3340_v46 }
 0xe00   : > { %v3366_v61 = vsel %vm7780_vm15, %v3329_v9, 0.0  ;;  %vm3283_vm0 = vcmp.eq.s32.totalorder %v5997_v29, %v3261_v5  ;;  %vm3289_vm14 = vcmp.eq.s32.totalorder %v5997_v29, %v3273_v20  ;;  %v4728_v42 = vsel %vm3284_vm6, 1.0, %v7606_v0  ;;  %vm7781_vm12 = vmmov %vm7780_vm15 }
 0xe01   : > { %v3367_v57 = vadd.f32 %v3366_v61, %v3365_v34  ;;  %v3359_v41 = vrot.slane %v3358_v17, 4  ;;  %v3351_v51 = vadd.f32 %v3350_v49, %v3349_v8  ;;  %v4727_v54 = vsel %vm3283_vm0, 1.0, %v7606_v0  ;;  %vm7782_vm0 = vmmov %vm7781_vm12 }
 0xe02   : > { %v4729_v1 = vsel %vm3285_vm9, 1.0, %v7606_v0  ;;  %v4730_v2 = vsel %vm3286_vm1, 1.0, %v7606_v0  ;;  %v4731_v44 = vsel %vm3287_vm10, 1.0, %v7606_v0  ;;  %v3330_v9 = vmul.f32 %v6814_v12, %v4726_v36  ;;  %vm7783_vm6 = vmmov %vm7782_vm0 }
 0xe03   : > { %v3331_v19 = vmul.f32 %v6817_v16, %v4727_v54  ;;  %v3332_v63 = vmul.f32 %v6814_v12, %v4728_v42  ;;  %v3333_v33 = vmul.f32 %v6817_v16, %v4729_v1  ;;  %v3334_v3 = vmul.f32 %v6814_v12, %v4730_v2  ;;  %vm7784_vm9 = vmmov %vm7782_vm0 }
 0xe04   : > { %v3335_v46 = vmul.f32 %v6817_v16, %v4731_v44  ;;  %v3374_v8 = vsel %vm7780_vm15, %v3330_v9, 0.0  ;;  %v3578_v21 = vrot.slane %v6838_v55, 7  ;;  %v4732_v34 = vsel %vm3288_vm4, 1.0, %v7606_v0  ;;  %vm7785_vm1 = vmmov %vm7782_vm0 }
 0xe05   : > { %v3375_v24 = vsel %vm7781_vm12, %v3331_v19, 0.0  ;;  %v4733_v61 = vsel %vm3289_vm14, 1.0, %v7606_v0  ;;  %v3336_v7 = vmul.f32 %v6814_v12, %v4732_v34  ;;  %v3343_v18 = vrot.slane %v3342_v35, 2  ;;  %vm7786_vm10 = vmmov %vm7782_vm0 }
 0xe06   : > { %v3352_v49 = vrot.slane %v3351_v51, 2  ;;  %v3337_v5 = vmul.f32 %v6817_v16, %v4733_v61  ;;  %v3360_v6 = vadd.f32 %v3359_v41, %v3358_v17  ;;  %v3368_v58 = vrot.slane %v3367_v57, 4  ;;  %vm7787_vm4 = vmmov %vm7782_vm0 }
 0xe07   : > { %v3376_v36 = vadd.f32 %v3375_v24, %v3374_v8  ;;  %v3344_v54 = vadd.f32 %v3343_v18, %v3342_v35  ;;  %v3383_v55 = vsel %vm7782_vm0, %v3332_v63, 0.0  ;;  %v3384_v1 = vsel %vm7783_vm6, %v3333_v33, 0.0 }
 0xe08   : > { %v3353_v42 = vadd.f32 %v3352_v49, %v3351_v51  ;;  %v3361_v2 = vrot.slane %v3360_v6, 2  ;;  %v3369_v44 = vadd.f32 %v3368_v58, %v3367_v57  ;;  %v3385_v20 = vadd.f32 %v3384_v1, %v3383_v55 }
 0xe09   : > { %v3377_v9 = vrot.slane %v3376_v36, 4  ;;  %v3345_v19 = vrot.slane %v3344_v54, 1  ;;  %v3392_v34 = vsel %vm7784_vm9, %v3334_v3, 0.0  ;;  %v3393_v37 = vsel %vm7785_vm1, %v3335_v46, 0.0 }
 0xe0a   : > { %v3354_v62 = vrot.slane %v3353_v42, 1  ;;  %v3362_v61 = vadd.f32 %v3361_v2, %v3360_v6  ;;  %v3370_v17 = vrot.slane %v3369_v44, 2  ;;  %v3386_v8 = vrot.slane %v3385_v20, 4 }
 0xe0b   : > { %v3378_v41 = vadd.f32 %v3377_v9, %v3376_v36  ;;  %v3346_v35 = vadd.f32 %v3345_v19, %v3344_v54  ;;  %v3394_v24 = vadd.f32 %v3393_v37, %v3392_v34  ;;  %v3401_v63 = vsel %vm7786_vm10, %v3336_v7, 0.0 }
 0xe0c   : > { %v3355_v51 = vadd.f32 %v3354_v62, %v3353_v42  ;;  %v3363_v33 = vrot.slane %v3362_v61, 1  ;;  %v3371_v18 = vadd.f32 %v3370_v17, %v3369_v44  ;;  %v3387_v49 = vadd.f32 %v3386_v8, %v3385_v20 }
 0xe0d   : > { %v3379_v57 = vrot.slane %v3378_v41, 2  ;;  %v3395_v58 = vrot.slane %v3394_v24, 4  ;;  %v3402_v55 = vsel %vm7787_vm4, %v3337_v5, 0.0  ;;  %vm7788_vm14 = vcmask 1041409  }
 0xe0e   : > { %v3418_v3 = vsel %vm7788_vm14, %v3355_v51, %v3346_v35  ;;  %v7789_v46 = vrot.slane %v6792_v10, 7  ;;  %v3364_v36 = vadd.f32 %v3363_v33, %v3362_v61  ;;  %v3372_v54 = vrot.slane %v3371_v18, 1 }
 0xe0f   : > { %v3380_v62 = vadd.f32 %v3379_v57, %v3378_v41  ;;  %v3388_v37 = vrot.slane %v3387_v49, 2  ;;  %v3396_v42 = vadd.f32 %v3395_v58, %v3394_v24  ;;  %v3403_v7 = vadd.f32 %v3402_v55, %v3401_v63 }
 0xe10   : > { %v6885_v6 = vsel %vm2362_vm11, %v7789_v46, %v3578_v21  ;;  %v3373_v1 = vadd.f32 %v3372_v54, %v3371_v18  ;;  %vm7790_vm15 = vcmask 1042434   ;;  %vm7791_vm12 = vcmask 1043459  }
 0xe11   : > { %v3381_v2 = vrot.slane %v3380_v62, 1  ;;  %v3389_v44 = vadd.f32 %v3388_v37, %v3387_v49  ;;  %v3419_v9 = vsel %vm7790_vm15, %v3364_v36, %v3418_v3  ;;  %v3397_v20 = vrot.slane %v3396_v42, 2  ;;  %v3442_v3 = vpop.permute.xlu0 %3441 }
 0xe12   : > { %v3404_v5 = vrot.slane %v3403_v7, 4  ;;  %v3420_v17 = vsel %vm7791_vm12, %v3373_v1, %v3419_v9  ;;  %vm7792_vm0 = vcmask 1044484   ;;  %vm7793_vm6 = vcmask 1045509  }
 0xe13   : > { %v3382_v19 = vadd.f32 %v3381_v2, %v3380_v62  ;;  %v3390_v34 = vrot.slane %v3389_v44, 1  ;;  %v3398_v8 = vadd.f32 %v3397_v20, %v3396_v42  ;;  %vm7794_vm9 = vcmask 1046534  }
 0xe14   : > { %v3405_v21 = vadd.f32 %v3404_v5, %v3403_v7  ;;  %vm7795_vm1 = vcmask 1047559   ;;  %vm3492_vm10 = vcmask 130053   ;;  %vm7796_vm4 = vcmp.gt.f32.partialorder %v5855_v45, 0.0 }
 0xe15   : > { %v3391_v35 = vadd.f32 %v3390_v34, %v3389_v44  ;;  %v3421_v61 = vsel %vm7792_vm0, %v3382_v19, %v3420_v17  ;;  %v3399_v41 = vrot.slane %v3398_v8, 1  ;;  %vm7797_vm14 = vcmp.gt.f32.partialorder %v5849_v39, 0.0 }
 0xe16   : > { %v3406_v51 = vrot.slane %v3405_v21, 2  ;;  %vm7798_vm15 = vcmp.gt.f32.partialorder %v5839_v4, 0.0  ;;  %vm7799_vm12 = vcmp.gt.f32.partialorder %v5842_v32, 0.0  ;;  %vm7800_vm0 = vcmp.gt.f32.partialorder %v5845_v14, 0.0 }
 0xe17   : > { %v3422_v63 = vsel %vm7793_vm6, %v3391_v35, %v3421_v61  ;;  %v3400_v33 = vadd.f32 %v3399_v41, %v3398_v8  ;;  %vm7801_vm6 = vcmp.gt.f32.partialorder %v5852_v40, 0.0 }
 0xe18   : > { %v3407_v24 = vadd.f32 %v3406_v51, %v3405_v21 }
 0xe19   : > { %v3423_v57 = vsel %vm7794_vm9, %v3400_v33, %v3422_v63  ;;  %vm7802_vm9 = vcmp.gt.f32.partialorder %v5861_v47, 0.0 }
 0xe1a   : > { %v3408_v18 = vrot.slane %v3407_v24, 1 }
 0xe1c   : > { %v3409_v49 = vadd.f32 %v3408_v18, %v3407_v24 }
 0xe1e   : > { %v3424_v58 = vsel %vm7795_vm1, %v3409_v49, %v3423_v57  ;;  %vm7803_vm1 = vcmp.gt.f32.partialorder %v5864_v59, 0.0 }
 0xe1f   : > { %v6894_v55 = vadd.f32 %v3424_v58, %v6709_v50 }
 0xe21   : > { %v3444_v46 = vadd.f32 %v3442_v3, %v6894_v55 }
 0xe23   : > { %v3446_v36 = vrot.slane %v3444_v46, 3  ;;  %v3447_v54 = vrot.slane %v3444_v46, 4  ;;  %v3448_v62 = vrot.slane %v3444_v46, 5  ;;  %v3449_v37 = vrot.slane %v3444_v46, 6 }
 0xe24   : > { %v3450_v42 = vrot.slane %v3444_v46, 7  ;;  %v3451_v7 = vrot.slane %v3444_v46, 1  ;;  %v3452_v1 = vrot.slane %v3444_v46, 2  ;;  %v3466_v2 = vsel %vm7796_vm4, %v3444_v46, -1e+09 }
 0xe25   : > { %v3461_v44 = vsel %vm7797_vm14, %v3446_v36, -1e+09  ;;  %v3462_v50 = vsel %vm7798_vm15, %v3447_v54, -1e+09  ;;  %v3463_v9 = vsel %vm7799_vm12, %v3448_v62, -1e+09 }
 0xe26   : > { %v3477_v20 = vrot.slane %v3462_v50, 7  ;;  %v3479_v5 = vrot.slane %v3463_v9, 6  ;;  %v3464_v19 = vsel %vm7800_vm0, %v3449_v37, -1e+09  ;;  %v3465_v34 = vsel %vm7801_vm6, %v3450_v42, -1e+09 }
 0xe27   : > { %v3467_v17 = vsel %vm7802_vm9, %v3451_v7, -1e+09  ;;  %v6913_v8 = vsel %vm7803_vm1, %v3452_v1, -1e+09  ;;  %v3481_v21 = vrot.slane %v3464_v19, 5  ;;  %v3482_v35 = vrot.slane %v3465_v34, 4 }
 0xe28   : > { %vm7804_vm4 = vcmask 1046534   ;;  %v3484_v41 = vrot.slane %v3466_v2, 3  ;;  %vm7805_vm14 = vcmask 1047559   ;;  %vm7806_vm15 = vcmask 1041409  }
 0xe29   : > { %v3478_v61 = vsel %vm7804_vm4, %v3477_v20, %v3461_v44  ;;  %v3483_v24 = vsel %vm7806_vm15, %v3482_v35, %v3481_v21  ;;  %v3486_v63 = vrot.slane %v3467_v17, 2  ;;  %vm7807_vm12 = vcmask 1042434  }
 0xe2a   : > { %v3480_v51 = vsel %vm7805_vm14, %v3479_v5, %v3478_v61  ;;  %v3485_v18 = vsel %vm7807_vm12, %v3484_v41, %v3483_v24  ;;  %v3488_v57 = vrot.slane %v6913_v8, 1  ;;  %vm7524_vm0 = vcmask 126976  }
 0xe2b   : > { %v3493_v33 = vsel %vm3492_vm10, %v3480_v51, -inf  ;;  %vm7808_vm6 = vcmask 1043459   ;;  %vm7809_vm9 = vcmask 1044484  }
 0xe2c   : > { %3494 = vmax.xlane.f32.xlu1 %v3493_v33  ;;  %v3487_v49 = vsel %vm7808_vm6, %v3486_v63, %v3485_v18 }
 0xe2d   : > { %v3489_v58 = vsel %vm7809_vm9, %v3488_v57, %v3487_v49 }
 0xe2e   : > { %v3497_v3 = vsel %vm7524_vm0, %v3489_v58, -inf }
 0xe2f   : > { %3498 = vmax.xlane.f32.xlu0 %v3497_v3 }
 0xeb9   : > { %v3495_v46 = vpop.xlane.xlu1 %3494 }
 0xeba   : > { %v3502_v36 = vrot.slane %v3495_v46, 1  ;;  %v3503_v54 = vrot.slane %v3495_v46, 2  ;;  %vm3517_vm1 = vcmp.ge.f32.partialorder %v3461_v44, %v3495_v46  ;;  %v3582_v62 = vsub.f32 %v3461_v44, %v3495_v46 }
 0xebb   : > { %v3525_v37 = vsel %vm3517_vm1, %v5587_v56, 16  ;;  %vm7814_vm1 = vcmask 1046534  }
 0xebc   : > { %vm3518_vm4 = vcmp.ge.f32.partialorder %v3462_v50, %v3502_v36  ;;  %vm6925_vm14 = vcmp.ge.f32.partialorder %v3463_v9, %v3503_v54  ;;  %v3583_v7 = vsub.f32 %v3462_v50, %v3502_v36  ;;  %v3584_v1 = vsub.f32 %v3463_v9, %v3503_v54  ;;  %v3499_v20 = vpop.xlane.xlu0 %3498 }
 0xebd   : > { %v3526_v5 = vsel %vm3518_vm4, %v5587_v56, 16  ;;  %v3590_v21 = vmul.f32 1.442695, %v3582_v62  ;;  %v3504_v35 = vrot.slane %v3499_v20, 3  ;;  %v3505_v61 = vrot.slane %v3499_v20, 4 }
 0xebe   : > { %v3533_v41 = vrot.slane %v3526_v5, 7  ;;  %v3592_v51 = vmul.f32 1.442695, %v3583_v7  ;;  %v3594_v24 = vmul.f32 1.442695, %v3584_v1  ;;  %v3506_v63 = vrot.slane %v3499_v20, 5 }
 0xebf   : > { %5042 = vpow2.f32 %v3590_v21  ;;  %v3507_v44 = vrot.slane %v3499_v20, 6  ;;  %v3508_v33 = vrot.slane %v3499_v20, 7  ;;  %vm3520_vm15 = vcmp.ge.f32.partialorder %v3464_v19, %v3504_v35 }
 0xec0   : > { %5044 = vpow2.f32 %v3592_v51  ;;  %vm3521_vm12 = vcmp.ge.f32.partialorder %v3465_v34, %v3505_v61  ;;  %vm3522_vm6 = vcmp.ge.f32.partialorder %v3466_v2, %v3506_v63  ;;  %v3528_v50 = vsel %vm3520_vm15, %v5587_v56, 16 }
 0xec1   : > { %vm6931_vm9 = vcmp.ge.f32.partialorder %v3467_v17, %v3507_v44  ;;  %v3529_v18 = vsel %vm3521_vm12, %v5587_v56, 16  ;;  %v3530_v57 = vsel %vm3522_vm6, %v5587_v56, 16  ;;  %v3537_v49 = vrot.slane %v3528_v50, 5 }
 0xec2   : > { %v3538_v58 = vrot.slane %v3529_v18, 4  ;;  %v3540_v3 = vrot.slane %v3530_v57, 3  ;;  %v3585_v46 = vsub.f32 %v3464_v19, %v3504_v35  ;;  %v3586_v36 = vsub.f32 %v3465_v34, %v3505_v61 }
 0xec3   : > { %v3587_v54 = vsub.f32 %v3466_v2, %v3506_v63  ;;  %v3588_v62 = vsub.f32 %v3467_v17, %v3507_v44  ;;  %v3527_v7 = vsel %vm6925_vm14, %v5587_v56, 16  ;;  %v3534_v1 = vsel %vm7814_vm1, %v3533_v41, %v3525_v37 }
 0xec4   : > { %v3596_v20 = vmul.f32 1.442695, %v3585_v46  ;;  %v3598_v5 = vmul.f32 1.442695, %v3586_v36  ;;  %v3535_v21 = vrot.slane %v3527_v7, 6  ;;  %vm3524_vm4 = vcmp.ge.f32.partialorder %v6913_v8, %v3508_v33 }
 0xec5   : > { %v3600_v51 = vmul.f32 1.442695, %v3587_v54  ;;  %v3602_v15 = vmul.f32 1.442695, %v3588_v62  ;;  %v3531_v19 = vsel %vm6931_vm9, %v5587_v56, 16  ;;  %v3532_v2 = vsel %vm3524_vm4, %v5587_v56, 16 }
 0xec6   : > { %5046 = vpow2.f32 %v3596_v20  ;;  %vm7815_vm15 = vcmask 1047559   ;;  %vm7816_vm12 = vcmask 1041409   ;;  %v3542_v42 = vrot.slane %v3531_v19, 2 }
 0xec7   : > { %v3536_v34 = vsel %vm7815_vm15, %v3535_v21, %v3534_v1  ;;  %v3539_v17 = vsel %vm7816_vm12, %v3538_v58, %v3537_v49  ;;  %5048 = vpow2.f32 %v3598_v5  ;;  %vm7817_vm14 = vcmask 1042434   ;;  %vm7820_vm4 = vmmov %vm7816_vm12 }
 0xec8   : > { %v3546_v37 = vsel %vm3492_vm10, %v3536_v34, 2147483647  ;;  %v3541_v35 = vsel %vm7817_vm14, %v3540_v3, %v3539_v17  ;;  %v3544_v61 = vrot.slane %v3532_v2, 1  ;;  %5050 = vpow2.f32 %v3600_v51  ;;  %vm7821_vm15 = vmmov %vm7817_vm14 }
 0xec9   : > { %v3548_v41 = vshra.s32 %v3546_v37, 16  ;;  %vm7818_vm6 = vcmask 1043459   ;;  %v5043_v44 = vpop.eup %5042  ;;  %vm7819_vm9 = vcmask 1044484   ;;  %5052 = vpow2.f32 %v3594_v24 }
 0xeca   : > { %v3543_v63 = vsel %vm7818_vm6, %v3542_v42, %v3541_v35  ;;  %v3589_v9 = vsub.f32 %v6913_v8, %v3508_v33  ;;  %v5045_v18 = vpop.eup %5044  ;;  %5054 = vpow2.f32 %v3602_v15  ;;  %vm7822_vm12 = vcmask 1047559   ;;  %vm7823_vm14 = vmmov %vm7818_vm6 }
 0xecb   : > { %v3545_v50 = vsel %vm7819_vm9, %v3544_v61, %v3543_v63  ;;  %v3550_v57 = vcvt.s32.f32 %v3548_v41  ;;  %v3614_v36 = vrot.slane %v5045_v18, 7  ;;  %vm7824_vm6 = vmmov %vm7819_vm9  ;;  %v3547_v61 = vand.u32 65535, %v3546_v37 }
 0xecc   : > { %v3561_v49 = vsel %vm7524_vm0, %v3545_v50, 2147483647  ;;  %v3604_v46 = vmul.f32 1.442695, %v3589_v9 }
 0xecd   : > { %v3563_v58 = vshra.s32 %v3561_v49, 16  ;;  %3551 = vmin.xlane.f32.xlu1 %v3550_v57  ;;  %v3615_v8 = vsel %vm7814_vm1, %v3614_v36, %v5043_v44  ;;  %v3549_v63 = vcvt.s32.f32 %v3547_v61  ;;  %v3562_v44 = vand.u32 65535, %v3561_v49 }
 0xece   : > { %5056 = vpow2.f32 %v3604_v46 }
 0xecf   : > { %v3565_v3 = vcvt.s32.f32 %v3563_v58  ;;  %v3564_v18 = vcvt.s32.f32 %v3562_v44 }
 0xed0   : > { %v5047_v54 = vpop.eup %5046 }
 0xed1   : > { %3566 = vmin.xlane.f32.xlu1 %v3565_v3  ;;  %v5049_v62 = vpop.eup %5048  ;;  %v3618_v7 = vrot.slane %v5047_v54, 5 }
 0xed2   : > { %v5051_v1 = vpop.eup %5050  ;;  %v3619_v20 = vrot.slane %v5049_v62, 4 }
 0xed3   : > { %v5053_v24 = vpop.eup %5052  ;;  %v3621_v33 = vrot.slane %v5051_v1, 3 }
 0xed4   : > { %v5055_v5 = vpop.eup %5054  ;;  %v3616_v21 = vrot.slane %v5053_v24, 6  ;;  %v3620_v15 = vsel %vm7820_vm4, %v3619_v20, %v3618_v7  ;;  %vm3576_vm4 = vcmp.eq.s32.totalorder %v5587_v56, 5 }
 0xed5   : > { %v3622_v51 = vsel %vm7821_vm15, %v3621_v33, %v3620_v15  ;;  %v3623_v19 = vrot.slane %v5055_v5, 2 }
 0xed6   : > { %v6958_v2 = vsel %vm7822_vm12, %v3616_v21, %v3615_v8 }
 0xed7   : > { %v3624_v17 = vsel %vm7823_vm14, %v3623_v19, %v3622_v51 }
 0xed8   : > { %v5057_v34 = vpop.eup %5056 }
 0xed9   : > { %v3625_v42 = vrot.slane %v5057_v34, 1 }
 0xedb   : > { %v6962_v35 = vsel %vm7824_vm6, %v3625_v42, %v3624_v17 }
 0xf5a   : > { %v3552_v41 = vpop.xlane.xlu1 %3551 }
 0xf5b   : > { %vm3553_vm9 = vcmp.eq.f32.partialorder %v3550_v57, %v3552_v41  ;;  %v3558_v46 = vcvt.f32.s32 %v3552_v41  ;;  %v7825_v57 = vrot.slane %v6792_v10, 7 }
 0xf5c   : > { %v3554_v50 = vsel %vm3553_vm9, %v3549_v63, inf }
 0xf5d   : > { %3555 = vmin.xlane.f32.xlu1 %v3554_v50  ;;  %v3559_v54 = vshll.u32 %v3558_v46, 16 }
 0xf5e   : > { %v3567_v9 = vpop.xlane.xlu1 %3566 }
 0xf5f   : > { %vm3568_vm1 = vcmp.eq.f32.partialorder %v3565_v3, %v3567_v9  ;;  %v3573_v7 = vcvt.f32.s32 %v3567_v9 }
 0xf60   : > { %v3569_v58 = vsel %vm3568_vm1, %v3564_v18, inf }
 0xf61   : > { %3570 = vmin.xlane.f32.xlu1 %v3569_v58  ;;  %v3574_v24 = vshll.u32 %v3573_v7, 16 }
 0xf72   : > { %3846 = vrot.lane.b32.xlu1 %v5807_v13, %s5236_s29 }
 0xfea   : > { %v3556_v36 = vpop.xlane.xlu1 %3555 }
 0xfeb   : > { %v3557_v62 = vcvt.f32.s32 %v3556_v36 }
 0xfed   : > { %v3560_v37 = vadd.s32 %v3559_v54, %v3557_v62 }
 0xfee   : > { %v3571_v49 = vpop.xlane.xlu1 %3570 }
 0xfef   : > { %v6971_v1 = vsel %vm3576_vm4, %v3560_v37, %v7825_v57  ;;  %v3650_v3 = vrot.slane %v3560_v37, %v5986_v48  ;;  %v3654_v20 = vrot.slane %v3560_v37, %v5989_v52  ;;  %v3658_v13 = vrot.slane %v3560_v37, %v5992_v53 }
 0xff0   : > { %v3572_v8 = vcvt.f32.s32 %v3571_v49 }
 0xff1   : > { %vm3679_vm15 = vcmp.eq.s32.totalorder %v5428_v22, %v3650_v3  ;;  %vm3680_vm12 = vcmp.eq.s32.totalorder %v5997_v29, %v3650_v3  ;;  %vm3681_vm14 = vcmp.eq.s32.totalorder %v5428_v22, %v3654_v20  ;;  %vm3682_vm6 = vcmp.eq.s32.totalorder %v5997_v29, %v3654_v20 }
 0xff2   : > { %vm3683_vm9 = vcmp.eq.s32.totalorder %v5428_v22, %v3658_v13  ;;  %vm3684_vm1 = vcmp.eq.s32.totalorder %v5997_v29, %v3658_v13  ;;  %v4734_v10 = vsel %vm3679_vm15, 1.0, %v7606_v0  ;;  %v4735_v33 = vsel %vm3680_vm12, 1.0, %v7606_v0 }
 0xff3   : > { %v4736_v5 = vsel %vm3681_vm14, 1.0, %v7606_v0  ;;  %v4737_v21 = vsel %vm3682_vm6, 1.0, %v7606_v0  ;;  %v4738_v15 = vsel %vm3683_vm9, 1.0, %v7606_v0  ;;  %v4739_v51 = vsel %vm3684_vm1, 1.0, %v7606_v0 }
 0xff4   : > { %v3727_v19 = vmul.f32 %v6814_v12, %v4734_v10  ;;  %v3728_v34 = vmul.f32 %v6817_v16, %v4735_v33  ;;  %v3729_v17 = vmul.f32 %v6814_v12, %v4736_v5  ;;  %v3730_v42 = vmul.f32 %v6817_v16, %v4737_v21 }
 0xff5   : > { %v3731_v61 = vmul.f32 %v6814_v12, %v4738_v15  ;;  %v3732_v41 = vmul.f32 %v6817_v16, %v4739_v51  ;;  %v6994_v63 = vadd.s32 %v3574_v24, %v3572_v8  ;;  %vm7826_vm15 = vcmask 130048  }
 0xff6   : > { %v3743_v44 = vsel %vm7826_vm15, %v3727_v19, 0.0  ;;  %vm7827_vm12 = vmmov %vm7826_vm15 }
 0xff7   : > { %v3744_v50 = vsel %vm7827_vm12, %v3728_v34, 0.0  ;;  %vm7828_vm14 = vmmov %vm7827_vm12  ;;  %v3662_v7 = vrot.slane %v6994_v63, %v5434_v23  ;;  %v3666_v37 = vrot.slane %v6994_v63, %v5439_v25  ;;  %v3670_v49 = vrot.slane %v6994_v63, %v5442_v26 }
 0xff8   : > { %v3752_v9 = vsel %vm7828_vm14, %v3729_v17, 0.0  ;;  %vm7829_vm6 = vmmov %vm7827_vm12  ;;  %v3745_v58 = vadd.f32 %v3744_v50, %v3743_v44  ;;  %v3674_v20 = vrot.slane %v6994_v63, %v5445_v27  ;;  %v3678_v13 = vrot.slane %v6994_v63, %v5983_v43 }
 0xff9   : > { %v3753_v18 = vsel %vm7829_vm6, %v3730_v42, 0.0  ;;  %vm7830_vm9 = vmmov %vm7829_vm6  ;;  %vm3685_vm15 = vcmp.eq.s32.totalorder %v5428_v22, %v3662_v7  ;;  %vm3686_vm12 = vcmp.eq.s32.totalorder %v5997_v29, %v3662_v7  ;;  %vm3687_vm14 = vcmp.eq.s32.totalorder %v5428_v22, %v3666_v37 }
 0xffa   : > { %v3754_v46 = vadd.f32 %v3753_v18, %v3752_v9  ;;  %v3761_v36 = vsel %vm7830_vm9, %v3731_v61, 0.0  ;;  %vm7831_vm1 = vmmov %vm7829_vm6  ;;  %v3746_v57 = vrot.slane %v3745_v58, 4  ;;  %vm3688_vm6 = vcmp.eq.s32.totalorder %v5997_v29, %v3666_v37 }
 0xffb   : > { %v3762_v54 = vsel %vm7831_vm1, %v3732_v41, 0.0  ;;  %vm3689_vm9 = vcmp.eq.s32.totalorder %v5428_v22, %v3670_v49  ;;  %vm3690_vm1 = vcmp.eq.s32.totalorder %v5997_v29, %v3670_v49  ;;  %v4740_v5 = vsel %vm3685_vm15, 1.0, %v7606_v0 }
 0xffc   : > { %v3763_v62 = vadd.f32 %v3762_v54, %v3761_v36  ;;  %v3755_v3 = vrot.slane %v3754_v46, 4  ;;  %v3747_v8 = vadd.f32 %v3746_v57, %v3745_v58  ;;  %v4741_v21 = vsel %vm3686_vm12, 1.0, %v7606_v0 }
 0xffd   : > { %v4742_v19 = vsel %vm3687_vm14, 1.0, %v7606_v0  ;;  %v4743_v34 = vsel %vm3688_vm6, 1.0, %v7606_v0  ;;  %v3733_v42 = vmul.f32 %v6814_v12, %v4740_v5  ;;  %v3734_v61 = vmul.f32 %v6817_v16, %v4741_v21 }
 0xffe   : > { %v3764_v24 = vrot.slane %v3763_v62, 4  ;;  %v3756_v10 = vadd.f32 %v3755_v3, %v3754_v46  ;;  %v3748_v15 = vrot.slane %v3747_v8, 2  ;;  %vm3691_vm0 = vcmp.eq.s32.totalorder %v5428_v22, %v3674_v20 }
 0xfff   : > { %vm3692_vm5 = vcmp.eq.s32.totalorder %v5997_v29, %v3674_v20  ;;  %vm3693_vm15 = vcmp.eq.s32.totalorder %v5428_v22, %v3678_v13  ;;  %vm3694_vm12 = vcmp.eq.s32.totalorder %v5997_v29, %v3678_v13  ;;  %v4744_v50 = vsel %vm3689_vm9, 1.0, %v7606_v0 }
0x1000   : > { %v3765_v33 = vadd.f32 %v3764_v24, %v3763_v62  ;;  %v3757_v51 = vrot.slane %v3756_v10, 2  ;;  %v3749_v41 = vadd.f32 %v3748_v15, %v3747_v8  ;;  %v4745_v9 = vsel %vm3690_vm1, 1.0, %v7606_v0 }
0x1001   : > { %v4746_v18 = vsel %vm3691_vm0, 1.0, %v7606_v0  ;;  %v4747_v58 = vsel %vm3692_vm5, 1.0, %v7606_v0  ;;  %v4748_v46 = vsel %vm3693_vm15, 1.0, %v7606_v0  ;;  %v4749_v36 = vsel %vm3694_vm12, 1.0, %v7606_v0 }
0x1002   : > { %v3766_v17 = vrot.slane %v3765_v33, 2  ;;  %v3758_v44 = vadd.f32 %v3757_v51, %v3756_v10  ;;  %v3735_v54 = vmul.f32 %v6814_v12, %v4742_v19  ;;  %v3736_v62 = vmul.f32 %v6817_v16, %v4743_v34 }
0x1003   : > { %v3737_v7 = vmul.f32 %v6814_v12, %v4744_v50  ;;  %v3738_v37 = vmul.f32 %v6817_v16, %v4745_v9  ;;  %v3739_v57 = vmul.f32 %v6814_v12, %v4746_v18  ;;  %v3740_v49 = vmul.f32 %v6817_v16, %v4747_v58 }
0x1004   : > { %v3741_v3 = vmul.f32 %v6814_v12, %v4748_v46  ;;  %v3750_v20 = vrot.slane %v3749_v41, 1  ;;  %v3742_v13 = vmul.f32 %v6817_v16, %v4749_v36  ;;  %v3759_v24 = vrot.slane %v3758_v44, 1 }
0x1005   : > { %vm7832_vm5 = vcmask 130048   ;;  %v3767_v5 = vadd.f32 %v3766_v17, %v3765_v33 }
0x1006   : > { %v3770_v8 = vsel %vm7832_vm5, %v3733_v42, 0.0  ;;  %vm7833_vm0 = vmmov %vm7832_vm5  ;;  %v3751_v19 = vadd.f32 %v3750_v20, %v3749_v41  ;;  %v3760_v42 = vadd.f32 %v3759_v24, %v3758_v44  ;;  %v3581_v44 = vsel %vm3576_vm4, %v6994_v63, %v6885_v6 }
0x1007   : > { %v3771_v10 = vsel %vm7833_vm0, %v3734_v61, 0.0  ;;  %vm7834_vm14 = vmmov %vm7833_vm0  ;;  %v3768_v17 = vrot.slane %v3767_v5, 1  ;;  %v3807_v41 = vsel %vm7833_vm0, %v3742_v13, 0.0  ;;  %vm7842_vm4 = vcmask 1042434  }
0x1008   : > { %v3772_v21 = vadd.f32 %v3771_v10, %v3770_v8  ;;  %v3779_v15 = vsel %vm7834_vm14, %v3735_v54, 0.0  ;;  %vm7835_vm6 = vmmov %vm7833_vm0  ;;  %vm7841_vm14 = vcmask 1041409  }
0x1009   : > { %v3780_v51 = vsel %vm7835_vm6, %v3736_v62, 0.0  ;;  %vm7836_vm9 = vmmov %vm7833_vm0  ;;  %v3823_v13 = vsel %vm7841_vm14, %v3760_v42, %v3751_v19  ;;  %vm7843_vm6 = vcmask 1043459   ;;  %vm7850_vm14 = vcmp.gt.f32.partialorder %v5852_v40, 0.0 }
0x100a   : > { %v3781_v34 = vadd.f32 %v3780_v51, %v3779_v15  ;;  %v3788_v50 = vsel %vm7836_vm9, %v3737_v7, 0.0  ;;  %v3773_v9 = vrot.slane %v3772_v21, 4  ;;  %vm7837_vm1 = vmmov %vm7833_vm0  ;;  %v3983_v15 = vrot.slane %v3581_v44, 7 }
0x100b   : > { %v3789_v12 = vsel %vm7837_vm1, %v3738_v37, 0.0  ;;  %vm7838_vm15 = vmmov %vm7833_vm0  ;;  %v3982_v37 = vrot.slane %v6971_v1, 7  ;;  %vm7844_vm9 = vcmask 1044484   ;;  %vm7845_vm1 = vcmask 1045509  }
0x100c   : > { %v3797_v16 = vsel %vm7838_vm15, %v3739_v57, 0.0  ;;  %vm7839_vm12 = vmmov %vm7833_vm0  ;;  %v3782_v58 = vrot.slane %v3781_v34, 4  ;;  %v3790_v61 = vadd.f32 %v3789_v12, %v3788_v50  ;;  %v3774_v46 = vadd.f32 %v3773_v9, %v3772_v21 }
0x100d   : > { %v3798_v18 = vsel %vm7839_vm12, %v3740_v49, 0.0  ;;  %vm7840_vm5 = vmmov %vm7833_vm0  ;;  %v3769_v21 = vadd.f32 %v3768_v17, %v3767_v5  ;;  %vm7846_vm15 = vcmask 1046534   ;;  %vm7847_vm12 = vcmask 1047559  }
0x100e   : > { %v3799_v33 = vadd.f32 %v3798_v18, %v3797_v16  ;;  %v3806_v36 = vsel %vm7840_vm5, %v3741_v3, 0.0  ;;  %v3783_v54 = vadd.f32 %v3782_v58, %v3781_v34  ;;  %v3791_v62 = vrot.slane %v3790_v61, 4 }
0x100f   : > { %v3808_v20 = vadd.f32 %v3807_v41, %v3806_v36  ;;  %v3775_v8 = vrot.slane %v3774_v46, 2  ;;  %v7065_v16 = vsel %vm2362_vm11, %v3982_v37, %v3983_v15  ;;  %v3824_v5 = vsel %vm7842_vm4, %v3769_v21, %v3823_v13 }
0x1010   : > { %v3800_v7 = vrot.slane %v3799_v33, 4  ;;  %v3784_v57 = vrot.slane %v3783_v54, 2  ;;  %v3792_v49 = vadd.f32 %v3791_v62, %v3790_v61  ;;  %vm7848_vm5 = vcmp.gt.f32.partialorder %v5842_v32, 0.0 }
0x1011   : > { %v3809_v10 = vrot.slane %v3808_v20, 4  ;;  %v3776_v3 = vadd.f32 %v3775_v8, %v3774_v46  ;;  %vm7849_vm0 = vcmp.gt.f32.partialorder %v5845_v14, 0.0  ;;  %vm7851_vm4 = vcmp.gt.f32.partialorder %v5855_v45, 0.0 }
0x1012   : > { %v3801_v24 = vadd.f32 %v3800_v7, %v3799_v33  ;;  %v3785_v51 = vadd.f32 %v3784_v57, %v3783_v54  ;;  %v3793_v34 = vrot.slane %v3792_v49, 2 }
0x1013   : > { %v3810_v9 = vadd.f32 %v3809_v10, %v3808_v20  ;;  %v3777_v12 = vrot.slane %v3776_v3, 1 }
0x1014   : > { %v3802_v50 = vrot.slane %v3801_v24, 2  ;;  %v3786_v6 = vrot.slane %v3785_v51, 1  ;;  %v3794_v63 = vadd.f32 %v3793_v34, %v3792_v49  ;;  %v3847_v49 = vpop.permute.xlu1 %3846 }
0x1015   : > { %v3811_v58 = vrot.slane %v3810_v9, 2  ;;  %v3778_v61 = vadd.f32 %v3777_v12, %v3776_v3 }
0x1016   : > { %v3803_v18 = vadd.f32 %v3802_v50, %v3801_v24  ;;  %v3787_v33 = vadd.f32 %v3786_v6, %v3785_v51  ;;  %v3795_v19 = vrot.slane %v3794_v63, 1 }
0x1017   : > { %v3812_v17 = vadd.f32 %v3811_v58, %v3810_v9  ;;  %v3825_v46 = vsel %vm7843_vm6, %v3778_v61, %v3824_v5  ;;  %vm7852_vm6 = vcmp.gt.f32.partialorder %v5861_v47, 0.0 }
0x1018   : > { %v3804_v42 = vrot.slane %v3803_v18, 1  ;;  %v3796_v36 = vadd.f32 %v3795_v19, %v3794_v63  ;;  %v3826_v54 = vsel %vm7844_vm9, %v3787_v33, %v3825_v46  ;;  %vm7853_vm9 = vcmp.gt.f32.partialorder %v5864_v59, 0.0 }
0x1019   : > { %v3813_v41 = vrot.slane %v3812_v17, 1 }
0x101a   : > { %v3805_v62 = vadd.f32 %v3804_v42, %v3803_v18  ;;  %v3827_v20 = vsel %vm7845_vm1, %v3796_v36, %v3826_v54  ;;  %vm7854_vm1 = vcmask 1041409  }
0x101b   : > { %v3814_v7 = vadd.f32 %v3813_v41, %v3812_v17 }
0x101c   : > { %v3828_v8 = vsel %vm7846_vm15, %v3805_v62, %v3827_v20  ;;  %vm7855_vm15 = vcmp.gt.f32.partialorder %v5839_v4, 0.0 }
0x101d   : > { %v3829_v44 = vsel %vm7847_vm12, %v3814_v7, %v3828_v8  ;;  %vm7856_vm12 = vcmask 1042434  }
0x101e   : > { %v7074_v57 = vadd.f32 %v3829_v44, %v6894_v55 }
0x1020   : > { %v3849_v24 = vadd.f32 %v3847_v49, %v7074_v57  ;;  %v4960_v49 = vld [vmem:[%s7488_s3 + $0x80] sm:$0xff]  }
0x1021   : > { %4867 = vmatpush3.bf16.msra.mxu0 %v4960_v49 }
0x1022   : > { %v3853_v10 = vrot.slane %v3849_v24, 4  ;;  %v3854_v21 = vrot.slane %v3849_v24, 5  ;;  %v3855_v3 = vrot.slane %v3849_v24, 6  ;;  %v3856_v13 = vrot.slane %v3849_v24, 7  ;;  %4868 = vmatprep.subr.bf16.mxu0 %v7606_v0 }
0x1023   : > { %v3857_v15 = vrot.slane %v3849_v24, 1  ;;  %v3852_v51 = vrot.slane %v3849_v24, 3  ;;  %v7087_v12 = vsel %vm7852_vm6, %v3849_v24, -1e+09  ;;  %v3851_v17 = vrot.slane %v3849_v24, 2  ;;  %v4961_v24 = vld [vmem:[%s7488_s3 + $0x88] sm:$0xff]  }
0x1024   : > { %v3868_v34 = vsel %vm7848_vm5, %v3853_v10, -1e+09  ;;  %v3869_v50 = vsel %vm7849_vm0, %v3854_v21, -1e+09  ;;  %v3870_v9 = vsel %vm7850_vm14, %v3855_v3, -1e+09 }
0x1025   : > { %v3871_v55 = vsel %vm7851_vm4, %v3856_v13, -1e+09  ;;  %v3884_v6 = vrot.slane %v3868_v34, 6  ;;  %v3885_v63 = vrot.slane %v3869_v50, 5  ;;  %v7091_v18 = vsel %vm7853_vm9, %v3857_v15, -1e+09  ;;  %4869 = vmatpush3.bf16.msra.mxu0 %v4961_v24 }
0x1026   : > { %v3887_v58 = vrot.slane %v3870_v9, 4  ;;  %v3889_v5 = vrot.slane %v3871_v55, 3  ;;  %v7096_v33 = vsel %vm7855_vm15, %v3852_v51, -1e+09  ;;  %v3891_v42 = vrot.slane %v7087_v12, 2  ;;  %v4962_v10 = vld [vmem:[%s7488_s3 + $0x90] sm:$0xff]   ;;  %4870 = vmatprep.subr.bf16.mxu0 %v7606_v0 }
0x1027   : > { %v3886_v61 = vsel %vm7854_vm1, %v3885_v63, %v3884_v6  ;;  %vm7857_vm5 = vcmask 1043459   ;;  %v3893_v36 = vrot.slane %v7091_v18, 1  ;;  %vm7527_vm0 = vcmask 128000  }
0x1028   : > { %v3888_v19 = vsel %vm7856_vm12, %v3887_v58, %v3886_v61  ;;  %v3882_v41 = vrot.slane %v7096_v33, 7  ;;  %vm7858_vm14 = vcmask 1044484   ;;  %vm7859_vm4 = vcmask 1045509  }
0x1029   : > { %v3890_v46 = vsel %vm7857_vm5, %v3889_v5, %v3888_v19  ;;  %vm7860_vm6 = vcmp.gt.f32.partialorder %v5849_v39, 0.0  ;;  %vm7861_vm9 = vcmask 1047559   ;;  %vm7530_vm1 = vcmask 130054   ;;  %4871 = vmatpush3.bf16.msra.mxu0 %v4962_v10 }
0x102a   : > { %v3892_v54 = vsel %vm7858_vm14, %v3891_v42, %v3890_v46  ;;  %v7108_v20 = vsel %vm7860_vm6, %v3851_v17, -1e+09  ;;  %4872 = vmatprep.subr.bf16.mxu0 %v7606_v0 }
0x102b   : > { %v3894_v62 = vsel %vm7859_vm4, %v3893_v36, %v3892_v54  ;;  %v3883_v8 = vsel %vm7861_vm9, %v3882_v41, %v7108_v20 }
0x102c   : > { %v3902_v7 = vsel %vm7527_vm0, %v3894_v62, -inf  ;;  %v3898_v44 = vsel %vm7530_vm1, %v3883_v8, -inf }
0x102d   : > { %3903 = vmax.xlane.f32.xlu0 %v3902_v7 }
0x1031   : > { %3899 = vmax.xlane.f32.xlu0 %v3898_v44 }
0x10ba   : > { %v3904_v21 = vpop.xlane.xlu0 %3903 }
0x10bb   : > { %v3908_v3 = vrot.slane %v3904_v21, 2  ;;  %v3909_v13 = vrot.slane %v3904_v21, 3  ;;  %v3910_v15 = vrot.slane %v3904_v21, 4  ;;  %v3911_v51 = vrot.slane %v3904_v21, 5 }
0x10bc   : > { %v3912_v6 = vrot.slane %v3904_v21, 6  ;;  %v3913_v17 = vrot.slane %v3904_v21, 7 }
0x10bd   : > { %vm3924_vm15 = vcmp.ge.f32.partialorder %v3868_v34, %v3908_v3  ;;  %vm3925_vm12 = vcmp.ge.f32.partialorder %v3869_v50, %v3909_v13  ;;  %vm3926_vm5 = vcmp.ge.f32.partialorder %v3870_v9, %v3910_v15  ;;  %v3989_v5 = vsub.f32 %v3868_v34, %v3908_v3 }
0x10be   : > { %v3932_v63 = vsel %vm3924_vm15, %v5587_v56, 16  ;;  %v3933_v58 = vsel %vm3925_vm12, %v5587_v56, 16  ;;  %v3934_v61 = vsel %vm3926_vm5, %v5587_v56, 16  ;;  %v7128_v19 = vpop.xlane.xlu0 %3899  ;;  %v3990_v42 = vsub.f32 %v3869_v50, %v3909_v13 }
0x10bf   : > { %vm7130_vm14 = vcmp.ge.f32.partialorder %v3871_v55, %v3911_v51  ;;  %v3991_v36 = vsub.f32 %v3870_v9, %v3910_v15  ;;  %v3999_v41 = vmul.f32 1.442695, %v3989_v5  ;;  %v3907_v54 = vrot.slane %v7128_v19, 1 }
0x10c0   : > { %v3940_v62 = vrot.slane %v3932_v63, 6  ;;  %v3941_v7 = vrot.slane %v3933_v58, 5  ;;  %v3943_v8 = vrot.slane %v3934_v61, 4  ;;  %v4001_v44 = vmul.f32 1.442695, %v3990_v42 }
0x10c1   : > { %5058 = vpow2.f32 %v3999_v41  ;;  %v4003_v49 = vmul.f32 1.442695, %v3991_v36  ;;  %vm3923_vm4 = vcmp.ge.f32.partialorder %v7096_v33, %v3907_v54  ;;  %vm3928_vm6 = vcmp.ge.f32.partialorder %v7087_v12, %v3912_v6 }
0x10c2   : > { %v3992_v34 = vsub.f32 %v3871_v55, %v3911_v51  ;;  %5060 = vpow2.f32 %v4001_v44  ;;  %vm3922_vm9 = vcmp.ge.f32.partialorder %v7108_v20, %v7128_v19  ;;  %v3931_v50 = vsel %vm3923_vm4, %v5587_v56, 16 }
0x10c3   : > { %5062 = vpow2.f32 %v4003_v49  ;;  %v3938_v9 = vrot.slane %v3931_v50, 7  ;;  %vm3929_vm15 = vcmp.ge.f32.partialorder %v7091_v18, %v3913_v17  ;;  %v3935_v24 = vsel %vm7130_vm14, %v5587_v56, 16 }
0x10c4   : > { %v3936_v10 = vsel %vm3928_vm6, %v5587_v56, 16  ;;  %v3937_v21 = vsel %vm3929_vm15, %v5587_v56, 16  ;;  %v3930_v55 = vsel %vm3922_vm9, %v5587_v56, 16  ;;  %vm7864_vm12 = vcmask 1041409  }
0x10c5   : > { %v3942_v3 = vsel %vm7864_vm12, %v3941_v7, %v3940_v62  ;;  %v3945_v13 = vrot.slane %v3935_v24, 3  ;;  %v3947_v15 = vrot.slane %v3936_v10, 2  ;;  %vm7865_vm5 = vcmask 1042434  }
0x10c6   : > { %v3944_v51 = vsel %vm7865_vm5, %v3943_v8, %v3942_v3  ;;  %v3949_v63 = vrot.slane %v3937_v21, 1  ;;  %vm7866_vm4 = vcmask 1047559   ;;  %v3993_v61 = vsub.f32 %v7087_v12, %v3912_v6  ;;  %vm7871_vm9 = vmmov %vm7865_vm5 }
0x10c7   : > { %v3939_v58 = vsel %vm7866_vm4, %v3938_v9, %v3930_v55  ;;  %v3946_v5 = vsel %vm7867_vm7, %v3945_v13, %v3944_v51  ;;  %v3994_v46 = vsub.f32 %v7091_v18, %v3913_v17  ;;  %v4005_v36 = vmul.f32 1.442695, %v3992_v34  ;;  %vm7870_vm7 = vmmov %vm7864_vm12 }
0x10c8   : > { %v3951_v42 = vsel %vm7530_vm1, %v3939_v58, 2147483647  ;;  %vm7868_vm14 = vcmask 1044484   ;;  %v4007_v62 = vmul.f32 1.442695, %v3993_v61  ;;  %vm7869_vm6 = vcmask 1045509  }
0x10c9   : > { %v3948_v41 = vsel %vm7868_vm14, %v3947_v15, %v3946_v5  ;;  %v3953_v44 = vshra.s32 %v3951_v42, 16  ;;  %5064 = vpow2.f32 %v4005_v36  ;;  %v4009_v8 = vmul.f32 1.442695, %v3994_v46  ;;  %vm7873_vm12 = vmmov %vm7868_vm14  ;;  %v4963_v36 = vld [vmem:[%s7488_s3 + $0x98] sm:$0xff]  }
0x10ca   : > { %v3950_v7 = vsel %vm7869_vm6, %v3949_v63, %v3948_v41  ;;  %5066 = vpow2.f32 %v4007_v62  ;;  %vm7872_vm15 = vcmask 1043459   ;;  %vm7874_vm5 = vmmov %vm7869_vm6  ;;  %v1310_v41 = vmax.f32 %v5836_v30, 0.0  ;;  %4873 = vmatpush3.bf16.msra.mxu0 %v4963_v36  ;;  %v7876_v30 = vld [vmem:[#allocation8_spill] sm:$0xff] }
0x10cb   : > { %v3966_v49 = vsel %vm7527_vm0, %v3950_v7, 2147483647  ;;  %v3955_v50 = vcvt.s32.f32 %v3953_v44  ;;  %v5059_v12 = vpop.eup %5058  ;;  %5068 = vpow2.f32 %v4009_v8  ;;  %v3952_v62 = vand.u32 65535, %v3951_v42 }
0x10cc   : > { %v3968_v6 = vshra.s32 %v3966_v49, 16  ;;  %v5061_v9 = vpop.eup %5060  ;;  %v4021_v24 = vrot.slane %v5059_v12, 6  ;;  %v1311_v44 = vpack.c.bf16 %v1310_v41, %v1310_v41  ;;  %v3967_v7 = vand.u32 65535, %v3966_v49 }
0x10cd   : > { %3956 = vmin.xlane.f32.xlu1 %v3955_v50  ;;  %v5063_v18 = vpop.eup %5062  ;;  %v4022_v34 = vrot.slane %v5061_v9, 5  ;;  %v3954_v12 = vcvt.s32.f32 %v3952_v62  ;;  %vm7875_vm6 = vcmask 523264  }
0x10ce   : > { %v3970_v17 = vcvt.s32.f32 %v3968_v6  ;;  %v4024_v10 = vrot.slane %v5063_v18, 4 }
0x10cf   : > { %v4023_v21 = vsel %vm7870_vm7, %v4022_v34, %v4021_v24  ;;  %v3969_v24 = vcvt.s32.f32 %v3967_v7  ;;  %vm3981_vm7 = vcmp.eq.s32.totalorder %v5587_v56, 6 }
0x10d0   : > { %3971 = vmin.xlane.f32.xlu0 %v3970_v17  ;;  %v4025_v55 = vsel %vm7871_vm9, %v4024_v10, %v4023_v21 }
0x10d3   : > { %v5065_v3 = vpop.eup %5064 }
0x10d4   : > { %v5067_v13 = vpop.eup %5066  ;;  %v4026_v15 = vrot.slane %v5065_v3, 3 }
0x10d5   : > { %v5069_v51 = vpop.eup %5068  ;;  %v4028_v63 = vrot.slane %v5067_v13, 2 }
0x10d6   : > { %v4027_v58 = vsel %vm7872_vm15, %v4026_v15, %v4025_v55  ;;  %v4030_v61 = vrot.slane %v5069_v51, 1 }
0x10d7   : > { %v4029_v5 = vsel %vm7873_vm12, %v4028_v63, %v4027_v58 }
0x10d8   : > { %v7164_v46 = vsel %vm7874_vm5, %v4030_v61, %v4029_v5 }
0x10e6   : > { %1326 = vrot.lane.b32.xlu0 %v1311_v44, %s5237_s13 }
0x115a   : > { %v3957_v8 = vpop.xlane.xlu1 %3956 }
0x115b   : > { %vm3958_vm4 = vcmp.eq.f32.partialorder %v3955_v50, %v3957_v8  ;;  %v3963_v10 = vcvt.f32.s32 %v3957_v8 }
0x115c   : > { %v3959_v6 = vsel %vm3958_vm4, %v3954_v12, inf }
0x115d   : > { %v3972_v9 = vpop.xlane.xlu0 %3971  ;;  %3960 = vmin.xlane.f32.xlu0 %v3959_v6  ;;  %v3964_v49 = vshll.u32 %v3963_v10, 16 }
0x115e   : > { %vm3973_vm14 = vcmp.eq.f32.partialorder %v3970_v17, %v3972_v9  ;;  %v3978_v21 = vcvt.f32.s32 %v3972_v9 }
0x115f   : > { %v3974_v18 = vsel %vm3973_vm14, %v3969_v24, inf }
0x1160   : > { %3975 = vmin.xlane.f32.xlu1 %v3974_v18  ;;  %v3979_v13 = vshll.u32 %v3978_v21, 16 }
0x1161   : > { %v1327_v34 = vpop.permute.xlu0 %1326 }
0x1162   : > { %4875 = vmatmul.mubr.msk.bf16.vlgmr.msra.gmra.mrb[12].mxu0 %vm7875_vm6, %v1327_v34  ;;  %vm7877_vm6 = vcmask 130048  }
0x1171   : > { %4251 = vrot.lane.b32.xlu1 %v7876_v30, %s5236_s29  ;;  %s4612_s29 = sshll.u32 %s7958_s25, 3 }
0x1172   : > { %s336_s27 = scalar_lea.vmem %s7490_s5, %s4612_s29  ;;  %s340_s19 = scalar_lea.vmem %s7491_s6, %s4612_s29 }
0x11ea   : > { %v3961_v42 = vpop.xlane.xlu0 %3960 }
0x11eb   : > { %v3962_v55 = vcvt.f32.s32 %v3961_v42 }
0x11ed   : > { %v3976_v50 = vpop.xlane.xlu1 %3975  ;;  %v3965_v3 = vadd.s32 %v3964_v49, %v3962_v55 }
0x11ee   : > { %v3977_v15 = vcvt.f32.s32 %v3976_v50 }
0x11ef   : > { %v7176_v17 = vsel %vm3981_vm7, %v3965_v3, %v3982_v37  ;;  %v4055_v51 = vrot.slane %v3965_v3, %v5989_v52  ;;  %v4059_v63 = vrot.slane %v3965_v3, %v5992_v53 }
0x11f0   : > { %v3980_v58 = vadd.s32 %v3979_v13, %v3977_v15 }
0x11f1   : > { %vm4084_vm9 = vcmp.eq.s32.totalorder %v5428_v22, %v4055_v51  ;;  %vm4085_vm15 = vcmp.eq.s32.totalorder %v5997_v29, %v4055_v51  ;;  %vm4086_vm12 = vcmp.eq.s32.totalorder %v5428_v22, %v4059_v63  ;;  %vm4087_vm5 = vcmp.eq.s32.totalorder %v5997_v29, %v4059_v63 }
0x11f2   : > { %v4063_v61 = vrot.slane %v3980_v58, %v5434_v23  ;;  %v4067_v5 = vrot.slane %v3980_v58, %v5439_v25  ;;  %v7187_v1 = vsel %vm3981_vm7, %v3980_v58, %v7065_v16  ;;  %v4071_v52 = vrot.slane %v3980_v58, %v5442_v26  ;;  %v5126_v23 = vld [vmem:[#allocation4 + $0x50] sm:$0xff]  ;;  %v5127_v25 = vld [vmem:[#allocation4 + $0x58] sm:$0xff] }
0x11f3   : > { %v4750_v53 = vsel %vm4084_vm9, 1.0, %v7606_v0  ;;  %v4751_v37 = vsel %vm4085_vm15, 1.0, %v7606_v0  ;;  %v4752_v36 = vsel %vm4086_vm12, 1.0, %v7606_v0  ;;  %v4753_v41 = vsel %vm4087_vm5, 1.0, %v7606_v0  ;;  %vm7878_vm9 = vmmov %vm7877_vm6 }
0x11f4   : > { %vm4088_vm4 = vcmp.eq.s32.totalorder %v5428_v22, %v4063_v61  ;;  %vm4089_vm14 = vcmp.eq.s32.totalorder %v5997_v29, %v4063_v61  ;;  %v4132_v44 = vmul.f32 %v5126_v23, %v4750_v53  ;;  %v4133_v62 = vmul.f32 %v5127_v25, %v4751_v37  ;;  %vm7879_vm15 = vmmov %vm7877_vm6 }
0x11f5   : > { %v4134_v16 = vmul.f32 %v5126_v23, %v4752_v36  ;;  %v4135_v7 = vmul.f32 %v5127_v25, %v4753_v41  ;;  %v4075_v26 = vrot.slane %v3980_v58, %v5445_v27  ;;  %v4079_v12 = vrot.slane %v3980_v58, %v5983_v43  ;;  %vm7880_vm12 = vmmov %vm7877_vm6 }
0x11f6   : > { %v4148_v8 = vsel %vm7877_vm6, %v4132_v44, 0.0  ;;  %v4083_v6 = vrot.slane %v3980_v58, %v5986_v48  ;;  %vm4090_vm7 = vcmp.eq.s32.totalorder %v5428_v22, %v4067_v5  ;;  %v4149_v9 = vsel %vm7878_vm9, %v4133_v62, 0.0 }
0x11f7   : > { %v4157_v24 = vsel %vm7879_vm15, %v4134_v16, 0.0  ;;  %v4158_v18 = vsel %vm7880_vm12, %v4135_v7, 0.0  ;;  %vm4091_vm5 = vcmp.eq.s32.totalorder %v5997_v29, %v4067_v5  ;;  %v4150_v34 = vadd.f32 %v4149_v9, %v4148_v8 }
0x11f8   : > { %v4159_v30 = vadd.f32 %v4158_v18, %v4157_v24  ;;  %vm4092_vm0 = vcmp.eq.s32.totalorder %v5428_v22, %v4071_v52  ;;  %vm4093_vm6 = vcmp.eq.s32.totalorder %v5997_v29, %v4071_v52  ;;  %vm4094_vm13 = vcmp.eq.s32.totalorder %v5428_v22, %v4075_v26 }
0x11f9   : > { %vm4095_vm8 = vcmp.eq.s32.totalorder %v5997_v29, %v4075_v26  ;;  %vm4096_vm1 = vcmp.eq.s32.totalorder %v5428_v22, %v4079_v12  ;;  %vm4097_vm9 = vcmp.eq.s32.totalorder %v5997_v29, %v4079_v12  ;;  %v4151_v27 = vrot.slane %v4150_v34, 4 }
0x11fa   : > { %v4160_v43 = vrot.slane %v4159_v30, 4  ;;  %vm4098_vm15 = vcmp.eq.s32.totalorder %v5428_v22, %v4083_v6  ;;  %vm4099_vm12 = vcmp.eq.s32.totalorder %v5997_v29, %v4083_v6  ;;  %v4754_v48 = vsel %vm4088_vm4, 1.0, %v7606_v0 }
0x11fb   : > { %v4755_v10 = vsel %vm4089_vm14, 1.0, %v7606_v0  ;;  %v4756_v21 = vsel %vm4090_vm7, 1.0, %v7606_v0  ;;  %v4757_v42 = vsel %vm4091_vm5, 1.0, %v7606_v0  ;;  %v4152_v49 = vadd.f32 %v4151_v27, %v4150_v34 }
0x11fc   : > { %v4161_v55 = vadd.f32 %v4160_v43, %v4159_v30  ;;  %v4758_v50 = vsel %vm4092_vm0, 1.0, %v7606_v0  ;;  %v4759_v3 = vsel %vm4093_vm6, 1.0, %v7606_v0  ;;  %v4760_v13 = vsel %vm4094_vm13, 1.0, %v7606_v0 }
0x11fd   : > { %v4761_v15 = vsel %vm4095_vm8, 1.0, %v7606_v0  ;;  %v4762_v51 = vsel %vm4096_vm1, 1.0, %v7606_v0  ;;  %v4763_v63 = vsel %vm4097_vm9, 1.0, %v7606_v0  ;;  %v4153_v58 = vrot.slane %v4152_v49, 2 }
0x11fe   : > { %v4162_v61 = vrot.slane %v4161_v55, 2  ;;  %v4764_v5 = vsel %vm4098_vm15, 1.0, %v7606_v0  ;;  %v4765_v52 = vsel %vm4099_vm12, 1.0, %v7606_v0  ;;  %v4136_v53 = vmul.f32 %v5126_v23, %v4754_v48 }
0x11ff   : > { %v4137_v37 = vmul.f32 %v5127_v25, %v4755_v10  ;;  %v4138_v36 = vmul.f32 %v5126_v23, %v4756_v21  ;;  %v4139_v41 = vmul.f32 %v5127_v25, %v4757_v42  ;;  %v4388_v44 = vrot.slane %v7187_v1, 7 }
0x1200   : > { %v4154_v62 = vadd.f32 %v4153_v58, %v4152_v49  ;;  %v4163_v16 = vadd.f32 %v4162_v61, %v4161_v55  ;;  %v4387_v7 = vrot.slane %v7176_v17, 7  ;;  %v4140_v26 = vmul.f32 %v5126_v23, %v4758_v50 }
0x1201   : > { %v4141_v8 = vmul.f32 %v5127_v25, %v4759_v3  ;;  %v4142_v12 = vmul.f32 %v5126_v23, %v4760_v13  ;;  %v4143_v9 = vmul.f32 %v5127_v25, %v4761_v15  ;;  %v4144_v22 = vmul.f32 %v5126_v23, %v4762_v51 }
0x1202   : > { %v4145_v24 = vmul.f32 %v5127_v25, %v4763_v63  ;;  %v4146_v18 = vmul.f32 %v5126_v23, %v4764_v5  ;;  %v4147_v34 = vmul.f32 %v5127_v25, %v4765_v52  ;;  %vm7881_vm8 = vcmask 130048  }
0x1203   : > { %v4166_v29 = vsel %vm7881_vm8, %v4136_v53, 0.0  ;;  %vm7882_vm13 = vmmov %vm7881_vm8  ;;  %v4155_v30 = vrot.slane %v4154_v62, 1  ;;  %v4164_v27 = vrot.slane %v4163_v16, 1 }
0x1204   : > { %v4167_v0 = vsel %vm7882_vm13, %v4137_v37, 0.0  ;;  %vm7883_vm0 = vmmov %vm7881_vm8  ;;  %v7266_v37 = vsel %vm2362_vm11, %v4387_v7, %v4388_v44  ;;  %vm7893_vm8 = vcmask 1041409   ;;  %vm7894_vm13 = vcmask 1042434  }
0x1205   : > { %v4175_v6 = vsel %vm7883_vm0, %v4138_v36, 0.0  ;;  %vm7884_vm1 = vmmov %vm7883_vm0  ;;  %v4168_v43 = vadd.f32 %v4167_v0, %v4166_v29 }
0x1206   : > { %v4176_v1 = vsel %vm7884_vm1, %v4139_v41, 0.0  ;;  %vm7885_vm4 = vmmov %vm7883_vm0  ;;  %vm7896_vm1 = vcmask 1044484  }
0x1207   : > { %v4177_v48 = vadd.f32 %v4176_v1, %v4175_v6  ;;  %v4184_v10 = vsel %vm7885_vm4, %v4140_v26, 0.0  ;;  %vm7886_vm14 = vmmov %vm7883_vm0  ;;  %v4169_v25 = vrot.slane %v4168_v43, 4  ;;  %vm7897_vm4 = vcmask 1045509  }
0x1208   : > { %v4185_v21 = vsel %vm7886_vm14, %v4141_v8, 0.0  ;;  %vm7887_vm7 = vmmov %vm7883_vm0  ;;  %vm7898_vm14 = vcmask 1046534  }
0x1209   : > { %v4193_v42 = vsel %vm7887_vm7, %v4142_v12, 0.0  ;;  %vm7888_vm5 = vmmov %vm7883_vm0  ;;  %v4178_v49 = vrot.slane %v4177_v48, 4  ;;  %v4186_v55 = vadd.f32 %v4185_v21, %v4184_v10  ;;  %v4170_v63 = vadd.f32 %v4169_v25, %v4168_v43 }
0x120a   : > { %v4194_v23 = vsel %vm7888_vm5, %v4143_v9, 0.0  ;;  %vm7889_vm6 = vmmov %vm7883_vm0  ;;  %v4156_v12 = vadd.f32 %v4155_v30, %v4154_v62  ;;  %v4165_v9 = vadd.f32 %v4164_v27, %v4163_v16  ;;  %vm7899_vm7 = vcmask 1047559  }
0x120b   : > { %v4195_v50 = vadd.f32 %v4194_v23, %v4193_v42  ;;  %v4202_v3 = vsel %vm7889_vm6, %v4144_v22, 0.0  ;;  %vm7890_vm9 = vmmov %vm7883_vm0  ;;  %v4179_v58 = vadd.f32 %v4178_v49, %v4177_v48  ;;  %v4187_v61 = vrot.slane %v4186_v55, 4 }
0x120c   : > { %v4203_v13 = vsel %vm7890_vm9, %v4145_v24, 0.0  ;;  %vm7891_vm15 = vmmov %vm7883_vm0  ;;  %v4171_v36 = vrot.slane %v4170_v63, 2  ;;  %v4228_v23 = vsel %vm7893_vm8, %v4165_v9, %v4156_v12  ;;  %vm4302_vm5 = vcmask 130055  }
0x120d   : > { %v4211_v15 = vsel %vm7891_vm15, %v4146_v18, 0.0  ;;  %vm7892_vm12 = vmmov %vm7883_vm0  ;;  %v4196_v5 = vrot.slane %v4195_v50, 4  ;;  %v4204_v52 = vadd.f32 %v4203_v13, %v4202_v3  ;;  %v4180_v41 = vrot.slane %v4179_v58, 2 }
0x120e   : > { %v4212_v51 = vsel %vm7892_vm12, %v4147_v34, 0.0  ;;  %v4188_v26 = vadd.f32 %v4187_v61, %v4186_v55  ;;  %v4172_v18 = vadd.f32 %v4171_v36, %v4170_v63  ;;  %vm7895_vm0 = vcmask 1043459  }
0x120f   : > { %v4213_v53 = vadd.f32 %v4212_v51, %v4211_v15  ;;  %v4197_v8 = vadd.f32 %v4196_v5, %v4195_v50  ;;  %v4205_v22 = vrot.slane %v4204_v52, 4  ;;  %v4181_v34 = vadd.f32 %v4180_v41, %v4179_v58  ;;  %v4252_v41 = vpop.permute.xlu1 %4251 }
0x1210   : > { %v4189_v29 = vrot.slane %v4188_v26, 2  ;;  %v4173_v43 = vrot.slane %v4172_v18, 1  ;;  %vm7900_vm6 = vcmp.gt.f32.partialorder %v5849_v39, 0.0  ;;  %vm7901_vm9 = vcmp.gt.f32.partialorder %v5839_v4, 0.0 }
0x1211   : > { %v4214_v24 = vrot.slane %v4213_v53, 4  ;;  %v4198_v0 = vrot.slane %v4197_v8, 2  ;;  %v4206_v6 = vadd.f32 %v4205_v22, %v4204_v52  ;;  %v4182_v48 = vrot.slane %v4181_v34, 1 }
0x1212   : > { %v4190_v10 = vadd.f32 %v4189_v29, %v4188_v26  ;;  %v4174_v25 = vadd.f32 %v4173_v43, %v4172_v18  ;;  %vm7902_vm15 = vcmp.gt.f32.partialorder %v5842_v32, 0.0  ;;  %vm7903_vm12 = vcmp.gt.f32.partialorder %v5845_v14, 0.0 }
0x1213   : > { %v4215_v1 = vadd.f32 %v4214_v24, %v4213_v53  ;;  %v4199_v21 = vadd.f32 %v4198_v0, %v4197_v8  ;;  %v4207_v44 = vrot.slane %v4206_v6, 2  ;;  %v4183_v16 = vadd.f32 %v4182_v48, %v4181_v34 }
0x1214   : > { %v4191_v49 = vrot.slane %v4190_v10, 1  ;;  %v4229_v50 = vsel %vm7894_vm13, %v4174_v25, %v4228_v23  ;;  %v3988_v8 = vsub.f32 %v7096_v33, %v3907_v54  ;;  %vm7904_vm8 = vcmp.gt.f32.partialorder %v5852_v40, 0.0 }
0x1215   : > { %v4216_v42 = vrot.slane %v4215_v1, 2  ;;  %v4200_v62 = vrot.slane %v4199_v21, 1  ;;  %v4208_v30 = vadd.f32 %v4207_v44, %v4206_v6  ;;  %v4230_v51 = vsel %vm7895_vm0, %v4183_v16, %v4229_v50 }
0x1216   : > { %v4192_v55 = vadd.f32 %v4191_v49, %v4190_v10  ;;  %v3997_v43 = vmul.f32 1.442695, %v3988_v8  ;;  %vm7905_vm13 = vcmp.gt.f32.partialorder %v5855_v45, 0.0  ;;  %vm7906_vm0 = vcmp.gt.f32.partialorder %v5861_v47, 0.0 }
0x1217   : > { %v4217_v27 = vadd.f32 %v4216_v42, %v4215_v1  ;;  %v4201_v3 = vadd.f32 %v4200_v62, %v4199_v21  ;;  %v4209_v13 = vrot.slane %v4208_v30, 1  ;;  %v3987_v40 = vsub.f32 %v7108_v20, %v7128_v19 }
0x1218   : > { %v4231_v63 = vsel %vm7896_vm1, %v4192_v55, %v4230_v51  ;;  %vm7907_vm1 = vcmp.gt.f32.partialorder %v5864_v59, 0.0  ;;  %5070 = vpow2.f32 %v3997_v43  ;;  %v2820_v16 = vsel %vm2683_vm3, %v6609_v28, 0.0 }
0x1219   : > { %v4218_v15 = vrot.slane %v4217_v27, 1  ;;  %v4210_v58 = vadd.f32 %v4209_v13, %v4208_v30  ;;  %v4232_v61 = vsel %vm7897_vm4, %v4201_v3, %v4231_v63  ;;  %vm7908_vm4 = vcmask 1041409  }
0x121a   : > { %v3995_v59 = vmul.f32 1.442695, %v3987_v40  ;;  %v3629_v3 = vsel %vm3492_vm10, %v6958_v2, 0.0 }
0x121b   : > { %v4219_v5 = vadd.f32 %v4218_v15, %v4217_v27  ;;  %v4233_v52 = vsel %vm7898_vm14, %v4210_v58, %v4232_v61  ;;  %vm7909_vm14 = vcmask 1042434   ;;  %v3225_v27 = vsel %vm3088_vm2, %v6783_v11, 0.0 }
0x121c   : > { %5072 = vpow2.f32 %v3995_v59 }
0x121d   : > { %v4234_v53 = vsel %vm7899_vm7, %v4219_v5, %v4233_v52  ;;  %vm7910_vm7 = vcmask 1043459  }
0x121e   : > { %v4236_v36 = vadd.f32 %v4234_v53, %v7074_v57 }
0x1220   : > { %v4254_v26 = vadd.f32 %v4252_v41, %v4236_v36 }
0x1222   : > { %v4256_v12 = vrot.slane %v4254_v26, 1  ;;  %v4257_v9 = vrot.slane %v4254_v26, 2  ;;  %v4258_v22 = vrot.slane %v4254_v26, 3  ;;  %v4259_v24 = vrot.slane %v4254_v26, 4  ;;  %v5071_v30 = vpop.eup %5070 }
0x1223   : > { %v4260_v18 = vrot.slane %v4254_v26, 5  ;;  %v4261_v34 = vrot.slane %v4254_v26, 6  ;;  %v4262_v29 = vrot.slane %v4254_v26, 7  ;;  %v7313_v10 = vsel %vm7907_vm1, %v4254_v26, -1e+09 }
0x1224   : > { %v4271_v0 = vsel %vm7900_vm6, %v4256_v12, -1e+09  ;;  %v7283_v57 = vsel %vm7901_vm9, %v4257_v9, -1e+09  ;;  %v7287_v6 = vsel %vm7902_vm15, %v4258_v22, -1e+09 }
0x1225   : > { %v4303_v33 = vsel %vm4302_vm5, %v4271_v0, -inf  ;;  %v7292_v54 = vsel %vm7903_vm12, %v4259_v24, -1e+09  ;;  %v7296_v1 = vsel %vm7904_vm8, %v4260_v18, -1e+09  ;;  %v4287_v39 = vrot.slane %v7283_v57, 7 }
0x1226   : > { %4304 = vmax.xlane.f32.xlu0 %v4303_v33  ;;  %v7301_v4 = vsel %vm7905_vm13, %v4261_v34, -1e+09  ;;  %v4288_v32 = vrot.slane %v7287_v6, 6  ;;  %v4290_v48 = vrot.slane %v7292_v54, 5  ;;  %v7307_v14 = vsel %vm7906_vm0, %v4262_v29, -1e+09  ;;  %v5073_v50 = vpop.eup %5072 }
0x1227   : > { %v4292_v45 = vrot.slane %v7296_v1, 4  ;;  %v4294_v42 = vrot.slane %v7301_v4, 3  ;;  %v4296_v23 = vrot.slane %v7307_v14, 2  ;;  %vm7911_vm6 = vcmask 1044484  }
0x1228   : > { %v4289_v21 = vsel %vm7908_vm4, %v4288_v32, %v4287_v39  ;;  %v4298_v20 = vrot.slane %v7313_v10, 1  ;;  %vm4306_vm9 = vcmask 129024   ;;  %vm7912_vm15 = vcmask 1045509  }
0x1229   : > { %v4291_v44 = vsel %vm7909_vm14, %v4290_v48, %v4289_v21  ;;  %vm7913_vm12 = vcmask 1046534   ;;  %v4019_v55 = vrot.slane %v5071_v30, 7  ;;  %vm7914_vm8 = vcmask 1047559   ;;  %v7922_v21 = vld [vmem:[#allocation11_spill] sm:$0xff] }
0x122a   : > { %v4293_v47 = vsel %vm7910_vm7, %v4292_v45, %v4291_v44  ;;  %vm7915_vm13 = vcmask 130054   ;;  %v7923_v45 = vrot.slane %v7922_v21, 7  ;;  %v7924_v44 = vld [vmem:[#allocation10_spill] sm:$0xff] }
0x122b   : > { %v4295_v25 = vsel %vm7911_vm6, %v4294_v42, %v4293_v47  ;;  %v4020_v15 = vsel %vm7914_vm8, %v4019_v55, %v5073_v50  ;;  %vm7928_vm6 = vcmask 1042434   ;;  %vm7931_vm8 = vcmask 1045509  }
0x122c   : > { %v4297_v19 = vsel %vm7912_vm15, %v4296_v23, %v4295_v25  ;;  %v4034_v28 = vsel %vm7915_vm13, %v4020_v15, 0.0  ;;  %v1969_v42 = vsub.f32 %v7924_v44, %v7923_v45  ;;  %vm7929_vm15 = vcmask 1043459  }
0x122d   : > { %v4299_v49 = vsel %vm7913_vm12, %v4298_v20, %v4297_v19  ;;  %v4646_v19 = vld [vmem:[#allocation4 + $0x38] ss:$0 sm:$0xff]  ;;  %vm7930_vm12 = vcmask 1044484   ;;  %vm7932_vm13 = vcmask 1046534  }
0x122e   : > { %v4307_v62 = vsel %vm4306_vm9, %v4299_v49, -inf }
0x122f   : > { %4308 = vmax.xlane.f32.xlu1 %v4307_v62 }
0x1233   : > { %2821 = vadd.xlane.f32.xlu1 %v2820_v16 }
0x1235   : > { %v1389_v13 = vpop.f32.mrb[12].mxu0 }
0x1236   : > { %v4876_v51 = vpop.f32.mrb[13].mxu0 }
0x1237   : > { %3226 = vadd.xlane.f32.xlu1 %v3225_v27  ;;  %v1392_v63 = vpop.f32.mrb[14].mxu0  ;;  %v1984_v27 = vmul.f32 1.442695, %v1969_v42 }
0x1238   : > { %v4877_v58 = vpop.f32.mrb[15].mxu0 }
0x123b   : > { %3630 = vadd.xlane.f32.xlu1 %v3629_v3  ;;  %v1390_v3 = vadd.f32 %v4646_v19, %v1389_v13 }
0x123f   : > { %4035 = vadd.xlane.f32.xlu1 %v4034_v28 }
0x12b3   : > { %v4305_v61 = vpop.xlane.xlu0 %4304 }
0x12b4   : > { %vm4327_vm3 = vcmp.ge.f32.partialorder %v4271_v0, %v4305_v61  ;;  %v4392_v5 = vsub.f32 %v4271_v0, %v4305_v61 }
0x12b5   : > { %v4335_v11 = vsel %vm4327_vm3, %v5587_v56, 16  ;;  %vm7933_vm3 = vcmask 261120  }
0x12b6   : > { %v4400_v52 = vmul.f32 1.442695, %v4392_v5  ;;  %v7336_v53 = vsel %vm4302_vm5, %v4335_v11, 2147483647  ;;  %v1395_v5 = vmax.f32 %v1390_v3, 0.0 }
0x12b7   : > { %v4358_v2 = vshra.s32 %v7336_v53, 16 }
0x12b8   : > { %5074 = vpow2.f32 %v4400_v52 }
0x12b9   : > { %v7339_v36 = vcvt.s32.f32 %v4358_v2  ;;  %5076 = vpow2.f32 %v1984_v27  ;;  %v4652_v2 = vld [vmem:[#allocation4 + $0x40] ss:$0 sm:$0xff] }
0x12bb   : > { %4361 = vmin.xlane.f32.xlu0 %v7339_v36 }
0x12bc   : > { %v7342_v41 = vpop.xlane.xlu1 %4308 }
0x12bd   : > { %v4312_v26 = vrot.slane %v7342_v41, 1  ;;  %v4313_v8 = vrot.slane %v7342_v41, 2  ;;  %v4314_v12 = vrot.slane %v7342_v41, 3  ;;  %v4315_v9 = vrot.slane %v7342_v41, 4 }
0x12be   : > { %v4316_v22 = vrot.slane %v7342_v41, 5  ;;  %v4317_v24 = vrot.slane %v7342_v41, 6  ;;  %v4318_v29 = vrot.slane %v7342_v41, 7 }
0x12bf   : > { %vm4328_vm2 = vcmp.ge.f32.partialorder %v7283_v57, %v4312_v26  ;;  %vm4329_vm10 = vcmp.ge.f32.partialorder %v7287_v6, %v4313_v8  ;;  %vm7356_vm0 = vcmp.ge.f32.partialorder %v7292_v54, %v4314_v12  ;;  %vm4331_vm1 = vcmp.ge.f32.partialorder %v7296_v1, %v4315_v9 }
0x12c0   : > { %v4336_v18 = vsel %vm4328_vm2, %v5587_v56, 16  ;;  %v4337_v34 = vsel %vm4329_vm10, %v5587_v56, 16  ;;  %vm7362_vm4 = vcmp.ge.f32.partialorder %v7301_v4, %v4316_v22  ;;  %vm7368_vm14 = vcmp.ge.f32.partialorder %v7307_v14, %v4317_v24 }
0x12c1   : > { %v4343_v33 = vrot.slane %v4336_v18, 7  ;;  %v4344_v39 = vrot.slane %v4337_v34, 6  ;;  %vm7378_vm7 = vcmp.ge.f32.partialorder %v7313_v10, %v4318_v29  ;;  %v4338_v23 = vsel %vm7356_vm0, %v5587_v56, 16 }
0x12c2   : > { %v5075_v43 = vpop.eup %5074  ;;  %v4339_v25 = vsel %vm4331_vm1, %v5587_v56, 16  ;;  %v4340_v20 = vsel %vm7362_vm4, %v5587_v56, 16  ;;  %v4341_v49 = vsel %vm7368_vm14, %v5587_v56, 16  ;;  %v4346_v62 = vrot.slane %v4338_v23, 5 }
0x12c3   : > { %v4439_v48 = vsel %vm4302_vm5, %v5075_v43, 0.0  ;;  %vm7927_vm5 = vcmask 1041409   ;;  %v4342_v16 = vsel %vm7378_vm7, %v5587_v56, 16  ;;  %v4348_v30 = vrot.slane %v4339_v25, 4  ;;  %v5077_v32 = vpop.eup %5076 }
0x12c4   : > { %4440 = vadd.xlane.f32.xlu1 %v4439_v48  ;;  %v4345_v59 = vsel %vm7927_vm5, %v4344_v39, %v4343_v33  ;;  %v4350_v50 = vrot.slane %v4340_v20, 3  ;;  %v4352_v51 = vrot.slane %v4341_v49, 2  ;;  %v4354_v58 = vrot.slane %v4342_v16, 1  ;;  %vm7940_vm14 = vmmov %vm7927_vm5 }
0x12c5   : > { %v4347_v55 = vsel %vm7928_vm6, %v4346_v62, %v4345_v59  ;;  %v4393_v13 = vsub.f32 %v7283_v57, %v4312_v26  ;;  %v1401_v34 = vmul.f32 %v4652_v2, %v1395_v5  ;;  %v4394_v0 = vsub.f32 %v7287_v6, %v4313_v8  ;;  %vm7943_vm5 = vmmov %vm7928_vm6  ;;  %v7944_v62 = vld [vmem:[#allocation13_spill] sm:$0xff] }
0x12c6   : > { %v4349_v15 = vsel %vm7929_vm15, %v4348_v30, %v4347_v55  ;;  %v4395_v33 = vsub.f32 %v7292_v54, %v4314_v12  ;;  %vm7934_vm2 = vcmask 130049   ;;  %v2006_v45 = vrot.slane %v5077_v32, 1  ;;  %v7936_v12 = vld [vmem:[#allocation9_spill] sm:$0xff] }
0x12c7   : > { %v4351_v63 = vsel %vm7930_vm12, %v4350_v50, %v4349_v15  ;;  %v4402_v39 = vmul.f32 1.442695, %v4393_v13  ;;  %v1402_v43 = vsel %vm7933_vm3, %v1401_v34, 0.0  ;;  %v4404_v48 = vmul.f32 1.442695, %v4394_v0 }
0x12c8   : > { %v4353_v28 = vsel %vm7931_vm8, %v4352_v51, %v4351_v63  ;;  %v4406_v40 = vmul.f32 1.442695, %v4395_v33  ;;  %v2009_v21 = vsel %vm7934_vm2, %v6215_v31, 0.0  ;;  %v4396_v57 = vsub.f32 %v7296_v1, %v4315_v9  ;;  %v4653_v33 = vld [vmem:[#allocation4 + $0x48] ss:$0 sm:$0xff] }
0x12c9   : > { %v4355_v61 = vsel %vm7932_vm13, %v4354_v58, %v4353_v28  ;;  %5078 = vpow2.f32 %v4402_v39  ;;  %vm7935_vm10 = vcmask 122880   ;;  %v4397_v54 = vsub.f32 %v7301_v4, %v4316_v22 }
0x12ca   : > { %v7402_v11 = vsel %vm4306_vm9, %v4355_v61, 2147483647  ;;  %5080 = vpow2.f32 %v4404_v48  ;;  %v2012_v6 = vsel %vm7935_vm10, %v2006_v45, 0.0  ;;  %v4408_v26 = vmul.f32 1.442695, %v4396_v57 }
0x12cb   : > { %v4373_v52 = vshra.s32 %v7402_v11, 16  ;;  %5082 = vpow2.f32 %v4406_v40  ;;  %v4398_v8 = vsub.f32 %v7307_v14, %v4317_v24  ;;  %vm7937_vm0 = vcmask 130048  }
0x12cc   : > { %v1618_v44 = vsel %vm7937_vm0, %v7936_v12, 0.0  ;;  %v4410_v42 = vmul.f32 1.442695, %v4397_v54  ;;  %5084 = vpow2.f32 %v4408_v26  ;;  %v4399_v1 = vsub.f32 %v7313_v10, %v4318_v29  ;;  %v7941_v29 = vld [vmem:[#allocation12_spill] sm:$0xff] }
0x12cd   : > { %v7405_v18 = vcvt.s32.f32 %v4373_v52  ;;  %v4412_v47 = vmul.f32 1.442695, %v4398_v8  ;;  %vm7938_vm1 = vcmask 130050   ;;  %vm7939_vm4 = vcmask 123904  }
0x12ce   : > { %v2415_v4 = vsel %vm7938_vm1, %v6426_v60, 0.0  ;;  %5086 = vpow2.f32 %v4410_v42  ;;  %v4414_v14 = vmul.f32 1.442695, %v4399_v1  ;;  %v2418_v25 = vsel %vm7939_vm4, %v6419_v38, 0.0 }
0x12cf   : > { %4376 = vmin.xlane.f32.xlu0 %v7405_v18  ;;  %5088 = vpow2.f32 %v4412_v47  ;;  %vm7942_vm7 = vcmask 124928   ;;  %vm7945_vm6 = vcmask 125952   ;;  %vm7946_vm8 = vcmask 126976  }
0x12d0   : > { %5090 = vpow2.f32 %v4414_v14  ;;  %v2823_v59 = vsel %vm7942_vm7, %v7941_v29, 0.0  ;;  %v3228_v16 = vsel %vm7945_vm6, %v7944_v62, 0.0  ;;  %v3632_v3 = vsel %vm7946_vm8, %v6962_v35, 0.0 }
0x12d1   : > { %vm7947_vm13 = vcmask 1045509   ;;  %vm7948_vm3 = vcmask 128000   ;;  %vm7949_vm2 = vcmask 1046534   ;;  %v4357_v5 = vand.u32 65535, %v7336_v53 }
0x12d2   : > { %v4037_v58 = vsel %vm7948_vm3, %v7164_v46, 0.0  ;;  %v4372_v13 = vand.u32 65535, %v7402_v11  ;;  %v2822_v11 = vpop.xlane.xlu1 %2821  ;;  %vm2427_vm1 = vcmask 1045504   ;;  %vm2832_vm4 = vcmask 1044480  }
0x12d3   : > { %1403 = vadd.xlane.f32.xlu0 %v1402_v43  ;;  %v5079_v31 = vpop.eup %5078  ;;  %v4359_v2 = vcvt.s32.f32 %v4357_v5  ;;  %vm7950_vm7 = vcmask 1043456   ;;  %vm4386_vm6 = vcmp.eq.s32.totalorder %v5587_v56, 7  ;;  %vm4466_vm8 = vcmask 15360  }
0x12d4   : > { %v5081_v9 = vpop.eup %5080  ;;  %v4424_v24 = vrot.slane %v5079_v31, 7  ;;  %v4374_v46 = vcvt.s32.f32 %v4372_v13 }
0x12d5   : > { %v5083_v22 = vpop.eup %5082  ;;  %v4425_v23 = vrot.slane %v5081_v9, 6 }
0x12d6   : > { %v4427_v20 = vrot.slane %v5083_v22, 5  ;;  %v5085_v41 = vpop.eup %5084  ;;  %v3227_v57 = vpop.xlane.xlu1 %3226 }
0x12d7   : > { %2010 = vadd.xlane.f32.xlu0 %v2009_v21  ;;  %v4426_v10 = vsel %vm7940_vm14, %v4425_v23, %v4424_v24  ;;  %v4429_v49 = vrot.slane %v5085_v41, 4  ;;  %vm3641_vm14 = vcmask 1042432  }
0x12d8   : > { %v4428_v60 = vsel %vm7943_vm5, %v4427_v20, %v4426_v10  ;;  %v5087_v19 = vpop.eup %5086  ;;  %vm4046_vm5 = vcmask 1041408  }
0x12d9   : > { %v4430_v30 = vsel %vm7929_vm15, %v4429_v49, %v4428_v60  ;;  %v5089_v38 = vpop.eup %5088  ;;  %v4431_v27 = vrot.slane %v5087_v19, 3  ;;  %vm4464_vm15 = vcmask 7168  }
0x12da   : > { %v5091_v50 = vpop.eup %5090  ;;  %v4433_v15 = vrot.slane %v5089_v38, 2 }
0x12db   : > { %2013 = vadd.xlane.f32.xlu0 %v2012_v6  ;;  %v4432_v55 = vsel %vm7930_vm12, %v4431_v27, %v4430_v30  ;;  %v4435_v63 = vrot.slane %v5091_v50, 1  ;;  %vm4456_vm12 = vcmask 64519  }
0x12dc   : > { %v4434_v51 = vsel %vm7947_vm13, %v4433_v15, %v4432_v55 }
0x12dd   : > { %v4436_v28 = vsel %vm7949_vm2, %v4435_v63, %v4434_v51 }
0x12de   : > { %v4442_v61 = vsel %vm4306_vm9, %v4436_v28, 0.0  ;;  %vm2021_vm9 = vcmask 1046528  }
0x12df   : > { %1619 = vadd.xlane.f32.xlu0 %v1618_v44 }
0x12e3   : > { %2416 = vadd.xlane.f32.xlu0 %v2415_v4 }
0x12e7   : > { %2419 = vadd.xlane.f32.xlu0 %v2418_v25 }
0x12eb   : > { %2824 = vadd.xlane.f32.xlu0 %v2823_v59 }
0x12ef   : > { %3229 = vadd.xlane.f32.xlu0 %v3228_v16 }
0x12f3   : > { %3633 = vadd.xlane.f32.xlu0 %v3632_v3 }
0x12f7   : > { %4038 = vadd.xlane.f32.xlu0 %v4037_v58 }
0x12fb   : > { %4443 = vadd.xlane.f32.xlu0 %v4442_v61 }
0x1348   : > { %v7443_v52 = vpop.xlane.xlu0 %4361 }
0x1349   : > { %vm4363_vm10 = vcmp.eq.f32.partialorder %v7339_v36, %v7443_v52 }
0x134a   : > { %v4364_v35 = vsel %vm4363_vm10, %v4359_v2, inf }
0x134b   : > { %4365 = vmin.xlane.f32.xlu1 %v4364_v35 }
0x135c   : > { %v7448_v34 = vpop.xlane.xlu0 %4376 }
0x135d   : > { %vm4378_vm0 = vcmp.eq.f32.partialorder %v7405_v18, %v7448_v34  ;;  %v3631_v18 = vpop.xlane.xlu1 %3630 }
0x135e   : > { %v4379_v0 = vsel %vm4378_vm0, %v4374_v46, inf }
0x135f   : > { %4380 = vmin.xlane.f32.xlu0 %v4379_v0 }
0x1360   : > { %v1404_v53 = vpop.xlane.xlu0 %1403 }
0x1361   : > { %v1410_v39 = vadd.f32 %v4653_v33, %v1404_v53  ;;  %v4036_v26 = vpop.xlane.xlu1 %4035 }
0x1363   : > { %4461 = vrot.lane.b32.xlu1 %v1410_v39, %s5238_s14 }
0x1364   : > { %v2011_v43 = vpop.xlane.xlu0 %2010 }
0x1365   : > { %5092 = vlog2.f32 %v2011_v43  ;;  %v4441_v31 = vpop.xlane.xlu1 %4440 }
0x1368   : > { %v2014_v32 = vpop.xlane.xlu0 %2013 }
0x1369   : > { %5094 = vlog2.f32 %v2014_v32 }
0x136c   : > { %v1620_v36 = vpop.xlane.xlu0 %1619 }
0x136d   : > { %5096 = vlog2.f32 %v1620_v36 }
0x136f   : > { %v5093_v8 = vpop.eup %5092 }
0x1370   : > { %v2417_v48 = vpop.xlane.xlu0 %2416  ;;  %v2016_v20 = vmul.f32 0.6931472, %v5093_v8 }
0x1372   : > { %v2022_v55 = vrot.slane %v2016_v20, 1 }
0x1373   : > { %v5095_v44 = vpop.eup %5094 }
0x1374   : > { %v2420_v40 = vpop.xlane.xlu0 %2419  ;;  %v2018_v22 = vmul.f32 0.6931472, %v5095_v44 }
0x1375   : > { %5098 = vlog2.f32 %v2420_v40 }
0x1376   : > { %5100 = vlog2.f32 %v2417_v48  ;;  %v2023_v19 = vrot.slane %v2018_v22, 1 }
0x1377   : > { %v5097_v42 = vpop.eup %5096 }
0x1378   : > { %v2825_v21 = vpop.xlane.xlu0 %2824  ;;  %v1622_v23 = vmul.f32 0.6931472, %v5097_v42  ;;  %v2024_v28 = vsel %vm2021_vm9, %v2022_v55, %v2023_v19 }
0x1379   : > { %5102 = vlog2.f32 %v2825_v21 }
0x137a   : > { %5104 = vlog2.f32 %v2822_v11  ;;  %v1623_v38 = vsub.f32 0.0, %v1622_v23 }
0x137c   : > { %v3230_v45 = vpop.xlane.xlu0 %3229  ;;  %v2026_v46 = vsub.f32 %v1623_v38, %v2024_v28 }
0x137d   : > { %5106 = vlog2.f32 %v3230_v45 }
0x137e   : > { %5108 = vlog2.f32 %v3227_v57 }
0x137f   : > { %v5099_v1 = vpop.eup %5098 }
0x1380   : > { %v3634_v6 = vpop.xlane.xlu0 %3633  ;;  %v5101_v9 = vpop.eup %5100  ;;  %v2424_v14 = vmul.f32 0.6931472, %v5099_v1 }
0x1381   : > { %5110 = vlog2.f32 %v3634_v6  ;;  %v2422_v10 = vmul.f32 0.6931472, %v5101_v9  ;;  %v4368_v6 = vcvt.f32.s32 %v7443_v52 }
0x1382   : > { %5112 = vlog2.f32 %v3631_v18  ;;  %v2429_v49 = vrot.slane %v2424_v14, 2  ;;  %v4383_v14 = vcvt.f32.s32 %v7448_v34 }
0x1383   : > { %v5103_v47 = vpop.eup %5102  ;;  %v2428_v50 = vrot.slane %v2422_v10, 2  ;;  %v4369_v42 = vshll.u32 %v4368_v6, 16 }
0x1384   : > { %v4039_v54 = vpop.xlane.xlu0 %4038  ;;  %v5105_v4 = vpop.eup %5104  ;;  %v2829_v41 = vmul.f32 0.6931472, %v5103_v47  ;;  %v4384_v23 = vshll.u32 %v4383_v14, 16 }
0x1385   : > { %5114 = vlog2.f32 %v4039_v54  ;;  %v2827_v59 = vmul.f32 0.6931472, %v5105_v4  ;;  %v2430_v61 = vsel %vm2427_vm1, %v2428_v50, %v2429_v49 }
0x1386   : > { %5116 = vlog2.f32 %v4036_v26  ;;  %v2834_v3 = vrot.slane %v2829_v41, 3  ;;  %v2432_v43 = vsub.f32 %v2026_v46, %v2430_v61 }
0x1387   : > { %v5107_v24 = vpop.eup %5106  ;;  %v2833_v63 = vrot.slane %v2827_v59, 3 }
0x1388   : > { %v4444_v12 = vpop.xlane.xlu0 %4443  ;;  %v5109_v25 = vpop.eup %5108  ;;  %v3234_v62 = vmul.f32 0.6931472, %v5107_v24 }
0x1389   : > { %5118 = vlog2.f32 %v4444_v12  ;;  %v3232_v30 = vmul.f32 0.6931472, %v5109_v25  ;;  %v2835_v33 = vsel %vm2832_vm4, %v2833_v63, %v2834_v3 }
0x138a   : > { %5120 = vlog2.f32 %v4441_v31  ;;  %v3238_v5 = vrot.slane %v3234_v62, 4  ;;  %v2837_v21 = vsub.f32 %v2432_v43, %v2835_v33 }
0x138b   : > { %v5111_v29 = vpop.eup %5110  ;;  %v3237_v13 = vrot.slane %v3232_v30, 4 }
0x138c   : > { %v5113_v60 = vpop.eup %5112  ;;  %v3638_v15 = vmul.f32 0.6931472, %v5111_v29 }
0x138d   : > { %v3636_v58 = vmul.f32 0.6931472, %v5113_v60  ;;  %v3239_v48 = vsel %vm7950_vm7, %v3237_v13, %v3238_v5 }
0x138e   : > { %v3643_v53 = vrot.slane %v3638_v15, 5  ;;  %v3241_v18 = vsub.f32 %v2837_v21, %v3239_v48 }
0x138f   : > { %v5115_v16 = vpop.eup %5114  ;;  %v3642_v32 = vrot.slane %v3636_v58, 5 }
0x1390   : > { %v5117_v27 = vpop.eup %5116  ;;  %v4043_v2 = vmul.f32 0.6931472, %v5115_v16 }
0x1391   : > { %v4041_v0 = vmul.f32 0.6931472, %v5117_v27  ;;  %v3644_v45 = vsel %vm3641_vm14, %v3642_v32, %v3643_v53 }
0x1392   : > { %v4048_v40 = vrot.slane %v4043_v2, 6  ;;  %v3646_v8 = vsub.f32 %v3241_v18, %v3644_v45 }
0x1393   : > { %v5119_v51 = vpop.eup %5118  ;;  %v4047_v11 = vrot.slane %v4041_v0, 6 }
0x1394   : > { %v5121_v35 = vpop.eup %5120  ;;  %v4448_v39 = vmul.f32 0.6931472, %v5119_v51 }
0x1395   : > { %v4446_v36 = vmul.f32 0.6931472, %v5121_v35  ;;  %v4049_v26 = vsel %vm4046_vm5, %v4047_v11, %v4048_v40 }
0x1396   : > { %v4452_v57 = vrot.slane %v4448_v39, 7  ;;  %v4051_v1 = vsub.f32 %v3646_v8, %v4049_v26 }
0x1397   : > { %v4451_v54 = vrot.slane %v4446_v36, 7 }
0x1399   : > { %v4453_v44 = vsel %vm2362_vm11, %v4451_v54, %v4452_v57  ;;  %vm4458_vm11 = vcmask 63488  }
0x139a   : > { %v4455_v52 = vsub.f32 %v4051_v1, %v4453_v44 }
0x13d8   : > { %v4366_v12 = vpop.xlane.xlu1 %4365 }
0x13d9   : > { %v4367_v31 = vcvt.f32.s32 %v4366_v12 }
0x13db   : > { %v4370_v9 = vadd.s32 %v4369_v42, %v4367_v31 }
0x13dc   : > { %v4462_v47 = vpop.permute.xlu1 %4461 }
0x13dd   : > { %v4390_v4 = vsel %vm4386_vm6, %v4370_v9, %v4387_v7  ;;  %v4465_v22 = vsel %vm4464_vm15, %v4455_v52, %v4462_v47 }
0x13de   : > { %4457 = vst.msk [vmem:[%s336_s27 - $0x7] sm:$0x80] %vm4456_vm12, %v4390_v4 }
0x13df   : > { %4467 = vst.msk [vmem:[%s340_s19] sm:$0xff] %vm4466_vm8, %v4465_v22 }
0x13ec   : > { %v4381_v24 = vpop.xlane.xlu0 %4380 }
0x13ed   : > { %v4382_v25 = vcvt.f32.s32 %v4381_v24 }
0x13ef   : > { %v4385_v20 = vadd.s32 %v4384_v23, %v4382_v25 }
0x13f1   : > { %v4391_v10 = vsel %vm4386_vm6, %v4385_v20, %v7266_v37 }
0x13f2   : > { %4459 = vst.msk [vmem:[%s336_s27 + $0x1] sm:$0x7f] %vm4458_vm11, %v4391_v10 }
0x13f3 PF: > { %p18_p4 = scmp.ge.s32.totalorder %s5318_s7, 4   ;;  %s7951_s21 = smov %s5216_s22 }
0x13f4   : > { %s7952_s22 = smov %s5220_s23  ;;  %s7953_s23 = smov %s5347_s28 }
0x13f5   : > { %s7954_s24 = smov %s5318_s7  ;;  %20 = sbr.rel (!%p18_p4) target bundleno = 4 (0x4), region = 102 }
0x13fc   :  { %4501 = vsyncpa [#allocation3], 1 }
0x13fd   :  { %4503 = vsyncpa [#allocation3 + $0x1], 1 }
0x13fe   :  { %4504 = vsyncpa [#allocation5], 1 }

</bundles_post_ra>
